<compile_context>
chip_gen: v6e
topology: v6e:2x2x1
jax: 0.10.0
libtpu: 0.0.40
codegen_flags: <defaults>
</compile_context>

<pallas_src>
import functools
import numpy as np
import jax
import jax.numpy as jnp
from jax.experimental import pallas as pl
from jax.experimental.pallas import tpu as pltpu

EPS = 1e-5                 # nn.InstanceNorm3d default eps
NEG = 0.01                 # LeakyReLU negative_slope used by MONAI dynunet blocks
MXU_DTYPE = jnp.bfloat16   # MXU operand dtype (f32 accumulation everywhere)


def _round_up(x, m):
    return (x + m - 1) // m * m


# --------------------------------------------------------------------------
# Fused 3x3x3 convolution kernel (shifted-tap accumulation, no im2col in HBM)
# --------------------------------------------------------------------------
def _conv3x3x3_kernel(*args, n_in, H, W):
    """grid = (N, D, 3).  td = program_id(2) is the depth tap (reduction axis).
    For each of `n_in` inputs, accumulate the 9 (th, tw) shifted-tap matmuls of
    the current padded depth slice into the f32 VMEM accumulator."""
    x_refs = args[:n_in]
    w_refs = args[n_in:2 * n_in]
    o_ref = args[2 * n_in]
    acc_ref = args[2 * n_in + 1]

    @pl.when(pl.program_id(2) == 0)
    def _():
        acc_ref[...] = jnp.zeros_like(acc_ref)

    for x_ref, w_ref in zip(x_refs, w_refs):
        ci = x_ref.shape[-1]
        for th in range(3):
            for tw in range(3):
                a = x_ref[0, 0, pl.ds(th, H), pl.ds(tw, W), :].reshape(H * W, ci)
                acc_ref[...] += jnp.dot(a, w_ref[0, 3 * th + tw],
                                        preferred_element_type=jnp.float32)

    @pl.when(pl.program_id(2) == pl.num_programs(2) - 1)
    def _():
        o_ref[...] = acc_ref[...].reshape(o_ref.shape).astype(o_ref.dtype)


def conv3x3(xs, ws):
    """3x3x3 stride-1 'same' conv over the *virtual* channel-concat of `xs`.
    xs: list of (N, D, H, W, Ci) float32;  ws: list of (3, 3, 3, Ci, Cout)."""
    N, D, H, W, _ = xs[0].shape
    Cout = ws[0].shape[-1]
    n_in = len(xs)

    args, in_specs = [], []
    for x in xs:
        ci = x.shape[-1]
        xp = jnp.pad(x.astype(MXU_DTYPE),
                     ((0, 0), (1, 1), (1, 1), (1, 1), (0, 0)))
        args.append(xp)
        in_specs.append(pl.BlockSpec((1, 1, H + 2, W + 2, ci),
                                     lambda n, d, td: (n, d + td, 0, 0, 0)))
    for w in ws:
        ci = w.shape[3]
        args.append(w.reshape(3, 9, ci, Cout).astype(MXU_DTYPE))
        in_specs.append(pl.BlockSpec((1, 9, ci, Cout),
                                     lambda n, d, td: (td, 0, 0, 0)))

    out = pl.pallas_call(
        functools.partial(_conv3x3x3_kernel, n_in=n_in, H=H, W=W),
        out_shape=jax.ShapeDtypeStruct((N, D, H * W, Cout), jnp.float32),
        grid_spec=pltpu.PrefetchScalarGridSpec(
            num_scalar_prefetch=0,
            grid=(N, D, 3),
            in_specs=in_specs,
            out_specs=pl.BlockSpec((1, 1, H * W, Cout),
                                   lambda n, d, td: (n, d, 0, 0)),
            scratch_shapes=[pltpu.VMEM((H * W, Cout), jnp.float32)]),
        compiler_params=pltpu.CompilerParams(
            dimension_semantics=("parallel", "parallel", "arbitrary")),
    )(*args)
    return out.reshape(N, D, H, W, Cout)


# --------------------------------------------------------------------------
# Small exact-width matmul kernel (1x1x1 convs / transposed convs / out conv)
# --------------------------------------------------------------------------
def _matmul_kernel(*args, has_bias):
    a_ref, b_ref = args[0], args[1]
    o_ref = args[-1]
    y = jnp.dot(a_ref[...], b_ref[...], preferred_element_type=jnp.float32)
    if has_bias:
        y = y + args[2][...]
    o_ref[...] = y.astype(o_ref.dtype)


def pallas_matmul(a, b, bias=None, tm_max=512):
    """(M, K) @ (K, Nc) -> (M, Nc) float32.  K and Nc are kept at their exact
    (small) widths -- no 128-padding of columns; single K block, no scratch.
    M <= tm_max uses one full-extent block; larger M is tiled by tm_max."""
    M, K = a.shape
    _, Nc = b.shape
    if M <= tm_max:
        tm, Mp = M, M
    else:
        tm = tm_max
        Mp = _round_up(M, tm)
    a_p = a if Mp == M else jnp.pad(a, ((0, Mp - M), (0, 0)))

    args = [a_p, b]
    in_specs = [pl.BlockSpec((tm, K), lambda i: (i, 0)),
                pl.BlockSpec((K, Nc), lambda i: (0, 0))]
    if bias is not None:
        args.append(bias.reshape(1, Nc).astype(jnp.float32))
        in_specs.append(pl.BlockSpec((1, Nc), lambda i: (0, 0)))

    out = pl.pallas_call(
        functools.partial(_matmul_kernel, has_bias=bias is not None),
        out_shape=jax.ShapeDtypeStruct((Mp, Nc), jnp.float32),
        grid=(Mp // tm,),
        in_specs=in_specs,
        out_specs=pl.BlockSpec((tm, Nc), lambda i: (i, 0)),
        compiler_params=pltpu.CompilerParams(dimension_semantics=("parallel",)),
    )(*args)
    return out if Mp == M else out[:M]


# --------------------------------------------------------------------------
# InstanceNorm3d kernels (affine=False -- matches nn.InstanceNorm3d defaults
# that MONAI's norm_name='instance' resolves to).
# NOTE: blocks stay channels-last (C on lanes).  Transposing to a lane-dense
# (C, S) layout would cost two extra full-tensor HBM shuffles per norm, which
# outweighs the masked-lane VPU cost at these channel counts.
# TODO(synk): for realistic UNETR volumes, stream the per-sample reduction
# over S tiles (two-pass) so a single block never exceeds v7x's 64 MiB VMEM.
# --------------------------------------------------------------------------
def _inorm(x):
    mean = jnp.mean(x, axis=0, keepdims=True)
    var = jnp.mean(jnp.square(x - mean), axis=0, keepdims=True)
    return (x - mean) * jax.lax.rsqrt(var + EPS)


def _in_act_kernel(x_ref, o_ref, *, act):
    y = _inorm(x_ref[0])
    if act:
        y = jnp.where(y > 0, y, NEG * y)
    o_ref[0] = y


def _in_res_kernel(*args, n_res, has_w):
    """out = LeakyReLU( IN(y) + residual ), where residual is either a raw
    tensor (identity skip) or IN( sum_i x_i @ w_i )  (fused 1x1x1 conv3 +
    norm3 of the MONAI UnetResBlock downsample path)."""
    y_ref = args[0]
    y = _inorm(y_ref[0])
    if has_w:
        x_refs = args[1:1 + n_res]
        w_refs = args[1 + n_res:1 + 2 * n_res]
        o_ref = args[1 + 2 * n_res]
        r = jnp.dot(x_refs[0][0], w_refs[0][...],
                    preferred_element_type=jnp.float32)
        for xr, wr in zip(x_refs[1:], w_refs[1:]):
            r += jnp.dot(xr[0], wr[...], preferred_element_type=jnp.float32)
        r = _inorm(r)
    else:
        o_ref = args[2]
        r = args[1][0]
    z = y + r
    o_ref[0] = jnp.where(z > 0, z, NEG * z)


def instance_norm_act(x, act=True):
    """x: (N, D, H, W, C) -> InstanceNorm over spatial dims (+ LeakyReLU)."""
    N, D, H, W, C = x.shape
    S = D * H * W
    out = pl.pallas_call(
        functools.partial(_in_act_kernel, act=act),
        out_shape=jax.ShapeDtypeStruct((N, S, C), jnp.float32),
        grid=(N,),
        in_specs=[pl.BlockSpec((1, S, C), lambda n: (n, 0, 0))],
        out_specs=pl.BlockSpec((1, S, C), lambda n: (n, 0, 0)),
        compiler_params=pltpu.CompilerParams(dimension_semantics=("parallel",)),
    )(x.reshape(N, S, C))
    return out.reshape(N, D, H, W, C)


def instnorm_add_act(y, res_xs, res_ws):
    """Fused tail of UnetResBlock:
       res_ws is None -> out = lrelu(IN(y) + res_xs[0])              (identity skip)
       else           -> out = lrelu(IN(y) + IN(sum_i res_xs[i] @ res_ws[i]))."""
    N, D, H, W, C = y.shape
    S = D * H * W
    args = [y.reshape(N, S, C)]
    in_specs = [pl.BlockSpec((1, S, C), lambda n: (n, 0, 0))]
    if res_ws is None:
        kern = functools.partial(_in_res_kernel, n_res=1, has_w=False)
        args.append(res_xs[0].reshape(N, S, C))
        in_specs.append(pl.BlockSpec((1, S, C), lambda n: (n, 0, 0)))
    else:
        kern = functools.partial(_in_res_kernel, n_res=len(res_xs), has_w=True)
        for x in res_xs:
            ci = x.shape[-1]
            args.append(x.reshape(N, S, ci))
            in_specs.append(pl.BlockSpec((1, S, ci), lambda n: (n, 0, 0)))
        for w in res_ws:
            ci = w.shape[-2]
            args.append(w.reshape(ci, C))
            in_specs.append(pl.BlockSpec((ci, C), lambda n: (0, 0)))
    out = pl.pallas_call(
        kern,
        out_shape=jax.ShapeDtypeStruct((N, S, C), jnp.float32),
        grid=(N,),
        in_specs=in_specs,
        out_specs=pl.BlockSpec((1, S, C), lambda n: (n, 0, 0)),
        compiler_params=pltpu.CompilerParams(dimension_semantics=("parallel",)),
    )(*args)
    return out.reshape(N, D, H, W, C)


# --------------------------------------------------------------------------
# Transposed conv (kernel_size == stride) and 1x1x1 output conv
# --------------------------------------------------------------------------
def conv_transpose3d(x, w):
    """x: (N, D, H, W, Cin);  w: (Cin, sd, sh, sw, Cout); stride == kernel."""
    N, D, H, W, Cin = x.shape
    cin, sd, sh, sw, cout = w.shape
    a = x.reshape(N * D * H * W, Cin).astype(MXU_DTYPE)
    b = w.reshape(Cin, sd * sh * sw * cout).astype(MXU_DTYPE)
    y = pallas_matmul(a, b)
    y = y.reshape(N, D, H, W, sd, sh, sw, cout)
    # TODO(synk): fold this (sd, sh, sw) spatial interleave into the matmul's
    # output index_map so the upsampled layout is written directly by the DMA.
    y = y.transpose(0, 1, 4, 2, 5, 3, 6, 7).reshape(
        N, D * sd, H * sh, W * sw, cout)
    return y


def out_conv(x, w, bias):
    """UnetOutBlock: 1x1x1 conv with bias, fused into the matmul epilogue."""
    N, D, H, W, C = x.shape
    cout = w.shape[-1]
    a = x.reshape(N * D * H * W, C).astype(MXU_DTYPE)
    b = w.reshape(C, cout).astype(MXU_DTYPE)
    y = pallas_matmul(a, b, bias=bias)
    return y.reshape(N, D, H, W, cout)


# --------------------------------------------------------------------------
# MONAI building blocks (UnetResBlock / UnetrUpBlock semantics)
# --------------------------------------------------------------------------
def _split_cin(w, cins, axis):
    if len(cins) == 1:
        return [w]
    parts, off = [], 0
    for c in cins:
        idx = [slice(None)] * w.ndim
        idx[axis] = slice(off, off + c)
        parts.append(w[tuple(idx)])
        off += c
    return parts


def unet_res_block(xs, p):
    """xs: list of channels-last tensors whose channel-concat is the block
    input (the concat itself is never materialized)."""
    cins = [x.shape[-1] for x in xs]
    h = conv3x3(xs, _split_cin(p['w1'], cins, axis=3))      # conv1
    h = instance_norm_act(h)                                # norm1 + lrelu
    h = conv3x3([h], [p['w2']])                             # conv2
    if 'w3' in p:                                           # downsample skip
        return instnorm_add_act(h, xs, _split_cin(p['w3'], cins, axis=3))
    return instnorm_add_act(h, xs, None)                    # identity skip


def unetr_up_block(x, skip, p):
    up = conv_transpose3d(x, p['wt'])
    return unet_res_block([up, skip], p['res'])              # cat(up, skip) fused


# --------------------------------------------------------------------------
# Deterministic parameter init (synthetic; matches __init__ shapes)
# --------------------------------------------------------------------------
def init_res_block(key, cin, cout, k=3):
    k1, k2, k3 = jax.random.split(key, 3)
    p = {
        'w1': jax.random.normal(k1, (k, k, k, cin, cout), jnp.float32)
              / np.sqrt(cin * k ** 3),
        'w2': jax.random.normal(k2, (k, k, k, cout, cout), jnp.float32)
              / np.sqrt(cout * k ** 3),
    }
    if cin != cout:
        p['w3'] = jax.random.normal(k3, (1, 1, 1, cin, cout), jnp.float32) / np.sqrt(cin)
    return p


def init_up_block(key, cin, cout, up):
    k1, k2 = jax.random.split(key)
    sd, sh, sw = up
    wt = jax.random.normal(k1, (cin, sd, sh, sw, cout), jnp.float32) / np.sqrt(cin)
    return {'wt': wt, 'res': init_res_block(k2, 2 * cout, cout)}


# --------------------------------------------------------------------------
# UNETR3D forward
# --------------------------------------------------------------------------
def unetr3d_forward(params, x_in, backbone_features):
    to_cl = lambda t: jnp.transpose(t, (0, 2, 3, 4, 1))   # NCDHW -> NDHWC
    to_cf = lambda t: jnp.transpose(t, (0, 4, 1, 2, 3))   # NDHWC -> NCDHW
    x = to_cl(x_in)
    bf = [to_cl(t) for t in backbone_features]

    enc0 = unet_res_block([x], params['encoder1'])
    enc1 = unet_res_block([bf[0]], params['encoder2'])
    enc2 = unet_res_block([bf[1]], params['encoder3'])
    enc3 = unet_res_block([bf[2]], params['encoder4'])
    dec4 = unet_res_block([bf[4]], params['encoder10'])
    dec3 = unetr_up_block(dec4, bf[3], params['decoder5'])
    dec2 = unetr_up_block(dec3, enc3, params['decoder4'])
    dec1 = unetr_up_block(dec2, enc2, params['decoder3'])
    dec0 = unetr_up_block(dec1, enc1, params['decoder2'])
    out = unetr_up_block(dec0, enc0, params['decoder1'])
    out = out_conv(out, params['out_w'], params['out_b'])
    return [to_cf(out)]


# --------------------------------------------------------------------------
# Lightweight correctness checks of the Pallas pieces
# --------------------------------------------------------------------------
def _run_checks(key):
    ks = jax.random.split(key, 8)
    # 1) dual-input shifted-tap conv vs XLA conv on the concat.
    t1 = jax.random.normal(ks[0], (1, 2, 8, 8, 6), jnp.float32)
    t2 = jax.random.normal(ks[1], (1, 2, 8, 8, 10), jnp.float32)
    w1 = 0.1 * jax.random.normal(ks[2], (3, 3, 3, 6, 12), jnp.float32)
    w2 = 0.1 * jax.random.normal(ks[3], (3, 3, 3, 10, 12), jnp.float32)
    got = conv3x3([t1, t2], [w1, w2])
    xcat = jnp.concatenate([t1, t2], -1).astype(MXU_DTYPE).astype(jnp.float32)
    wcat = jnp.concatenate([w1, w2], 3).astype(MXU_DTYPE).astype(jnp.float32)
    want = jax.lax.conv_general_dilated(
        xcat, wcat, window_strides=(1, 1, 1), padding='SAME',
        dimension_numbers=('NDHWC', 'DHWIO', 'NDHWC'))
    np.testing.assert_allclose(np.asarray(got), np.asarray(want),
                               atol=5e-2, rtol=5e-2)
    # 2) matmul with M padding + fused bias.
    a = jax.random.normal(ks[4], (700, 24), jnp.float32)
    b = jax.random.normal(ks[5], (24, 40), jnp.float32)
    bias = jax.random.normal(ks[6], (40,), jnp.float32)
    got = pallas_matmul(a.astype(MXU_DTYPE), b.astype(MXU_DTYPE), bias=bias)
    want = (a.astype(MXU_DTYPE).astype(jnp.float32)
            @ b.astype(MXU_DTYPE).astype(jnp.float32)) + bias
    np.testing.assert_allclose(np.asarray(got), np.asarray(want),
                               atol=5e-2, rtol=5e-2)
    # 3) fused IN + (1x1 conv + IN residual) + lrelu.
    ky = jax.random.split(ks[7], 5)
    y = jax.random.normal(ky[0], (1, 2, 8, 8, 12), jnp.float32)
    xa = jax.random.normal(ky[1], (1, 2, 8, 8, 5), jnp.float32)
    xb = jax.random.normal(ky[2], (1, 2, 8, 8, 7), jnp.float32)
    wa = jax.random.normal(ky[3], (1, 1, 1, 5, 12), jnp.float32)
    wb = jax.random.normal(ky[4], (1, 1, 1, 7, 12), jnp.float32)
    got = instnorm_add_act(y, [xa, xb], [wa, wb])

    def ref_in(t):
        m = t.mean(axis=(1, 2, 3), keepdims=True)
        v = ((t - m) ** 2).mean(axis=(1, 2, 3), keepdims=True)
        return (t - m) * jax.lax.rsqrt(v + EPS)

    r = (jnp.einsum('ndhwc,co->ndhwo', xa, wa.reshape(5, 12))
         + jnp.einsum('ndhwc,co->ndhwo', xb, wb.reshape(7, 12)))
    want = ref_in(y) + ref_in(r)
    want = jnp.where(want > 0, want, NEG * want)
    np.testing.assert_allclose(np.asarray(got), np.asarray(want),
                               atol=1e-3, rtol=1e-3)


if __name__ == "__main__":
    key = jax.random.PRNGKey(0)
    # feature_channels[0] % 12 == 0 as required by the module
    feature_channels = [12, 12, 24, 24, 24]
    no_in_channel, no_out_channel = 2, 2
    patch_size = (1, 2, 2)                 # config.omnivore.patch_size
    N, D, H, W = 1, 2, 32, 32

    keys = jax.random.split(key, 18)
    params = {
        'encoder1':  init_res_block(keys[0], no_in_channel, feature_channels[0]),
        'encoder2':  init_res_block(keys[1], feature_channels[0], feature_channels[0]),
        'encoder3':  init_res_block(keys[2], feature_channels[1], feature_channels[1]),
        'encoder4':  init_res_block(keys[3], feature_channels[2], feature_channels[2]),
        'encoder10': init_res_block(keys[4], feature_channels[4], feature_channels[4]),
        'decoder5':  init_up_block(keys[5], feature_channels[4], feature_channels[3], (1, 2, 2)),
        'decoder4':  init_up_block(keys[6], feature_channels[3], feature_channels[2], (1, 2, 2)),
        'decoder3':  init_up_block(keys[7], feature_channels[2], feature_channels[1], (1, 2, 2)),
        'decoder2':  init_up_block(keys[8], feature_channels[1], feature_channels[0], (1, 2, 2)),
        'decoder1':  init_up_block(keys[9], feature_channels[0], feature_channels[0], patch_size),
        'out_w': jax.random.normal(keys[10], (1, 1, 1, feature_channels[0], no_out_channel),
                                   jnp.float32) / np.sqrt(feature_channels[0]),
        'out_b': 0.01 * jax.random.normal(keys[11], (no_out_channel,), jnp.float32),
    }

    # Quick numerical checks of the Pallas building blocks.
    _run_checks(keys[14])

    # Inputs (PyTorch NCDHW layout).  Backbone pyramid: bf[0] = x / patch_size,
    # then H,W halve each stage (D fixed), matching the (1,2,2) up-samplers.
    x_in = jax.random.normal(keys[12], (N, no_in_channel, D, H, W), jnp.float32)
    pd, ph, pw = patch_size
    bf_shapes = [
        (N, feature_channels[0], D // pd, H // ph,        W // pw),
        (N, feature_channels[1], D // pd, H // (ph * 2),  W // (pw * 2)),
        (N, feature_channels[2], D // pd, H // (ph * 4),  W // (pw * 4)),
        (N, feature_channels[3], D // pd, H // (ph * 8),  W // (pw * 8)),
        (N, feature_channels[4], D // pd, H // (ph * 16), W // (pw * 16)),
    ]
    backbone_features = [jax.random.normal(k, s, jnp.float32)
                         for k, s in zip(jax.random.split(keys[13], 5), bf_shapes)]

    out = jax.jit(unetr3d_forward)(params, x_in, backbone_features)
    jax.block_until_ready(out)
    assert out[0].shape == (N, no_out_channel, D, H, W), out[0].shape
    print("KERNEL_OK")
</pallas_src>

<mosaic_0001>
module attributes {stable_mosaic.version = 11 : i64} {
  func.func @_conv3x3x3_kernel(%arg0: i32, %arg1: i32, %arg2: i32, %arg3: memref<1x1x10x10x6xbf16, #tpu.memory_space<vmem>>, %arg4: memref<1x1x10x10x10xbf16, #tpu.memory_space<vmem>>, %arg5: memref<1x9x6x12xbf16, #tpu.memory_space<vmem>>, %arg6: memref<1x9x10x12xbf16, #tpu.memory_space<vmem>>, %arg7: memref<1x1x64x12xf32, #tpu.memory_space<vmem>>, %arg8: memref<64x12xf32, #tpu.memory_space<vmem>>) attributes {dimension_semantics = [#tpu.dimension_semantics<parallel>, #tpu.dimension_semantics<parallel>, #tpu.dimension_semantics<arbitrary>], iteration_bounds = array<i64: 1, 2, 3>, scalar_prefetch = 0 : i64, scratch_operands = 1 : i64, tpu.core_type = #tpu.core_type<tc>, window_params = [{transform_indices = @transform_0, window_bounds = array<i64: 1, 1, 10, 10, 6>}, {transform_indices = @transform_1, window_bounds = array<i64: 1, 1, 10, 10, 10>}, {transform_indices = @transform_2, window_bounds = array<i64: 1, 9, 6, 12>}, {transform_indices = @transform_3, window_bounds = array<i64: 1, 9, 10, 12>}, {transform_indices = @transform_4, window_bounds = array<i64: 1, 1, 64, 12>}]} {
    %c0_i32 = arith.constant 0 : i32
    %0 = arith.cmpi eq, %arg2, %c0_i32 : i32
    %1 = arith.extui %0 : i1 to i32
    %c0_i32_0 = arith.constant 0 : i32
    %2 = arith.cmpi ne, %1, %c0_i32_0 : i32
    scf.if %2 {
      %cst_244 = arith.constant 0.000000e+00 : f32
      %168 = vector.broadcast %cst_244 : f32 to vector<64x12xf32>
      %c0_245 = arith.constant 0 : index
      %c0_246 = arith.constant 0 : index
      %169 = vector.load %arg8[%c0_245, %c0_246] : memref<64x12xf32, #tpu.memory_space<vmem>>, vector<64x12xf32>
      tpu.vector_store %arg8[%c0_245, %c0_246], %168 {strides = array<i32>} : memref<64x12xf32, #tpu.memory_space<vmem>>, vector<64x12xf32>,
    } else {
    }
    %c0 = arith.constant 0 : index
    %c0_1 = arith.constant 0 : index
    %c0_2 = arith.constant 0 : index
    %c0_3 = arith.constant 0 : index
    %c0_4 = arith.constant 0 : index
    %3 = vector.load %arg3[%c0, %c0_1, %c0_2, %c0_3, %c0_4] : memref<1x1x10x10x6xbf16, #tpu.memory_space<vmem>>, vector<1x1x8x8x6xbf16>
    %4 = vector.shape_cast %3 : vector<1x1x8x8x6xbf16> to vector<8x8x6xbf16>
    %5 = vector.shape_cast %4 : vector<8x8x6xbf16> to vector<64x6xbf16>
    %c0_5 = arith.constant 0 : index
    %c0_6 = arith.constant 0 : index
    %6 = vector.load %arg8[%c0_5, %c0_6] : memref<64x12xf32, #tpu.memory_space<vmem>>, vector<64x12xf32>
    %c0_7 = arith.constant 0 : index
    %c0_8 = arith.constant 0 : index
    %c0_9 = arith.constant 0 : index
    %c0_10 = arith.constant 0 : index
    %7 = vector.load %arg5[%c0_7, %c0_8, %c0_9, %c0_10] : memref<1x9x6x12xbf16, #tpu.memory_space<vmem>>, vector<1x1x6x12xbf16>
    %8 = vector.shape_cast %7 : vector<1x1x6x12xbf16> to vector<6x12xbf16>
    %cst = arith.constant dense<0.000000e+00> : vector<64x12xf32>
    %9 = tpu.matmul %5, %8, %cst {dimension_numbers = #tpu.dot_dimension_numbers<[1], [0], [0], [1], [0, 0, 1, 1], [], []>} : vector<64x6xbf16>, vector<6x12xbf16>, vector<64x12xf32> -> vector<64x12xf32>
    %10 = arith.addf %6, %9 : vector<64x12xf32>
    %c0_11 = arith.constant 0 : index
    %c0_12 = arith.constant 0 : index
    %11 = vector.load %arg8[%c0_11, %c0_12] : memref<64x12xf32, #tpu.memory_space<vmem>>, vector<64x12xf32>
    tpu.vector_store %arg8[%c0_11, %c0_12], %10 {strides = array<i32>} : memref<64x12xf32, #tpu.memory_space<vmem>>, vector<64x12xf32>,
    %c0_13 = arith.constant 0 : index
    %c0_14 = arith.constant 0 : index
    %c0_15 = arith.constant 0 : index
    %c1 = arith.constant 1 : index
    %c0_16 = arith.constant 0 : index
    %12 = vector.load %arg3[%c0_13, %c0_14, %c0_15, %c1, %c0_16] : memref<1x1x10x10x6xbf16, #tpu.memory_space<vmem>>, vector<1x1x8x8x6xbf16>
    %13 = vector.shape_cast %12 : vector<1x1x8x8x6xbf16> to vector<8x8x6xbf16>
    %14 = vector.shape_cast %13 : vector<8x8x6xbf16> to vector<64x6xbf16>
    %c0_17 = arith.constant 0 : index
    %c0_18 = arith.constant 0 : index
    %15 = vector.load %arg8[%c0_17, %c0_18] : memref<64x12xf32, #tpu.memory_space<vmem>>, vector<64x12xf32>
    %c0_19 = arith.constant 0 : index
    %c1_20 = arith.constant 1 : index
    %c0_21 = arith.constant 0 : index
    %c0_22 = arith.constant 0 : index
    %16 = vector.load %arg5[%c0_19, %c1_20, %c0_21, %c0_22] : memref<1x9x6x12xbf16, #tpu.memory_space<vmem>>, vector<1x1x6x12xbf16>
    %17 = vector.shape_cast %16 : vector<1x1x6x12xbf16> to vector<6x12xbf16>
    %cst_23 = arith.constant dense<0.000000e+00> : vector<64x12xf32>
    %18 = tpu.matmul %14, %17, %cst_23 {dimension_numbers = #tpu.dot_dimension_numbers<[1], [0], [0], [1], [0, 0, 1, 1], [], []>} : vector<64x6xbf16>, vector<6x12xbf16>, vector<64x12xf32> -> vector<64x12xf32>
    %19 = arith.addf %15, %18 : vector<64x12xf32>
    %c0_24 = arith.constant 0 : index
    %c0_25 = arith.constant 0 : index
    %20 = vector.load %arg8[%c0_24, %c0_25] : memref<64x12xf32, #tpu.memory_space<vmem>>, vector<64x12xf32>
    tpu.vector_store %arg8[%c0_24, %c0_25], %19 {strides = array<i32>} : memref<64x12xf32, #tpu.memory_space<vmem>>, vector<64x12xf32>,
    %c0_26 = arith.constant 0 : index
    %c0_27 = arith.constant 0 : index
    %c0_28 = arith.constant 0 : index
    %c2 = arith.constant 2 : index
    %c0_29 = arith.constant 0 : index
    %21 = vector.load %arg3[%c0_26, %c0_27, %c0_28, %c2, %c0_29] : memref<1x1x10x10x6xbf16, #tpu.memory_space<vmem>>, vector<1x1x8x8x6xbf16>
    %22 = vector.shape_cast %21 : vector<1x1x8x8x6xbf16> to vector<8x8x6xbf16>
    %23 = vector.shape_cast %22 : vector<8x8x6xbf16> to vector<64x6xbf16>
    %c0_30 = arith.constant 0 : index
    %c0_31 = arith.constant 0 : index
    %24 = vector.load %arg8[%c0_30, %c0_31] : memref<64x12xf32, #tpu.memory_space<vmem>>, vector<64x12xf32>
    %c0_32 = arith.constant 0 : index
    %c2_33 = arith.constant 2 : index
    %c0_34 = arith.constant 0 : index
    %c0_35 = arith.constant 0 : index
    %25 = vector.load %arg5[%c0_32, %c2_33, %c0_34, %c0_35] : memref<1x9x6x12xbf16, #tpu.memory_space<vmem>>, vector<1x1x6x12xbf16>
    %26 = vector.shape_cast %25 : vector<1x1x6x12xbf16> to vector<6x12xbf16>
    %cst_36 = arith.constant dense<0.000000e+00> : vector<64x12xf32>
    %27 = tpu.matmul %23, %26, %cst_36 {dimension_numbers = #tpu.dot_dimension_numbers<[1], [0], [0], [1], [0, 0, 1, 1], [], []>} : vector<64x6xbf16>, vector<6x12xbf16>, vector<64x12xf32> -> vector<64x12xf32>
    %28 = arith.addf %24, %27 : vector<64x12xf32>
    %c0_37 = arith.constant 0 : index
    %c0_38 = arith.constant 0 : index
    %29 = vector.load %arg8[%c0_37, %c0_38] : memref<64x12xf32, #tpu.memory_space<vmem>>, vector<64x12xf32>
    tpu.vector_store %arg8[%c0_37, %c0_38], %28 {strides = array<i32>} : memref<64x12xf32, #tpu.memory_space<vmem>>, vector<64x12xf32>,
    %c0_39 = arith.constant 0 : index
    %c0_40 = arith.constant 0 : index
    %c1_41 = arith.constant 1 : index
    %c0_42 = arith.constant 0 : index
    %c0_43 = arith.constant 0 : index
    %30 = vector.load %arg3[%c0_39, %c0_40, %c1_41, %c0_42, %c0_43] : memref<1x1x10x10x6xbf16, #tpu.memory_space<vmem>>, vector<1x1x8x8x6xbf16>
    %31 = vector.shape_cast %30 : vector<1x1x8x8x6xbf16> to vector<8x8x6xbf16>
    %32 = vector.shape_cast %31 : vector<8x8x6xbf16> to vector<64x6xbf16>
    %c0_44 = arith.constant 0 : index
    %c0_45 = arith.constant 0 : index
    %33 = vector.load %arg8[%c0_44, %c0_45] : memref<64x12xf32, #tpu.memory_space<vmem>>, vector<64x12xf32>
    %c0_46 = arith.constant 0 : index
    %c3 = arith.constant 3 : index
    %c0_47 = arith.constant 0 : index
    %c0_48 = arith.constant 0 : index
    %34 = vector.load %arg5[%c0_46, %c3, %c0_47, %c0_48] : memref<1x9x6x12xbf16, #tpu.memory_space<vmem>>, vector<1x1x6x12xbf16>
    %35 = vector.shape_cast %34 : vector<1x1x6x12xbf16> to vector<6x12xbf16>
    %cst_49 = arith.constant dense<0.000000e+00> : vector<64x12xf32>
    %36 = tpu.matmul %32, %35, %cst_49 {dimension_numbers = #tpu.dot_dimension_numbers<[1], [0], [0], [1], [0, 0, 1, 1], [], []>} : vector<64x6xbf16>, vector<6x12xbf16>, vector<64x12xf32> -> vector<64x12xf32>
    %37 = arith.addf %33, %36 : vector<64x12xf32>
    %c0_50 = arith.constant 0 : index
    %c0_51 = arith.constant 0 : index
    %38 = vector.load %arg8[%c0_50, %c0_51] : memref<64x12xf32, #tpu.memory_space<vmem>>, vector<64x12xf32>
    tpu.vector_store %arg8[%c0_50, %c0_51], %37 {strides = array<i32>} : memref<64x12xf32, #tpu.memory_space<vmem>>, vector<64x12xf32>,
    %c0_52 = arith.constant 0 : index
    %c0_53 = arith.constant 0 : index
    %c1_54 = arith.constant 1 : index
    %c1_55 = arith.constant 1 : index
    %c0_56 = arith.constant 0 : index
    %39 = vector.load %arg3[%c0_52, %c0_53, %c1_54, %c1_55, %c0_56] : memref<1x1x10x10x6xbf16, #tpu.memory_space<vmem>>, vector<1x1x8x8x6xbf16>
    %40 = vector.shape_cast %39 : vector<1x1x8x8x6xbf16> to vector<8x8x6xbf16>
    %41 = vector.shape_cast %40 : vector<8x8x6xbf16> to vector<64x6xbf16>
    %c0_57 = arith.constant 0 : index
    %c0_58 = arith.constant 0 : index
    %42 = vector.load %arg8[%c0_57, %c0_58] : memref<64x12xf32, #tpu.memory_space<vmem>>, vector<64x12xf32>
    %c0_59 = arith.constant 0 : index
    %c4 = arith.constant 4 : index
    %c0_60 = arith.constant 0 : index
    %c0_61 = arith.constant 0 : index
    %43 = vector.load %arg5[%c0_59, %c4, %c0_60, %c0_61] : memref<1x9x6x12xbf16, #tpu.memory_space<vmem>>, vector<1x1x6x12xbf16>
    %44 = vector.shape_cast %43 : vector<1x1x6x12xbf16> to vector<6x12xbf16>
    %cst_62 = arith.constant dense<0.000000e+00> : vector<64x12xf32>
    %45 = tpu.matmul %41, %44, %cst_62 {dimension_numbers = #tpu.dot_dimension_numbers<[1], [0], [0], [1], [0, 0, 1, 1], [], []>} : vector<64x6xbf16>, vector<6x12xbf16>, vector<64x12xf32> -> vector<64x12xf32>
    %46 = arith.addf %42, %45 : vector<64x12xf32>
    %c0_63 = arith.constant 0 : index
    %c0_64 = arith.constant 0 : index
    %47 = vector.load %arg8[%c0_63, %c0_64] : memref<64x12xf32, #tpu.memory_space<vmem>>, vector<64x12xf32>
    tpu.vector_store %arg8[%c0_63, %c0_64], %46 {strides = array<i32>} : memref<64x12xf32, #tpu.memory_space<vmem>>, vector<64x12xf32>,
    %c0_65 = arith.constant 0 : index
    %c0_66 = arith.constant 0 : index
    %c1_67 = arith.constant 1 : index
    %c2_68 = arith.constant 2 : index
    %c0_69 = arith.constant 0 : index
    %48 = vector.load %arg3[%c0_65, %c0_66, %c1_67, %c2_68, %c0_69] : memref<1x1x10x10x6xbf16, #tpu.memory_space<vmem>>, vector<1x1x8x8x6xbf16>
    %49 = vector.shape_cast %48 : vector<1x1x8x8x6xbf16> to vector<8x8x6xbf16>
    %50 = vector.shape_cast %49 : vector<8x8x6xbf16> to vector<64x6xbf16>
    %c0_70 = arith.constant 0 : index
    %c0_71 = arith.constant 0 : index
    %51 = vector.load %arg8[%c0_70, %c0_71] : memref<64x12xf32, #tpu.memory_space<vmem>>, vector<64x12xf32>
    %c0_72 = arith.constant 0 : index
    %c5 = arith.constant 5 : index
    %c0_73 = arith.constant 0 : index
    %c0_74 = arith.constant 0 : index
    %52 = vector.load %arg5[%c0_72, %c5, %c0_73, %c0_74] : memref<1x9x6x12xbf16, #tpu.memory_space<vmem>>, vector<1x1x6x12xbf16>
    %53 = vector.shape_cast %52 : vector<1x1x6x12xbf16> to vector<6x12xbf16>
    %cst_75 = arith.constant dense<0.000000e+00> : vector<64x12xf32>
    %54 = tpu.matmul %50, %53, %cst_75 {dimension_numbers = #tpu.dot_dimension_numbers<[1], [0], [0], [1], [0, 0, 1, 1], [], []>} : vector<64x6xbf16>, vector<6x12xbf16>, vector<64x12xf32> -> vector<64x12xf32>
    %55 = arith.addf %51, %54 : vector<64x12xf32>
    %c0_76 = arith.constant 0 : index
    %c0_77 = arith.constant 0 : index
    %56 = vector.load %arg8[%c0_76, %c0_77] : memref<64x12xf32, #tpu.memory_space<vmem>>, vector<64x12xf32>
    tpu.vector_store %arg8[%c0_76, %c0_77], %55 {strides = array<i32>} : memref<64x12xf32, #tpu.memory_space<vmem>>, vector<64x12xf32>,
    %c0_78 = arith.constant 0 : index
    %c0_79 = arith.constant 0 : index
    %c2_80 = arith.constant 2 : index
    %c0_81 = arith.constant 0 : index
    %c0_82 = arith.constant 0 : index
    %57 = vector.load %arg3[%c0_78, %c0_79, %c2_80, %c0_81, %c0_82] : memref<1x1x10x10x6xbf16, #tpu.memory_space<vmem>>, vector<1x1x8x8x6xbf16>
    %58 = vector.shape_cast %57 : vector<1x1x8x8x6xbf16> to vector<8x8x6xbf16>
    %59 = vector.shape_cast %58 : vector<8x8x6xbf16> to vector<64x6xbf16>
    %c0_83 = arith.constant 0 : index
    %c0_84 = arith.constant 0 : index
    %60 = vector.load %arg8[%c0_83, %c0_84] : memref<64x12xf32, #tpu.memory_space<vmem>>, vector<64x12xf32>
    %c0_85 = arith.constant 0 : index
    %c6 = arith.constant 6 : index
    %c0_86 = arith.constant 0 : index
    %c0_87 = arith.constant 0 : index
    %61 = vector.load %arg5[%c0_85, %c6, %c0_86, %c0_87] : memref<1x9x6x12xbf16, #tpu.memory_space<vmem>>, vector<1x1x6x12xbf16>
    %62 = vector.shape_cast %61 : vector<1x1x6x12xbf16> to vector<6x12xbf16>
    %cst_88 = arith.constant dense<0.000000e+00> : vector<64x12xf32>
    %63 = tpu.matmul %59, %62, %cst_88 {dimension_numbers = #tpu.dot_dimension_numbers<[1], [0], [0], [1], [0, 0, 1, 1], [], []>} : vector<64x6xbf16>, vector<6x12xbf16>, vector<64x12xf32> -> vector<64x12xf32>
    %64 = arith.addf %60, %63 : vector<64x12xf32>
    %c0_89 = arith.constant 0 : index
    %c0_90 = arith.constant 0 : index
    %65 = vector.load %arg8[%c0_89, %c0_90] : memref<64x12xf32, #tpu.memory_space<vmem>>, vector<64x12xf32>
    tpu.vector_store %arg8[%c0_89, %c0_90], %64 {strides = array<i32>} : memref<64x12xf32, #tpu.memory_space<vmem>>, vector<64x12xf32>,
    %c0_91 = arith.constant 0 : index
    %c0_92 = arith.constant 0 : index
    %c2_93 = arith.constant 2 : index
    %c1_94 = arith.constant 1 : index
    %c0_95 = arith.constant 0 : index
    %66 = vector.load %arg3[%c0_91, %c0_92, %c2_93, %c1_94, %c0_95] : memref<1x1x10x10x6xbf16, #tpu.memory_space<vmem>>, vector<1x1x8x8x6xbf16>
    %67 = vector.shape_cast %66 : vector<1x1x8x8x6xbf16> to vector<8x8x6xbf16>
    %68 = vector.shape_cast %67 : vector<8x8x6xbf16> to vector<64x6xbf16>
    %c0_96 = arith.constant 0 : index
    %c0_97 = arith.constant 0 : index
    %69 = vector.load %arg8[%c0_96, %c0_97] : memref<64x12xf32, #tpu.memory_space<vmem>>, vector<64x12xf32>
    %c0_98 = arith.constant 0 : index
    %c7 = arith.constant 7 : index
    %c0_99 = arith.constant 0 : index
    %c0_100 = arith.constant 0 : index
    %70 = vector.load %arg5[%c0_98, %c7, %c0_99, %c0_100] : memref<1x9x6x12xbf16, #tpu.memory_space<vmem>>, vector<1x1x6x12xbf16>
    %71 = vector.shape_cast %70 : vector<1x1x6x12xbf16> to vector<6x12xbf16>
    %cst_101 = arith.constant dense<0.000000e+00> : vector<64x12xf32>
    %72 = tpu.matmul %68, %71, %cst_101 {dimension_numbers = #tpu.dot_dimension_numbers<[1], [0], [0], [1], [0, 0, 1, 1], [], []>} : vector<64x6xbf16>, vector<6x12xbf16>, vector<64x12xf32> -> vector<64x12xf32>
    %73 = arith.addf %69, %72 : vector<64x12xf32>
    %c0_102 = arith.constant 0 : index
    %c0_103 = arith.constant 0 : index
    %74 = vector.load %arg8[%c0_102, %c0_103] : memref<64x12xf32, #tpu.memory_space<vmem>>, vector<64x12xf32>
    tpu.vector_store %arg8[%c0_102, %c0_103], %73 {strides = array<i32>} : memref<64x12xf32, #tpu.memory_space<vmem>>, vector<64x12xf32>,
    %c0_104 = arith.constant 0 : index
    %c0_105 = arith.constant 0 : index
    %c2_106 = arith.constant 2 : index
    %c2_107 = arith.constant 2 : index
    %c0_108 = arith.constant 0 : index
    %75 = vector.load %arg3[%c0_104, %c0_105, %c2_106, %c2_107, %c0_108] : memref<1x1x10x10x6xbf16, #tpu.memory_space<vmem>>, vector<1x1x8x8x6xbf16>
    %76 = vector.shape_cast %75 : vector<1x1x8x8x6xbf16> to vector<8x8x6xbf16>
    %77 = vector.shape_cast %76 : vector<8x8x6xbf16> to vector<64x6xbf16>
    %c0_109 = arith.constant 0 : index
    %c0_110 = arith.constant 0 : index
    %78 = vector.load %arg8[%c0_109, %c0_110] : memref<64x12xf32, #tpu.memory_space<vmem>>, vector<64x12xf32>
    %c0_111 = arith.constant 0 : index
    %c8 = arith.constant 8 : index
    %c0_112 = arith.constant 0 : index
    %c0_113 = arith.constant 0 : index
    %79 = vector.load %arg5[%c0_111, %c8, %c0_112, %c0_113] : memref<1x9x6x12xbf16, #tpu.memory_space<vmem>>, vector<1x1x6x12xbf16>
    %80 = vector.shape_cast %79 : vector<1x1x6x12xbf16> to vector<6x12xbf16>
    %cst_114 = arith.constant dense<0.000000e+00> : vector<64x12xf32>
    %81 = tpu.matmul %77, %80, %cst_114 {dimension_numbers = #tpu.dot_dimension_numbers<[1], [0], [0], [1], [0, 0, 1, 1], [], []>} : vector<64x6xbf16>, vector<6x12xbf16>, vector<64x12xf32> -> vector<64x12xf32>
    %82 = arith.addf %78, %81 : vector<64x12xf32>
    %c0_115 = arith.constant 0 : index
    %c0_116 = arith.constant 0 : index
    %83 = vector.load %arg8[%c0_115, %c0_116] : memref<64x12xf32, #tpu.memory_space<vmem>>, vector<64x12xf32>
    tpu.vector_store %arg8[%c0_115, %c0_116], %82 {strides = array<i32>} : memref<64x12xf32, #tpu.memory_space<vmem>>, vector<64x12xf32>,
    %c0_117 = arith.constant 0 : index
    %c0_118 = arith.constant 0 : index
    %c0_119 = arith.constant 0 : index
    %c0_120 = arith.constant 0 : index
    %c0_121 = arith.constant 0 : index
    %84 = vector.load %arg4[%c0_117, %c0_118, %c0_119, %c0_120, %c0_121] : memref<1x1x10x10x10xbf16, #tpu.memory_space<vmem>>, vector<1x1x8x8x10xbf16>
    %85 = vector.shape_cast %84 : vector<1x1x8x8x10xbf16> to vector<8x8x10xbf16>
    %86 = vector.shape_cast %85 : vector<8x8x10xbf16> to vector<64x10xbf16>
    %c0_122 = arith.constant 0 : index
    %c0_123 = arith.constant 0 : index
    %87 = vector.load %arg8[%c0_122, %c0_123] : memref<64x12xf32, #tpu.memory_space<vmem>>, vector<64x12xf32>
    %c0_124 = arith.constant 0 : index
    %c0_125 = arith.constant 0 : index
    %c0_126 = arith.constant 0 : index
    %c0_127 = arith.constant 0 : index
    %88 = vector.load %arg6[%c0_124, %c0_125, %c0_126, %c0_127] : memref<1x9x10x12xbf16, #tpu.memory_space<vmem>>, vector<1x1x10x12xbf16>
    %89 = vector.shape_cast %88 : vector<1x1x10x12xbf16> to vector<10x12xbf16>
    %cst_128 = arith.constant dense<0.000000e+00> : vector<64x12xf32>
    %90 = tpu.matmul %86, %89, %cst_128 {dimension_numbers = #tpu.dot_dimension_numbers<[1], [0], [0], [1], [0, 0, 1, 1], [], []>} : vector<64x10xbf16>, vector<10x12xbf16>, vector<64x12xf32> -> vector<64x12xf32>
    %91 = arith.addf %87, %90 : vector<64x12xf32>
    %c0_129 = arith.constant 0 : index
    %c0_130 = arith.constant 0 : index
    %92 = vector.load %arg8[%c0_129, %c0_130] : memref<64x12xf32, #tpu.memory_space<vmem>>, vector<64x12xf32>
    tpu.vector_store %arg8[%c0_129, %c0_130], %91 {strides = array<i32>} : memref<64x12xf32, #tpu.memory_space<vmem>>, vector<64x12xf32>,
    %c0_131 = arith.constant 0 : index
    %c0_132 = arith.constant 0 : index
    %c0_133 = arith.constant 0 : index
    %c1_134 = arith.constant 1 : index
    %c0_135 = arith.constant 0 : index
    %93 = vector.load %arg4[%c0_131, %c0_132, %c0_133, %c1_134, %c0_135] : memref<1x1x10x10x10xbf16, #tpu.memory_space<vmem>>, vector<1x1x8x8x10xbf16>
    %94 = vector.shape_cast %93 : vector<1x1x8x8x10xbf16> to vector<8x8x10xbf16>
    %95 = vector.shape_cast %94 : vector<8x8x10xbf16> to vector<64x10xbf16>
    %c0_136 = arith.constant 0 : index
    %c0_137 = arith.constant 0 : index
    %96 = vector.load %arg8[%c0_136, %c0_137] : memref<64x12xf32, #tpu.memory_space<vmem>>, vector<64x12xf32>
    %c0_138 = arith.constant 0 : index
    %c1_139 = arith.constant 1 : index
    %c0_140 = arith.constant 0 : index
    %c0_141 = arith.constant 0 : index
    %97 = vector.load %arg6[%c0_138, %c1_139, %c0_140, %c0_141] : memref<1x9x10x12xbf16, #tpu.memory_space<vmem>>, vector<1x1x10x12xbf16>
    %98 = vector.shape_cast %97 : vector<1x1x10x12xbf16> to vector<10x12xbf16>
    %cst_142 = arith.constant dense<0.000000e+00> : vector<64x12xf32>
    %99 = tpu.matmul %95, %98, %cst_142 {dimension_numbers = #tpu.dot_dimension_numbers<[1], [0], [0], [1], [0, 0, 1, 1], [], []>} : vector<64x10xbf16>, vector<10x12xbf16>, vector<64x12xf32> -> vector<64x12xf32>
    %100 = arith.addf %96, %99 : vector<64x12xf32>
    %c0_143 = arith.constant 0 : index
    %c0_144 = arith.constant 0 : index
    %101 = vector.load %arg8[%c0_143, %c0_144] : memref<64x12xf32, #tpu.memory_space<vmem>>, vector<64x12xf32>
    tpu.vector_store %arg8[%c0_143, %c0_144], %100 {strides = array<i32>} : memref<64x12xf32, #tpu.memory_space<vmem>>, vector<64x12xf32>,
    %c0_145 = arith.constant 0 : index
    %c0_146 = arith.constant 0 : index
    %c0_147 = arith.constant 0 : index
    %c2_148 = arith.constant 2 : index
    %c0_149 = arith.constant 0 : index
    %102 = vector.load %arg4[%c0_145, %c0_146, %c0_147, %c2_148, %c0_149] : memref<1x1x10x10x10xbf16, #tpu.memory_space<vmem>>, vector<1x1x8x8x10xbf16>
    %103 = vector.shape_cast %102 : vector<1x1x8x8x10xbf16> to vector<8x8x10xbf16>
    %104 = vector.shape_cast %103 : vector<8x8x10xbf16> to vector<64x10xbf16>
    %c0_150 = arith.constant 0 : index
    %c0_151 = arith.constant 0 : index
    %105 = vector.load %arg8[%c0_150, %c0_151] : memref<64x12xf32, #tpu.memory_space<vmem>>, vector<64x12xf32>
    %c0_152 = arith.constant 0 : index
    %c2_153 = arith.constant 2 : index
    %c0_154 = arith.constant 0 : index
    %c0_155 = arith.constant 0 : index
    %106 = vector.load %arg6[%c0_152, %c2_153, %c0_154, %c0_155] : memref<1x9x10x12xbf16, #tpu.memory_space<vmem>>, vector<1x1x10x12xbf16>
    %107 = vector.shape_cast %106 : vector<1x1x10x12xbf16> to vector<10x12xbf16>
    %cst_156 = arith.constant dense<0.000000e+00> : vector<64x12xf32>
    %108 = tpu.matmul %104, %107, %cst_156 {dimension_numbers = #tpu.dot_dimension_numbers<[1], [0], [0], [1], [0, 0, 1, 1], [], []>} : vector<64x10xbf16>, vector<10x12xbf16>, vector<64x12xf32> -> vector<64x12xf32>
    %109 = arith.addf %105, %108 : vector<64x12xf32>
    %c0_157 = arith.constant 0 : index
    %c0_158 = arith.constant 0 : index
    %110 = vector.load %arg8[%c0_157, %c0_158] : memref<64x12xf32, #tpu.memory_space<vmem>>, vector<64x12xf32>
    tpu.vector_store %arg8[%c0_157, %c0_158], %109 {strides = array<i32>} : memref<64x12xf32, #tpu.memory_space<vmem>>, vector<64x12xf32>,
    %c0_159 = arith.constant 0 : index
    %c0_160 = arith.constant 0 : index
    %c1_161 = arith.constant 1 : index
    %c0_162 = arith.constant 0 : index
    %c0_163 = arith.constant 0 : index
    %111 = vector.load %arg4[%c0_159, %c0_160, %c1_161, %c0_162, %c0_163] : memref<1x1x10x10x10xbf16, #tpu.memory_space<vmem>>, vector<1x1x8x8x10xbf16>
    %112 = vector.shape_cast %111 : vector<1x1x8x8x10xbf16> to vector<8x8x10xbf16>
    %113 = vector.shape_cast %112 : vector<8x8x10xbf16> to vector<64x10xbf16>
    %c0_164 = arith.constant 0 : index
    %c0_165 = arith.constant 0 : index
    %114 = vector.load %arg8[%c0_164, %c0_165] : memref<64x12xf32, #tpu.memory_space<vmem>>, vector<64x12xf32>
    %c0_166 = arith.constant 0 : index
    %c3_167 = arith.constant 3 : index
    %c0_168 = arith.constant 0 : index
    %c0_169 = arith.constant 0 : index
    %115 = vector.load %arg6[%c0_166, %c3_167, %c0_168, %c0_169] : memref<1x9x10x12xbf16, #tpu.memory_space<vmem>>, vector<1x1x10x12xbf16>
    %116 = vector.shape_cast %115 : vector<1x1x10x12xbf16> to vector<10x12xbf16>
    %cst_170 = arith.constant dense<0.000000e+00> : vector<64x12xf32>
    %117 = tpu.matmul %113, %116, %cst_170 {dimension_numbers = #tpu.dot_dimension_numbers<[1], [0], [0], [1], [0, 0, 1, 1], [], []>} : vector<64x10xbf16>, vector<10x12xbf16>, vector<64x12xf32> -> vector<64x12xf32>
    %118 = arith.addf %114, %117 : vector<64x12xf32>
    %c0_171 = arith.constant 0 : index
    %c0_172 = arith.constant 0 : index
    %119 = vector.load %arg8[%c0_171, %c0_172] : memref<64x12xf32, #tpu.memory_space<vmem>>, vector<64x12xf32>
    tpu.vector_store %arg8[%c0_171, %c0_172], %118 {strides = array<i32>} : memref<64x12xf32, #tpu.memory_space<vmem>>, vector<64x12xf32>,
    %c0_173 = arith.constant 0 : index
    %c0_174 = arith.constant 0 : index
    %c1_175 = arith.constant 1 : index
    %c1_176 = arith.constant 1 : index
    %c0_177 = arith.constant 0 : index
    %120 = vector.load %arg4[%c0_173, %c0_174, %c1_175, %c1_176, %c0_177] : memref<1x1x10x10x10xbf16, #tpu.memory_space<vmem>>, vector<1x1x8x8x10xbf16>
    %121 = vector.shape_cast %120 : vector<1x1x8x8x10xbf16> to vector<8x8x10xbf16>
    %122 = vector.shape_cast %121 : vector<8x8x10xbf16> to vector<64x10xbf16>
    %c0_178 = arith.constant 0 : index
    %c0_179 = arith.constant 0 : index
    %123 = vector.load %arg8[%c0_178, %c0_179] : memref<64x12xf32, #tpu.memory_space<vmem>>, vector<64x12xf32>
    %c0_180 = arith.constant 0 : index
    %c4_181 = arith.constant 4 : index
    %c0_182 = arith.constant 0 : index
    %c0_183 = arith.constant 0 : index
    %124 = vector.load %arg6[%c0_180, %c4_181, %c0_182, %c0_183] : memref<1x9x10x12xbf16, #tpu.memory_space<vmem>>, vector<1x1x10x12xbf16>
    %125 = vector.shape_cast %124 : vector<1x1x10x12xbf16> to vector<10x12xbf16>
    %cst_184 = arith.constant dense<0.000000e+00> : vector<64x12xf32>
    %126 = tpu.matmul %122, %125, %cst_184 {dimension_numbers = #tpu.dot_dimension_numbers<[1], [0], [0], [1], [0, 0, 1, 1], [], []>} : vector<64x10xbf16>, vector<10x12xbf16>, vector<64x12xf32> -> vector<64x12xf32>
    %127 = arith.addf %123, %126 : vector<64x12xf32>
    %c0_185 = arith.constant 0 : index
    %c0_186 = arith.constant 0 : index
    %128 = vector.load %arg8[%c0_185, %c0_186] : memref<64x12xf32, #tpu.memory_space<vmem>>, vector<64x12xf32>
    tpu.vector_store %arg8[%c0_185, %c0_186], %127 {strides = array<i32>} : memref<64x12xf32, #tpu.memory_space<vmem>>, vector<64x12xf32>,
    %c0_187 = arith.constant 0 : index
    %c0_188 = arith.constant 0 : index
    %c1_189 = arith.constant 1 : index
    %c2_190 = arith.constant 2 : index
    %c0_191 = arith.constant 0 : index
    %129 = vector.load %arg4[%c0_187, %c0_188, %c1_189, %c2_190, %c0_191] : memref<1x1x10x10x10xbf16, #tpu.memory_space<vmem>>, vector<1x1x8x8x10xbf16>
    %130 = vector.shape_cast %129 : vector<1x1x8x8x10xbf16> to vector<8x8x10xbf16>
    %131 = vector.shape_cast %130 : vector<8x8x10xbf16> to vector<64x10xbf16>
    %c0_192 = arith.constant 0 : index
    %c0_193 = arith.constant 0 : index
    %132 = vector.load %arg8[%c0_192, %c0_193] : memref<64x12xf32, #tpu.memory_space<vmem>>, vector<64x12xf32>
    %c0_194 = arith.constant 0 : index
    %c5_195 = arith.constant 5 : index
    %c0_196 = arith.constant 0 : index
    %c0_197 = arith.constant 0 : index
    %133 = vector.load %arg6[%c0_194, %c5_195, %c0_196, %c0_197] : memref<1x9x10x12xbf16, #tpu.memory_space<vmem>>, vector<1x1x10x12xbf16>
    %134 = vector.shape_cast %133 : vector<1x1x10x12xbf16> to vector<10x12xbf16>
    %cst_198 = arith.constant dense<0.000000e+00> : vector<64x12xf32>
    %135 = tpu.matmul %131, %134, %cst_198 {dimension_numbers = #tpu.dot_dimension_numbers<[1], [0], [0], [1], [0, 0, 1, 1], [], []>} : vector<64x10xbf16>, vector<10x12xbf16>, vector<64x12xf32> -> vector<64x12xf32>
    %136 = arith.addf %132, %135 : vector<64x12xf32>
    %c0_199 = arith.constant 0 : index
    %c0_200 = arith.constant 0 : index
    %137 = vector.load %arg8[%c0_199, %c0_200] : memref<64x12xf32, #tpu.memory_space<vmem>>, vector<64x12xf32>
    tpu.vector_store %arg8[%c0_199, %c0_200], %136 {strides = array<i32>} : memref<64x12xf32, #tpu.memory_space<vmem>>, vector<64x12xf32>,
    %c0_201 = arith.constant 0 : index
    %c0_202 = arith.constant 0 : index
    %c2_203 = arith.constant 2 : index
    %c0_204 = arith.constant 0 : index
    %c0_205 = arith.constant 0 : index
    %138 = vector.load %arg4[%c0_201, %c0_202, %c2_203, %c0_204, %c0_205] : memref<1x1x10x10x10xbf16, #tpu.memory_space<vmem>>, vector<1x1x8x8x10xbf16>
    %139 = vector.shape_cast %138 : vector<1x1x8x8x10xbf16> to vector<8x8x10xbf16>
    %140 = vector.shape_cast %139 : vector<8x8x10xbf16> to vector<64x10xbf16>
    %c0_206 = arith.constant 0 : index
    %c0_207 = arith.constant 0 : index
    %141 = vector.load %arg8[%c0_206, %c0_207] : memref<64x12xf32, #tpu.memory_space<vmem>>, vector<64x12xf32>
    %c0_208 = arith.constant 0 : index
    %c6_209 = arith.constant 6 : index
    %c0_210 = arith.constant 0 : index
    %c0_211 = arith.constant 0 : index
    %142 = vector.load %arg6[%c0_208, %c6_209, %c0_210, %c0_211] : memref<1x9x10x12xbf16, #tpu.memory_space<vmem>>, vector<1x1x10x12xbf16>
    %143 = vector.shape_cast %142 : vector<1x1x10x12xbf16> to vector<10x12xbf16>
    %cst_212 = arith.constant dense<0.000000e+00> : vector<64x12xf32>
    %144 = tpu.matmul %140, %143, %cst_212 {dimension_numbers = #tpu.dot_dimension_numbers<[1], [0], [0], [1], [0, 0, 1, 1], [], []>} : vector<64x10xbf16>, vector<10x12xbf16>, vector<64x12xf32> -> vector<64x12xf32>
    %145 = arith.addf %141, %144 : vector<64x12xf32>
    %c0_213 = arith.constant 0 : index
    %c0_214 = arith.constant 0 : index
    %146 = vector.load %arg8[%c0_213, %c0_214] : memref<64x12xf32, #tpu.memory_space<vmem>>, vector<64x12xf32>
    tpu.vector_store %arg8[%c0_213, %c0_214], %145 {strides = array<i32>} : memref<64x12xf32, #tpu.memory_space<vmem>>, vector<64x12xf32>,
    %c0_215 = arith.constant 0 : index
    %c0_216 = arith.constant 0 : index
    %c2_217 = arith.constant 2 : index
    %c1_218 = arith.constant 1 : index
    %c0_219 = arith.constant 0 : index
    %147 = vector.load %arg4[%c0_215, %c0_216, %c2_217, %c1_218, %c0_219] : memref<1x1x10x10x10xbf16, #tpu.memory_space<vmem>>, vector<1x1x8x8x10xbf16>
    %148 = vector.shape_cast %147 : vector<1x1x8x8x10xbf16> to vector<8x8x10xbf16>
    %149 = vector.shape_cast %148 : vector<8x8x10xbf16> to vector<64x10xbf16>
    %c0_220 = arith.constant 0 : index
    %c0_221 = arith.constant 0 : index
    %150 = vector.load %arg8[%c0_220, %c0_221] : memref<64x12xf32, #tpu.memory_space<vmem>>, vector<64x12xf32>
    %c0_222 = arith.constant 0 : index
    %c7_223 = arith.constant 7 : index
    %c0_224 = arith.constant 0 : index
    %c0_225 = arith.constant 0 : index
    %151 = vector.load %arg6[%c0_222, %c7_223, %c0_224, %c0_225] : memref<1x9x10x12xbf16, #tpu.memory_space<vmem>>, vector<1x1x10x12xbf16>
    %152 = vector.shape_cast %151 : vector<1x1x10x12xbf16> to vector<10x12xbf16>
    %cst_226 = arith.constant dense<0.000000e+00> : vector<64x12xf32>
    %153 = tpu.matmul %149, %152, %cst_226 {dimension_numbers = #tpu.dot_dimension_numbers<[1], [0], [0], [1], [0, 0, 1, 1], [], []>} : vector<64x10xbf16>, vector<10x12xbf16>, vector<64x12xf32> -> vector<64x12xf32>
    %154 = arith.addf %150, %153 : vector<64x12xf32>
    %c0_227 = arith.constant 0 : index
    %c0_228 = arith.constant 0 : index
    %155 = vector.load %arg8[%c0_227, %c0_228] : memref<64x12xf32, #tpu.memory_space<vmem>>, vector<64x12xf32>
    tpu.vector_store %arg8[%c0_227, %c0_228], %154 {strides = array<i32>} : memref<64x12xf32, #tpu.memory_space<vmem>>, vector<64x12xf32>,
    %c0_229 = arith.constant 0 : index
    %c0_230 = arith.constant 0 : index
    %c2_231 = arith.constant 2 : index
    %c2_232 = arith.constant 2 : index
    %c0_233 = arith.constant 0 : index
    %156 = vector.load %arg4[%c0_229, %c0_230, %c2_231, %c2_232, %c0_233] : memref<1x1x10x10x10xbf16, #tpu.memory_space<vmem>>, vector<1x1x8x8x10xbf16>
    %157 = vector.shape_cast %156 : vector<1x1x8x8x10xbf16> to vector<8x8x10xbf16>
    %158 = vector.shape_cast %157 : vector<8x8x10xbf16> to vector<64x10xbf16>
    %c0_234 = arith.constant 0 : index
    %c0_235 = arith.constant 0 : index
    %159 = vector.load %arg8[%c0_234, %c0_235] : memref<64x12xf32, #tpu.memory_space<vmem>>, vector<64x12xf32>
    %c0_236 = arith.constant 0 : index
    %c8_237 = arith.constant 8 : index
    %c0_238 = arith.constant 0 : index
    %c0_239 = arith.constant 0 : index
    %160 = vector.load %arg6[%c0_236, %c8_237, %c0_238, %c0_239] : memref<1x9x10x12xbf16, #tpu.memory_space<vmem>>, vector<1x1x10x12xbf16>
    %161 = vector.shape_cast %160 : vector<1x1x10x12xbf16> to vector<10x12xbf16>
    %cst_240 = arith.constant dense<0.000000e+00> : vector<64x12xf32>
    %162 = tpu.matmul %158, %161, %cst_240 {dimension_numbers = #tpu.dot_dimension_numbers<[1], [0], [0], [1], [0, 0, 1, 1], [], []>} : vector<64x10xbf16>, vector<10x12xbf16>, vector<64x12xf32> -> vector<64x12xf32>
    %163 = arith.addf %159, %162 : vector<64x12xf32>
    %c0_241 = arith.constant 0 : index
    %c0_242 = arith.constant 0 : index
    %164 = vector.load %arg8[%c0_241, %c0_242] : memref<64x12xf32, #tpu.memory_space<vmem>>, vector<64x12xf32>
    tpu.vector_store %arg8[%c0_241, %c0_242], %163 {strides = array<i32>} : memref<64x12xf32, #tpu.memory_space<vmem>>, vector<64x12xf32>,
    %c2_i32 = arith.constant 2 : i32
    %165 = arith.cmpi eq, %arg2, %c2_i32 : i32
    %166 = arith.extui %165 : i1 to i32
    %c0_i32_243 = arith.constant 0 : i32
    %167 = arith.cmpi ne, %166, %c0_i32_243 : i32
    scf.if %167 {
      %c0_244 = arith.constant 0 : index
      %c0_245 = arith.constant 0 : index
      %168 = vector.load %arg8[%c0_244, %c0_245] : memref<64x12xf32, #tpu.memory_space<vmem>>, vector<64x12xf32>
      %169 = vector.shape_cast %168 : vector<64x12xf32> to vector<1x1x64x12xf32>
      %c0_246 = arith.constant 0 : index
      %c0_247 = arith.constant 0 : index
      %c0_248 = arith.constant 0 : index
      %c0_249 = arith.constant 0 : index
      %170 = vector.load %arg7[%c0_246, %c0_247, %c0_248, %c0_249] : memref<1x1x64x12xf32, #tpu.memory_space<vmem>>, vector<1x1x64x12xf32>
      tpu.vector_store %arg7[%c0_246, %c0_247, %c0_248, %c0_249], %169 {strides = array<i32>} : memref<1x1x64x12xf32, #tpu.memory_space<vmem>>, vector<1x1x64x12xf32>,
    } else {
    }
    return
  }
  func.func @transform_0(%arg0: i32, %arg1: i32, %arg2: i32) -> (i32, i32, i32, i32, i32) {
    %0 = arith.addi %arg1, %arg2 : i32
    %c0_i32 = arith.constant 0 : i32
    %c0_i32_0 = arith.constant 0 : i32
    %c0_i32_1 = arith.constant 0 : i32
    %c0_i32_2 = arith.constant 0 : i32
    return %arg0, %0, %c0_i32, %c0_i32_0, %c0_i32_1 : i32, i32, i32, i32, i32
  }
  func.func @transform_1(%arg0: i32, %arg1: i32, %arg2: i32) -> (i32, i32, i32, i32, i32) {
    %0 = arith.addi %arg1, %arg2 : i32
    %c0_i32 = arith.constant 0 : i32
    %c0_i32_0 = arith.constant 0 : i32
    %c0_i32_1 = arith.constant 0 : i32
    %c0_i32_2 = arith.constant 0 : i32
    return %arg0, %0, %c0_i32, %c0_i32_0, %c0_i32_1 : i32, i32, i32, i32, i32
  }
  func.func @transform_2(%arg0: i32, %arg1: i32, %arg2: i32) -> (i32, i32, i32, i32) {
    %c0_i32 = arith.constant 0 : i32
    %c0_i32_0 = arith.constant 0 : i32
    %c0_i32_1 = arith.constant 0 : i32
    %c0_i32_2 = arith.constant 0 : i32
    return %arg2, %c0_i32, %c0_i32_0, %c0_i32_1 : i32, i32, i32, i32
  }
  func.func @transform_3(%arg0: i32, %arg1: i32, %arg2: i32) -> (i32, i32, i32, i32) {
    %c0_i32 = arith.constant 0 : i32
    %c0_i32_0 = arith.constant 0 : i32
    %c0_i32_1 = arith.constant 0 : i32
    %c0_i32_2 = arith.constant 0 : i32
    return %arg2, %c0_i32, %c0_i32_0, %c0_i32_1 : i32, i32, i32, i32
  }
  func.func @transform_4(%arg0: i32, %arg1: i32, %arg2: i32) -> (i32, i32, i32, i32) {
    %c0_i32 = arith.constant 0 : i32
    %c0_i32_0 = arith.constant 0 : i32
    %c0_i32_1 = arith.constant 0 : i32
    return %arg0, %arg1, %c0_i32, %c0_i32_0 : i32, i32, i32, i32
  }
}

</mosaic_0001>

<bundles_post_ra>
// kernel: tpu_custom_call.1
= control target key start
LH: loop header
LB: loop body
LE: loop exit
PB: predicated region body
PF: predicated region fallthrough
CT: control target
= control target key end

     0   :  { %s4777_s15 = smov 0   ;;  %s4779_s16 = smov 0   ;;  %s5560_s0 = inlined_call_operand.vmem [shape: bf16[1,4,10,10,6], index: 0, kind: input, shape index: {}]   ;;  %s5561_s1 = inlined_call_operand.vmem [shape: bf16[1,4,10,10,10], index: 1, kind: input, shape index: {}]   ;;  %s5562_s2 = inlined_call_operand.vmem [shape: bf16[3,9,6,12], index: 2, kind: input, shape index: {}]   ;;  %s5563_s3 = inlined_call_operand.vmem [shape: bf16[3,9,10,12], index: 3, kind: input, shape index: {}]   ;;  %s5564_s4 = inlined_call_operand.vmem [shape: f32[1,2,64,12], index: 4, kind: output, shape index: {}]  }
   0x1   :  { %s4781_s17 = smov 0   ;;  %s4783_s18 = smov 0  }
   0x2   :  { %s4785_s19 = smov 0  }
   0x3 LB: > { %s26_s20 = sadd.s32 1, %s4741_s17  ;;  %s29_s21 = sadd.s32 1, %s4745_s18  ;;  %s4749_s19 = sphi %s4785_s19, %s14_s19   ;;  %s4745_s18 = sphi %s4783_s18, %s5572_s18   ;;  %s4741_s17 = sphi %s4781_s17, %s5571_s17   ;;  %s4737_s16 = sphi %s4779_s16, %s5570_s16   ;;  %s4733_s15 = sphi %s4777_s15, %s5569_s15  }
   0x4   : > { %p27_p0 = scmp.ge.s32.totalorder %s26_s20, 3  ;;  %p3949_p1 = scmp.ge.s32.totalorder %s4749_s19, 1 }
   0x5   : > { %p233_p2 = scmp.lt.s32.totalorder %s4749_s19, 7 }
   0x6   : > { %s5574_s20 = smov (%p27_p0, %s26_s20), 0  ;;  %s5576_s21 = smov (!%p27_p0, %s29_s21), %s4745_s18 }
   0x7   : > { %p234_p3 = pnand %p3949_p1, %p233_p2  ;;  %p31_p4 = scmp.ge.s32.totalorder %s5576_s21, 2 }
   0x8   : > { %s288_s22 = sadd.s32 (!%p234_p3), %s4733_s15, %s4737_s16  ;;  %p310_p5 = scmp.lt.s32.totalorder (!%p234_p3), %s4733_s15, 2 }
   0x9   : > { %s5578_s21 = smov (%p31_p4, %s5576_s21), 0  ;;  %237 = sbr.rel (%p234_p3) target bundleno = 435 (0x1b3), region = 36 }
   0xa   : > { %p291_p6 = scmp.lt.s32.totalorder (!%p234_p3), %s288_s22, 3  ;;  %p322_p7 = scmp.lt.s32.totalorder (!%p234_p3), %s4737_s16, 1 }
   0xb   : > { %p3956_p8 = scmp.ne.s32.totalorder (!%p234_p3), %s4733_s15, 0 }
   0xe   : > { %s311_s23 = scalar_select %p310_p5, %s4733_s15, 2 }
   0xf   : > { %s5580_s22 = smov (!%p291_p6, %s288_s22), 3  ;;  %s5582_s16 = smov (!%p322_p7, %s4737_s16), 1 }
  0x10   : > { %s4635_s24 = smul.u32 36, %s311_s23  ;;  %s4345_s13 = sshll.u32 %s5582_s16, 6 }
  0x11   : > { %s4634_s25 = smul.u32 80, %s5580_s22 }
  0x12   : > { %s4815_s28 = scalar_lea.vmem %s5562_s2, %s4635_s24  ;;  %s4636_s29 = smul.u32 72, %s311_s23 }
  0x13   : > { %s4820_s6 = scalar_lea.vmem %s5560_s0, %s4634_s25  ;;  %s4825_s9 = scalar_lea.vmem %s5561_s1, %s4634_s25 }
  0x14   : > { %s4830_s12 = scalar_lea.vmem %s5563_s3, %s4636_s29  ;;  %s4835_s23 = scalar_lea.vmem %s5564_s4, %s4345_s13 }
  0x15   : > { %333 = sbr.rel (%p3956_p8) target bundleno = 31 (0x1f), region = 40 }
  0x1a   : > { %vm334_vm0 = vcmask 97280   ;;  %v4751_v0 = vmov 0.0  }
  0x1b   : > { %335 = vst.msk [vmem:[#allocation2] sm:$0xff] %vm334_vm0, %v4751_v0  ;;  %336 = vst.msk [vmem:[#allocation2 + $0x8] sm:$0xff] %vm334_vm0, %v4751_v0 }
  0x1c   : > { %337 = vst.msk [vmem:[#allocation2 + $0x10] sm:$0xff] %vm334_vm0, %v4751_v0  ;;  %338 = vst.msk [vmem:[#allocation2 + $0x18] sm:$0xff] %vm334_vm0, %v4751_v0 }
  0x1d   : > { %339 = vst.msk [vmem:[#allocation2 + $0x20] sm:$0xff] %vm334_vm0, %v4751_v0  ;;  %340 = vst.msk [vmem:[#allocation2 + $0x28] sm:$0xff] %vm334_vm0, %v4751_v0 }
  0x1e   : > { %341 = vst.msk [vmem:[#allocation2 + $0x30] sm:$0xff] %vm334_vm0, %v4751_v0  ;;  %342 = vst.msk [vmem:[#allocation2 + $0x38] sm:$0xff] %vm334_vm0, %v4751_v0 }
  0x1f PF: > { %v359_v1 = vld [vmem:[%s4815_s28] sm:$0x7]  ;;  %vm393_vm1 = vcmask 1042432   ;;  %vm380_vm2 = vcmask 48128   ;;  %v4679_v4 = vld [vmem:[%s4820_s6 + $0x10] ss:$8 sps:$4 sm:$0xff]  }
  0x20   : > { %4616 = vmatprep.subr.msk.bf16.mxu0 %vm393_vm1, %v359_v1  ;;  %v395_v2 = vsel %vm393_vm1, %v359_v1, 0  ;;  %v4678_v3 = vld [vmem:[%s4820_s6] ss:$8 sps:$4 sm:$0xff]   ;;  %v3965_v6 = vld [vmem:[%s4815_s28 + $0x4] sm:$0x7]  ;;  %vm761_vm5 = vcmask 1046532  }
  0x21   : > { %4437 = vmatpush3.bf16.msra.mxu0 %v395_v2  ;;  %4438 = vmatprep.mubr.msk.bf16.mxu0 %vm380_vm2, %v4678_v3  ;;  %v3982_v5 = vld [vmem:[%s4815_s28 + $0x8] sm:$0x7]  ;;  %v645_v8 = vsel %vm393_vm1, %v3965_v6, 0  ;;  %v479_v10 = vld [vmem:[%s4820_s6] sm:$0xf]  ;;  %vm4886_vm7 = vmor %vm393_vm1, %vm761_vm5  ;;  %vm2095_vm8 = vcmask 1044480  }
  0x22   : > { %4618 = vmatprep.subr.msk.bf16.mxu0 %vm393_vm1, %v3982_v5  ;;  %4617 = vmatprep.subr.msk.bf16.mxu1 %vm393_vm1, %v3965_v6  ;;  %v830_v7 = vsel %vm393_vm1, %v3982_v5, 0  ;;  %v4680_v9 = vld [vmem:[%s4820_s6 + $0x20] ss:$8 sps:$4 sm:$0xff]   ;;  %v480_v11 = vld [vmem:[%s4820_s6 + $0x4] sm:$0x1]  ;;  %v499_v14 = vshrl.u32 %v479_v10, 16 }
  0x23   : > { %4447 = vmatpush3.bf16.msra.mxu1 %v645_v8  ;;  %v481_v12 = vld [vmem:[%s4820_s6 + $0x8] sm:$0xf]  ;;  %v482_v13 = vld [vmem:[%s4820_s6 + $0xc] sm:$0x1]  ;;  %vm495_vm3 = vsmask.f32 3328 }
  0x24   : > { %4439 = vmatmul.mubr.msk.bf16.vlgmr.msra.gmra.mxu0 %vm380_vm2, %v4679_v4  ;;  %vm496_vm4 = vsmask.f32 7440  ;;  %v502_v15 = vshll.u32 %v479_v10, 16  ;;  %v508_v16 = vshll.u32 %v480_v11, 16  ;;  %v513_v17 = vshrl.u32 %v481_v12, 16  ;;  %p4342_p9 = scmp.ne.s32.totalorder %s4733_s15, 2 }
  0x25   : > { %4457 = vmatpush3.bf16.msra.mxu0 %v830_v7  ;;  %4442 = vmatprep.mubr.msk.bf16.mxu0 %vm380_vm2, %v4680_v9  ;;  %v516_v18 = vshll.u32 %v481_v12, 16  ;;  %v522_v19 = vshll.u32 %v482_v13, 16  ;;  %v4681_v20 = vld [vmem:[%s4820_s6 + $0x30] ss:$8 sps:$4 sm:$0xff]   ;;  %v501_v21 = vrot.slane %v499_v14, 4  ;;  %vm4864_vm6 = vmor %vm495_vm3, %vm496_vm4  ;;  %vm2082_vm9 = vcmask 80896  }
  0x26   : > { %v504_v22 = vrot.slane %v502_v15, 5  ;;  %v510_v23 = vrot.slane %v508_v16, 5  ;;  %v515_v24 = vrot.slane %v513_v17, 4  ;;  %v483_v25 = vld [vmem:[%s4820_s6 + $0x10] sm:$0xf]  ;;  %vm470_vm10 = vcmask 97280  }
  0x27   : > { %v518_v26 = vrot.slane %v516_v18, 5  ;;  %v524_v27 = vrot.slane %v522_v19, 5  ;;  %v484_v28 = vld [vmem:[%s4820_s6 + $0x14] sm:$0x1]  ;;  %v485_v29 = vld [vmem:[%s4820_s6 + $0x18] sm:$0xf] }
  0x28   : > { %v505_v30 = vor.u32 %v504_v22, %v501_v21  ;;  %v486_v31 = vld [vmem:[%s4820_s6 + $0x1c] sm:$0x1]  ;;  %v527_v32 = vshrl.u32 %v483_v25, 16  ;;  %v530_v33 = vshll.u32 %v483_v25, 16  ;;  %v536_v34 = vshll.u32 %v484_v28, 16 }
  0x29   : > { %v519_v36 = vor.u32 %v518_v26, %v515_v24  ;;  %v541_v37 = vshrl.u32 %v485_v29, 16  ;;  %v544_v38 = vshll.u32 %v485_v29, 16  ;;  %v550_v39 = vshll.u32 %v486_v31, 16  ;;  %v3999_v40 = vld [vmem:[%s4815_s28 + $0xc] sm:$0x7] }
  0x2a   : > { %v506_v41 = vrot.slane %v505_v30, 4  ;;  %v529_v42 = vrot.slane %v527_v32, 4  ;;  %v532_v43 = vrot.slane %v530_v33, 5  ;;  %v538_v44 = vrot.slane %v536_v34, 5  ;;  %4619 = vmatprep.subr.msk.bf16.mxu1 %vm393_vm1, %v3999_v40  ;;  %v487_v45 = vld [vmem:[%s4820_s6 + $0x20] sm:$0xf] }
  0x2b   : > { %v520_v46 = vrot.slane %v519_v36, 4  ;;  %v543_v47 = vrot.slane %v541_v37, 4  ;;  %v546_v48 = vrot.slane %v544_v38, 5  ;;  %v552_v49 = vrot.slane %v550_v39, 5  ;;  %v488_v50 = vld [vmem:[%s4820_s6 + $0x24] sm:$0x1] }
  0x2c   : > { %4443 = vmatmul.mubr.msk.bf16.gmra.mxu0 %vm380_vm2, %v4681_v20  ;;  %v511_v51 = vsel %vm4864_vm6, %v506_v41, %v510_v23  ;;  %v533_v52 = vor.u32 %v532_v43, %v529_v42  ;;  %v965_v53 = vsel %vm393_vm1, %v3999_v40, 0  ;;  %v489_v54 = vld [vmem:[%s4820_s6 + $0x28] sm:$0xf]  ;;  %v490_v55 = vld [vmem:[%s4820_s6 + $0x2c] sm:$0x1]  ;;  %v555_v56 = vshrl.u32 %v487_v45, 16 }
  0x2d   : > { %v525_v57 = vsel %vm4864_vm6, %v520_v46, %v524_v27  ;;  %v547_v58 = vor.u32 %v546_v48, %v543_v47  ;;  %v558_v59 = vshll.u32 %v487_v45, 16  ;;  %v564_v60 = vshll.u32 %v488_v50, 16  ;;  %v728_v61 = vld [vmem:[%s4820_s6] sm:$0xe]  ;;  %v729_v62 = vld [vmem:[%s4820_s6 + $0x4] sm:$0x1] }
  0x2e   : > { %v3966_v63 = vcombine.low %v511_v51, %v525_v57  ;;  %v534_v0 = vrot.slane %v533_v52, 4  ;;  %v557_v1 = vrot.slane %v555_v56, 4  ;;  %v569_v2 = vshrl.u32 %v489_v54, 16  ;;  %v730_v3 = vld [vmem:[%s4820_s6 + $0x8] sm:$0xe] }
  0x2f   : > { %v548_v4 = vrot.slane %v547_v58, 4  ;;  %v560_v5 = vrot.slane %v558_v59, 5  ;;  %v566_v6 = vrot.slane %v564_v60, 5  ;;  %v572_v7 = vshll.u32 %v489_v54, 16  ;;  %v731_v8 = vld [vmem:[%s4820_s6 + $0xc] sm:$0x1] }
  0x30   : > { %4448 = vmatprep.mubr.msk.bf16.mxu1 %vm380_vm2, %v3966_v63  ;;  %v539_v10 = vsel %vm4864_vm6, %v534_v0, %v538_v44  ;;  %v571_v11 = vrot.slane %v569_v2, 4  ;;  %v578_v12 = vshll.u32 %v490_v55, 16  ;;  %v3974_v13 = vrot.slane %v728_v61, 9  ;;  %v491_v14 = vld [vmem:[%s4820_s6 + $0x30] sm:$0xf] }
  0x31   : > { %v553_v15 = vsel %vm4864_vm6, %v548_v4, %v552_v49  ;;  %v561_v16 = vor.u32 %v560_v5, %v557_v1  ;;  %v574_v17 = vrot.slane %v572_v7, 5  ;;  %v765_v18 = vrot.slane %v729_v62, 5  ;;  %v492_v19 = vld [vmem:[%s4820_s6 + $0x34] sm:$0x1]  ;;  %v493_v20 = vld [vmem:[%s4820_s6 + $0x38] sm:$0xf] }
  0x32   : > { %v3967_v21 = vcombine.low %v539_v10, %v553_v15  ;;  %v580_v22 = vrot.slane %v578_v12, 5  ;;  %v3975_v23 = vrot.slane %v730_v3, 9  ;;  %v769_v24 = vrot.slane %v731_v8, 5  ;;  %v494_v25 = vld [vmem:[%s4820_s6 + $0x3c] sm:$0x1] }
  0x33   : > { %v562_v26 = vrot.slane %v561_v16, 4  ;;  %v575_v27 = vor.u32 %v574_v17, %v571_v11  ;;  %v766_v28 = vsel %vm4886_vm7, %v3974_v13, %v765_v18  ;;  %v583_v29 = vshrl.u32 %v491_v14, 16  ;;  %v732_v30 = vld [vmem:[%s4820_s6 + $0x10] sm:$0xe]  ;;  %v733_v31 = vld [vmem:[%s4820_s6 + $0x14] sm:$0x1] }
  0x34   : > { %4449 = vmatmul.mubr.msk.bf16.vlgmr.msra.gmra.mxu1 %vm380_vm2, %v3967_v21  ;;  %v770_v32 = vsel %vm4886_vm7, %v3975_v23, %v769_v24  ;;  %v586_v33 = vshll.u32 %v491_v14, 16  ;;  %v592_v34 = vshll.u32 %v492_v19, 16  ;;  %v597_v36 = vshrl.u32 %v493_v20, 16  ;;  %v734_v37 = vld [vmem:[%s4820_s6 + $0x18] sm:$0xe] }
  0x35   : > { %4467 = vmatpush3.bf16.msra.mxu1 %v965_v53  ;;  %v567_v38 = vsel %vm4864_vm6, %v562_v26, %v566_v6  ;;  %v576_v39 = vrot.slane %v575_v27, 4  ;;  %v3983_v40 = vcombine.low %v766_v28, %v770_v32  ;;  %v585_v41 = vrot.slane %v583_v29, 4  ;;  %v735_v42 = vld [vmem:[%s4820_s6 + $0x1c] sm:$0x1]  ;;  %v736_v43 = vld [vmem:[%s4820_s6 + $0x20] sm:$0xe] }
  0x36   : > { %v588_v44 = vrot.slane %v586_v33, 5  ;;  %v594_v45 = vrot.slane %v592_v34, 5  ;;  %v599_v46 = vrot.slane %v597_v36, 4  ;;  %v600_v47 = vshll.u32 %v493_v20, 16  ;;  %v737_v48 = vld [vmem:[%s4820_s6 + $0x24] sm:$0x1] }
  0x37   : > { %v581_v49 = vsel %vm4864_vm6, %v576_v39, %v580_v22  ;;  %4458 = vmatprep.mubr.msk.bf16.mxu0 %vm380_vm2, %v3983_v40  ;;  %v606_v50 = vshll.u32 %v494_v25, 16  ;;  %v3976_v51 = vrot.slane %v732_v30, 9  ;;  %v773_v52 = vrot.slane %v733_v31, 5  ;;  %v738_v53 = vld [vmem:[%s4820_s6 + $0x28] sm:$0xe] }
  0x38   : > { %v3968_v54 = vcombine.low %v567_v38, %v581_v49  ;;  %v589_v55 = vor.u32 %v588_v44, %v585_v41  ;;  %v602_v56 = vrot.slane %v600_v47, 5  ;;  %v3977_v57 = vrot.slane %v734_v37, 9  ;;  %v739_v58 = vld [vmem:[%s4820_s6 + $0x2c] sm:$0x1]  ;;  %v4024_v5 = vld [vmem:[%s4815_s28 + $0x10] sm:$0x7] }
  0x39   : > { %v608_v59 = vrot.slane %v606_v50, 5  ;;  %v774_v60 = vsel %vm4886_vm7, %v3976_v51, %v773_v52  ;;  %v777_v61 = vrot.slane %v735_v42, 5  ;;  %v3978_v62 = vrot.slane %v736_v43, 9  ;;  %v740_v6 = vld [vmem:[%s4820_s6 + $0x30] sm:$0xe]  ;;  %4620 = vmatprep.subr.msk.bf16.mxu0 %vm393_vm1, %v4024_v5 }
  0x3a   : > { %4452 = vmatprep.mubr.msk.bf16.mxu1 %vm380_vm2, %v3968_v54  ;;  %v590_v63 = vrot.slane %v589_v55, 4  ;;  %v603_v0 = vor.u32 %v602_v56, %v599_v46  ;;  %v781_v1 = vrot.slane %v737_v48, 5  ;;  %v3979_v2 = vrot.slane %v738_v53, 9  ;;  %v4682_v12 = vld [vmem:[%s4820_s6 + $0x8] ss:$8 sps:$4 sm:$0xff]  }
  0x3b   : > { %v778_v3 = vsel %vm4886_vm7, %v3977_v57, %v777_v61  ;;  %v785_v4 = vrot.slane %v739_v58, 5  ;;  %v741_v13 = vld [vmem:[%s4820_s6 + $0x34] sm:$0x1]  ;;  %v742_v14 = vld [vmem:[%s4820_s6 + $0x38] sm:$0xe]  ;;  %v3980_v17 = vrot.slane %v740_v6, 9 }
  0x3c   : > { %v595_v7 = vsel %vm4864_vm6, %v590_v63, %v594_v45  ;;  %v604_v8 = vrot.slane %v603_v0, 4  ;;  %v3984_v10 = vcombine.low %v774_v60, %v778_v3  ;;  %v782_v11 = vsel %vm4886_vm7, %v3978_v62, %v781_v1  ;;  %v743_v16 = vld [vmem:[%s4820_s6 + $0x3c] sm:$0x1]  ;;  %v4008_v27 = vld [vmem:[%s4820_s6 + $0x8] sm:$0xf] }
  0x3d   : > { %v786_v15 = vsel %vm4886_vm7, %v3979_v2, %v785_v4  ;;  %v789_v18 = vrot.slane %v741_v13, 5  ;;  %v3981_v19 = vrot.slane %v742_v14, 9  ;;  %v793_v22 = vrot.slane %v743_v16, 5  ;;  %v4009_v28 = vld [vmem:[%s4820_s6 + $0xc] sm:$0x1] }
  0x3e   : > { %v609_v20 = vsel %vm4864_vm6, %v604_v8, %v608_v59  ;;  %4459 = vmatmul.mubr.msk.bf16.vlgmr.msra.gmra.mxu0 %vm380_vm2, %v3984_v10  ;;  %v3985_v21 = vcombine.low %v782_v11, %v786_v15  ;;  %v1211_v23 = vsel %vm393_vm1, %v4024_v5, 0  ;;  %v4010_v30 = vld [vmem:[%s4820_s6 + $0x10] sm:$0xf]  ;;  %v4011_v31 = vld [vmem:[%s4820_s6 + $0x14] sm:$0x1]  ;;  %v1065_v32 = vshrl.u32 %v4008_v27, 16 }
  0x3f   : > { %v3969_v24 = vcombine.low %v595_v7, %v609_v20  ;;  %v790_v25 = vsel %vm4886_vm7, %v3980_v17, %v789_v18  ;;  %4477 = vmatpush3.bf16.msra.mxu0 %v1211_v23  ;;  %v794_v26 = vsel %vm4886_vm7, %v3981_v19, %v793_v22  ;;  %v1068_v33 = vshll.u32 %v4008_v27, 16  ;;  %v4683_v34 = vld [vmem:[%s4820_s6 + $0x18] ss:$8 sps:$4 sm:$0xff]   ;;  %v4057_v40 = vld [vmem:[%s4815_s28 + $0x14] sm:$0x7] }
  0x40   : > { %4462 = vmatprep.mubr.msk.bf16.mxu0 %vm380_vm2, %v3985_v21  ;;  %v3986_v29 = vcombine.low %v790_v25, %v794_v26  ;;  %v1074_v36 = vshll.u32 %v4009_v28, 16  ;;  %v1079_v37 = vshrl.u32 %v4010_v30, 16  ;;  %v1082_v38 = vshll.u32 %v4010_v30, 16  ;;  %v4684_v41 = vld [vmem:[%s4820_s6 + $0x28] ss:$8 sps:$4 sm:$0xff]   ;;  %4621 = vmatprep.subr.msk.bf16.mxu1 %vm393_vm1, %v4057_v40 }
  0x41   : > { %4453 = vmatmul.mubr.msk.bf16.gmra.mxu1 %vm380_vm2, %v3969_v24  ;;  %v1088_v39 = vshll.u32 %v4011_v31, 16  ;;  %v1067_v42 = vrot.slane %v1065_v32, 4  ;;  %v1070_v43 = vrot.slane %v1068_v33, 5  ;;  %v4012_v44 = vld [vmem:[%s4820_s6 + $0x18] sm:$0xf]  ;;  %v1393_v10 = vsel %vm393_vm1, %v4057_v40, 0 }
  0x42   : > { %4468 = vmatprep.mubr.msk.bf16.mxu1 %vm380_vm2, %v4682_v12  ;;  %v4013_v45 = vld [vmem:[%s4820_s6 + $0x1c] sm:$0x1]  ;;  %v1076_v46 = vrot.slane %v1074_v36, 5  ;;  %v1081_v47 = vrot.slane %v1079_v37, 4  ;;  %v1084_v48 = vrot.slane %v1082_v38, 5  ;;  %v1093_v53 = vshrl.u32 %v4012_v44, 16 }
  0x43   : > { %v1090_v49 = vrot.slane %v1088_v39, 5  ;;  %v4014_v50 = vld [vmem:[%s4820_s6 + $0x20] sm:$0xf]  ;;  %v1071_v51 = vor.u32 %v1070_v43, %v1067_v42  ;;  %v4015_v52 = vld [vmem:[%s4820_s6 + $0x24] sm:$0x1]  ;;  %v1096_v54 = vshll.u32 %v4012_v44, 16 }
  0x44   : > { %v1102_v55 = vshll.u32 %v4013_v45, 16  ;;  %v1085_v56 = vor.u32 %v1084_v48, %v1081_v47  ;;  %v1107_v57 = vshrl.u32 %v4014_v50, 16  ;;  %v1110_v58 = vshll.u32 %v4014_v50, 16  ;;  %v4016_v60 = vld [vmem:[%s4820_s6 + $0x28] sm:$0xf] }
  0x45   : > { %v1116_v59 = vshll.u32 %v4015_v52, 16  ;;  %v1072_v61 = vrot.slane %v1071_v51, 4  ;;  %v1095_v62 = vrot.slane %v1093_v53, 4  ;;  %v1098_v63 = vrot.slane %v1096_v54, 5  ;;  %v4017_v1 = vld [vmem:[%s4820_s6 + $0x2c] sm:$0x1] }
  0x46   : > { %4463 = vmatmul.mubr.msk.bf16.gmra.mxu0 %vm380_vm2, %v3986_v29  ;;  %v1104_v0 = vrot.slane %v1102_v55, 5  ;;  %v1086_v2 = vrot.slane %v1085_v56, 4  ;;  %v1109_v3 = vrot.slane %v1107_v57, 4  ;;  %v1112_v4 = vrot.slane %v1110_v58, 5  ;;  %v4018_v6 = vld [vmem:[%s4820_s6 + $0x30] sm:$0xf] }
  0x47   : > { %v1118_v5 = vrot.slane %v1116_v59, 5  ;;  %v1077_v7 = vsel %vm4864_vm6, %v1072_v61, %v1076_v46  ;;  %v1099_v8 = vor.u32 %v1098_v63, %v1095_v62  ;;  %v4019_v11 = vld [vmem:[%s4820_s6 + $0x34] sm:$0x1]  ;;  %v1121_v12 = vshrl.u32 %v4016_v60, 16  ;;  %v4685_v13 = vld [vmem:[%s4820_s6 + $0x38] ss:$8 sps:$4 sm:$0xff]  }
  0x48   : > { %v1091_v14 = vsel %vm4864_vm6, %v1086_v2, %v1090_v49  ;;  %v1113_v15 = vor.u32 %v1112_v4, %v1109_v3  ;;  %v1124_v16 = vshll.u32 %v4016_v60, 16  ;;  %v1130_v17 = vshll.u32 %v4017_v1, 16  ;;  %v4020_v18 = vld [vmem:[%s4820_s6 + $0x38] sm:$0xf]  ;;  %v4021_v19 = vld [vmem:[%s4820_s6 + $0x3c] sm:$0x1] }
  0x49   : > { %4469 = vmatmul.mubr.msk.bf16.vlgmr.msra.gmra.mxu1 %vm380_vm2, %v4683_v34  ;;  %v4025_v20 = vcombine.low %v1077_v7, %v1091_v14  ;;  %v1100_v21 = vrot.slane %v1099_v8, 4  ;;  %v1123_v22 = vrot.slane %v1121_v12, 4  ;;  %v1135_v23 = vshrl.u32 %v4018_v6, 16  ;;  %v4022_v24 = vld [vmem:[%s4820_s6 + $0x40] sm:$0xf] }
  0x4a   : > { %4472 = vmatprep.mubr.msk.bf16.mxu1 %vm380_vm2, %v4684_v41  ;;  %4487 = vmatpush3.bf16.msra.mxu1 %v1393_v10  ;;  %v1114_v25 = vrot.slane %v1113_v15, 4  ;;  %v1126_v26 = vrot.slane %v1124_v16, 5  ;;  %v1132_v27 = vrot.slane %v1130_v17, 5  ;;  %v1138_v28 = vshll.u32 %v4018_v6, 16  ;;  %v4023_v29 = vld [vmem:[%s4820_s6 + $0x44] sm:$0x1] }
  0x4b   : > { %4478 = vmatprep.mubr.msk.bf16.mxu0 %vm380_vm2, %v4025_v20  ;;  %v1105_v30 = vsel %vm4864_vm6, %v1100_v21, %v1104_v0  ;;  %v1137_v31 = vrot.slane %v1135_v23, 4  ;;  %v1144_v32 = vshll.u32 %v4019_v11, 16  ;;  %v1149_v33 = vshrl.u32 %v4020_v18, 16  ;;  %v4033_v34 = vld [vmem:[%s4820_s6 + $0x8] sm:$0xe] }
  0x4c   : > { %v1119_v36 = vsel %vm4864_vm6, %v1114_v25, %v1118_v5  ;;  %v1127_v37 = vor.u32 %v1126_v26, %v1123_v22  ;;  %v1140_v38 = vrot.slane %v1138_v28, 5  ;;  %v1152_v39 = vshll.u32 %v4020_v18, 16  ;;  %v4034_v40 = vld [vmem:[%s4820_s6 + $0xc] sm:$0x1]  ;;  %v4035_v41 = vld [vmem:[%s4820_s6 + $0x10] sm:$0xe] }
  0x4d   : > { %v4026_v42 = vcombine.low %v1105_v30, %v1119_v36  ;;  %v1146_v43 = vrot.slane %v1144_v32, 5  ;;  %v1151_v44 = vrot.slane %v1149_v33, 4  ;;  %v1158_v45 = vshll.u32 %v4021_v19, 16  ;;  %v4036_v46 = vld [vmem:[%s4820_s6 + $0x14] sm:$0x1] }
  0x4e   : > { %v4074_v47 = vld [vmem:[%s4815_s28 + $0x18] sm:$0x7]  ;;  %v1128_v48 = vrot.slane %v1127_v37, 4  ;;  %v1141_v49 = vor.u32 %v1140_v38, %v1137_v31  ;;  %v1154_v50 = vrot.slane %v1152_v39, 5  ;;  %v1163_v51 = vshrl.u32 %v4022_v24, 16 }
  0x4f   : > { %4622 = vmatprep.subr.msk.bf16.mxu0 %vm393_vm1, %v4074_v47  ;;  %v4037_v52 = vld [vmem:[%s4820_s6 + $0x18] sm:$0xe]  ;;  %4479 = vmatmul.mubr.msk.bf16.vlgmr.msra.gmra.mxu0 %vm380_vm2, %v4026_v42  ;;  %v1160_v53 = vrot.slane %v1158_v45, 5  ;;  %v1166_v54 = vshll.u32 %v4022_v24, 16  ;;  %v1172_v55 = vshll.u32 %v4023_v29, 16  ;;  %v4049_v56 = vrot.slane %v4033_v34, 9 }
  0x50   : > { %v4038_v57 = vld [vmem:[%s4820_s6 + $0x1c] sm:$0x1]  ;;  %v1133_v58 = vsel %vm4864_vm6, %v1128_v48, %v1132_v27  ;;  %v1142_v59 = vrot.slane %v1141_v49, 4  ;;  %v1155_v60 = vor.u32 %v1154_v50, %v1151_v44  ;;  %v1165_v61 = vrot.slane %v1163_v51, 4  ;;  %v4039_v62 = vld [vmem:[%s4820_s6 + $0x20] sm:$0xe] }
  0x51   : > { %4473 = vmatmul.mubr.msk.bf16.gmra.mxu1 %vm380_vm2, %v4685_v13  ;;  %v4040_v63 = vld [vmem:[%s4820_s6 + $0x24] sm:$0x1]  ;;  %v1168_v0 = vrot.slane %v1166_v54, 5  ;;  %v1174_v1 = vrot.slane %v1172_v55, 5  ;;  %v1328_v2 = vrot.slane %v4034_v40, 5  ;;  %v4050_v3 = vrot.slane %v4035_v41, 9 }
  0x52   : > { %v4041_v4 = vld [vmem:[%s4820_s6 + $0x28] sm:$0xe]  ;;  %v1147_v5 = vsel %vm4864_vm6, %v1142_v59, %v1146_v43  ;;  %v1156_v6 = vrot.slane %v1155_v60, 4  ;;  %v1332_v7 = vrot.slane %v4036_v46, 5  ;;  %v4051_v8 = vrot.slane %v4037_v52, 9 }
  0x53   : > { %v4042_v10 = vld [vmem:[%s4820_s6 + $0x2c] sm:$0x1]  ;;  %v4027_v11 = vcombine.low %v1133_v58, %v1147_v5  ;;  %v1169_v12 = vor.u32 %v1168_v0, %v1165_v61  ;;  %v1329_v13 = vsel %vm4886_vm7, %v4049_v56, %v1328_v2  ;;  %v1336_v14 = vrot.slane %v4038_v57, 5  ;;  %v4043_v15 = vld [vmem:[%s4820_s6 + $0x30] sm:$0xe] }
  0x54   : > { %v4044_v16 = vld [vmem:[%s4820_s6 + $0x34] sm:$0x1]  ;;  %v1161_v17 = vsel %vm4864_vm6, %v1156_v6, %v1160_v53  ;;  %v1333_v18 = vsel %vm4886_vm7, %v4050_v3, %v1332_v7  ;;  %v4052_v19 = vrot.slane %v4039_v62, 9  ;;  %v1340_v20 = vrot.slane %v4040_v63, 5  ;;  %v4045_v21 = vld [vmem:[%s4820_s6 + $0x38] sm:$0xe] }
  0x55   : > { %v4046_v22 = vld [vmem:[%s4820_s6 + $0x3c] sm:$0x1]  ;;  %4482 = vmatprep.mubr.msk.bf16.mxu0 %vm380_vm2, %v4027_v11  ;;  %v1170_v23 = vrot.slane %v1169_v12, 4  ;;  %v4058_v24 = vcombine.low %v1329_v13, %v1333_v18  ;;  %v1337_v25 = vsel %vm4886_vm7, %v4051_v8, %v1336_v14  ;;  %v1528_v26 = vsel %vm393_vm1, %v4074_v47, 0  ;;  %v4047_v27 = vld [vmem:[%s4820_s6 + $0x40] sm:$0xe] }
  0x56   : > { %v4048_v28 = vld [vmem:[%s4820_s6 + $0x44] sm:$0x1]  ;;  %v1341_v29 = vsel %vm4886_vm7, %v4052_v19, %v1340_v20  ;;  %4497 = vmatpush3.bf16.msra.mxu0 %v1528_v26  ;;  %v4053_v30 = vrot.slane %v4041_v4, 9  ;;  %v1344_v31 = vrot.slane %v4042_v10, 5  ;;  %v4054_v32 = vrot.slane %v4043_v15, 9 }
  0x57   : > { %v1175_v33 = vsel %vm4864_vm6, %v1170_v23, %v1174_v1  ;;  %4488 = vmatprep.mubr.msk.bf16.mxu1 %vm380_vm2, %v4058_v24  ;;  %v4059_v34 = vcombine.low %v1337_v25, %v1341_v29  ;;  %v1348_v36 = vrot.slane %v4044_v16, 5  ;;  %v4055_v37 = vrot.slane %v4045_v21, 9  ;;  %v4686_v38 = vld [vmem:[%s4820_s6 + $0x10] ss:$8 sps:$4 sm:$0xff]   ;;  %v4099_v43 = vld [vmem:[%s4815_s28 + $0x1c] sm:$0x7] }
  0x58   : > { %v4028_v39 = vcombine.low %v1161_v17, %v1175_v33  ;;  %v1345_v40 = vsel %vm4886_vm7, %v4053_v30, %v1344_v31  ;;  %v1352_v41 = vrot.slane %v4046_v22, 5  ;;  %v4056_v42 = vrot.slane %v4047_v27, 9  ;;  %4623 = vmatprep.subr.msk.bf16.mxu1 %vm393_vm1, %v4099_v43  ;;  %v4687_v51 = vld [vmem:[%s4820_s6 + $0x20] ss:$8 sps:$4 sm:$0xff]   ;;  %v4083_v52 = vld [vmem:[%s4820_s6 + $0x10] sm:$0xf] }
  0x59   : > { %4489 = vmatmul.mubr.msk.bf16.vlgmr.msra.gmra.mxu1 %vm380_vm2, %v4059_v34  ;;  %v1349_v44 = vsel %vm4886_vm7, %v4054_v32, %v1348_v36  ;;  %v1356_v45 = vrot.slane %v4048_v28, 5  ;;  %v1774_v46 = vsel %vm393_vm1, %v4099_v43, 0  ;;  %v4084_v53 = vld [vmem:[%s4820_s6 + $0x14] sm:$0x1]  ;;  %v4085_v54 = vld [vmem:[%s4820_s6 + $0x18] sm:$0xf] }
  0x5a   : > { %4483 = vmatmul.mubr.msk.bf16.gmra.mxu0 %vm380_vm2, %v4028_v39  ;;  %v4060_v47 = vcombine.low %v1345_v40, %v1349_v44  ;;  %v1353_v48 = vsel %vm4886_vm7, %v4055_v37, %v1352_v41  ;;  %4507 = vmatpush3.bf16.msra.mxu1 %v1774_v46  ;;  %v4688_v55 = vld [vmem:[%s4820_s6 + $0x30] ss:$8 sps:$4 sm:$0xff]   ;;  %v4086_v56 = vld [vmem:[%s4820_s6 + $0x1c] sm:$0x1]  ;;  %v1628_v57 = vshrl.u32 %v4083_v52, 16  ;;  %v1631_v58 = vshll.u32 %v4083_v52, 16 }
  0x5b   : > { %v1357_v49 = vsel %vm4886_vm7, %v4056_v42, %v1356_v45  ;;  %4498 = vmatprep.mubr.msk.bf16.mxu0 %vm380_vm2, %v4686_v38  ;;  %v1637_v59 = vshll.u32 %v4084_v53, 16  ;;  %v1642_v60 = vshrl.u32 %v4085_v54, 16  ;;  %v1645_v61 = vshll.u32 %v4085_v54, 16  ;;  %v4132_v63 = vld [vmem:[%s4815_s28 + $0x20] sm:$0x7] }
  0x5c   : > { %4492 = vmatprep.mubr.msk.bf16.mxu1 %vm380_vm2, %v4060_v47  ;;  %v4061_v50 = vcombine.low %v1353_v48, %v1357_v49  ;;  %v1651_v62 = vshll.u32 %v4086_v56, 16  ;;  %v4087_v0 = vld [vmem:[%s4820_s6 + $0x20] sm:$0xf]  ;;  %v1630_v1 = vrot.slane %v1628_v57, 4  ;;  %v1633_v2 = vrot.slane %v1631_v58, 5  ;;  %4624 = vmatprep.subr.msk.bf16.mxu0 %vm393_vm1, %v4132_v63 }
  0x5d   : > { %v1639_v3 = vrot.slane %v1637_v59, 5  ;;  %v1644_v4 = vrot.slane %v1642_v60, 4  ;;  %v4088_v5 = vld [vmem:[%s4820_s6 + $0x24] sm:$0x1]  ;;  %v1647_v6 = vrot.slane %v1645_v61, 5  ;;  %v1656_v12 = vshrl.u32 %v4087_v0, 16 }
  0x5e   : > { %v1653_v7 = vrot.slane %v1651_v62, 5  ;;  %v4089_v8 = vld [vmem:[%s4820_s6 + $0x28] sm:$0xf]  ;;  %v4090_v10 = vld [vmem:[%s4820_s6 + $0x2c] sm:$0x1]  ;;  %v1634_v11 = vor.u32 %v1633_v2, %v1630_v1  ;;  %v1659_v13 = vshll.u32 %v4087_v0, 16 }
  0x5f   : > { %v1665_v14 = vshll.u32 %v4088_v5, 16  ;;  %v1648_v15 = vor.u32 %v1647_v6, %v1644_v4  ;;  %v1670_v16 = vshrl.u32 %v4089_v8, 16  ;;  %v1673_v17 = vshll.u32 %v4089_v8, 16  ;;  %v4091_v19 = vld [vmem:[%s4820_s6 + $0x30] sm:$0xf] }
  0x60   : > { %v1679_v18 = vshll.u32 %v4090_v10, 16  ;;  %v1635_v20 = vrot.slane %v1634_v11, 4  ;;  %v1658_v21 = vrot.slane %v1656_v12, 4  ;;  %v1661_v22 = vrot.slane %v1659_v13, 5  ;;  %v4092_v24 = vld [vmem:[%s4820_s6 + $0x34] sm:$0x1] }
  0x61   : > { %4493 = vmatmul.mubr.msk.bf16.gmra.mxu1 %vm380_vm2, %v4061_v50  ;;  %v1667_v23 = vrot.slane %v1665_v14, 5  ;;  %v1649_v25 = vrot.slane %v1648_v15, 4  ;;  %v1672_v26 = vrot.slane %v1670_v16, 4  ;;  %v1675_v27 = vrot.slane %v1673_v17, 5  ;;  %v4093_v29 = vld [vmem:[%s4820_s6 + $0x38] sm:$0xf] }
  0x62   : > { %4499 = vmatmul.mubr.msk.bf16.vlgmr.msra.gmra.mxu0 %vm380_vm2, %v4687_v51  ;;  %v1681_v28 = vrot.slane %v1679_v18, 5  ;;  %v4689_v30 = vld [vmem:[%s4820_s6 + $0x40] ss:$8 sps:$4 sm:$0xff]   ;;  %v1640_v31 = vsel %vm4864_vm6, %v1635_v20, %v1639_v3  ;;  %v1662_v32 = vor.u32 %v1661_v22, %v1658_v21  ;;  %v1956_v33 = vsel %vm393_vm1, %v4132_v63, 0  ;;  %v4094_v34 = vld [vmem:[%s4820_s6 + $0x3c] sm:$0x1] }
  0x63   : > { %4502 = vmatprep.mubr.msk.bf16.mxu0 %vm380_vm2, %v4688_v55  ;;  %v1684_v36 = vshrl.u32 %v4091_v19, 16  ;;  %v1654_v37 = vsel %vm4864_vm6, %v1649_v25, %v1653_v7  ;;  %v1676_v38 = vor.u32 %v1675_v27, %v1672_v26  ;;  %4517 = vmatpush3.bf16.msra.mxu0 %v1956_v33  ;;  %v1687_v39 = vshll.u32 %v4091_v19, 16  ;;  %v4095_v41 = vld [vmem:[%s4820_s6 + $0x40] sm:$0xf]  ;;  %v4096_v42 = vld [vmem:[%s4820_s6 + $0x44] sm:$0x1] }
  0x64   : > { %v1693_v40 = vshll.u32 %v4092_v24, 16  ;;  %v4100_v43 = vcombine.low %v1640_v31, %v1654_v37  ;;  %v1663_v44 = vrot.slane %v1662_v32, 4  ;;  %v1698_v46 = vshrl.u32 %v4093_v29, 16  ;;  %v4097_v47 = vld [vmem:[%s4820_s6 + $0x48] sm:$0xf] }
  0x65   : > { %v1686_v45 = vrot.slane %v1684_v36, 4  ;;  %v1677_v48 = vrot.slane %v1676_v38, 4  ;;  %v1689_v49 = vrot.slane %v1687_v39, 5  ;;  %v1701_v51 = vshll.u32 %v4093_v29, 16  ;;  %v4098_v52 = vld [vmem:[%s4820_s6 + $0x4c] sm:$0x1] }
  0x66   : > { %v1695_v50 = vrot.slane %v1693_v40, 5  ;;  %4508 = vmatprep.mubr.msk.bf16.mxu1 %vm380_vm2, %v4100_v43  ;;  %v1668_v53 = vsel %vm4864_vm6, %v1663_v44, %v1667_v23  ;;  %v1700_v54 = vrot.slane %v1698_v46, 4  ;;  %v1707_v55 = vshll.u32 %v4094_v34, 16  ;;  %v4108_v57 = vld [vmem:[%s4820_s6 + $0x10] sm:$0xe] }
  0x67   : > { %v1712_v56 = vshrl.u32 %v4095_v41, 16  ;;  %v1682_v58 = vsel %vm4864_vm6, %v1677_v48, %v1681_v28  ;;  %v1690_v59 = vor.u32 %v1689_v49, %v1686_v45  ;;  %v1703_v60 = vrot.slane %v1701_v51, 5  ;;  %v4109_v62 = vld [vmem:[%s4820_s6 + $0x14] sm:$0x1]  ;;  %v4110_v63 = vld [vmem:[%s4820_s6 + $0x18] sm:$0xe] }
  0x68   : > { %v1715_v61 = vshll.u32 %v4095_v41, 16  ;;  %v4101_v0 = vcombine.low %v1668_v53, %v1682_v58  ;;  %v1709_v1 = vrot.slane %v1707_v55, 5  ;;  %v1721_v3 = vshll.u32 %v4096_v42, 16  ;;  %v4111_v4 = vld [vmem:[%s4820_s6 + $0x1c] sm:$0x1] }
  0x69   : > { %v1714_v2 = vrot.slane %v1712_v56, 4  ;;  %v1691_v5 = vrot.slane %v1690_v59, 4  ;;  %v1704_v6 = vor.u32 %v1703_v60, %v1700_v54  ;;  %v1726_v8 = vshrl.u32 %v4097_v47, 16  ;;  %v4690_v10 = vld [vmem:[%s4830_s12] sm:$0x1f]  }
  0x6a   : > { %4503 = vmatmul.mubr.msk.bf16.gmra.mxu0 %vm380_vm2, %v4689_v30  ;;  %v1717_v7 = vrot.slane %v1715_v61, 5  ;;  %4509 = vmatmul.mubr.msk.bf16.vlgmr.msra.gmra.mxu1 %vm380_vm2, %v4101_v0  ;;  %v1723_v11 = vrot.slane %v1721_v3, 5  ;;  %v1729_v12 = vshll.u32 %v4097_v47, 16  ;;  %v1735_v13 = vshll.u32 %v4098_v52, 16  ;;  %v4112_v15 = vld [vmem:[%s4820_s6 + $0x20] sm:$0xe] }
  0x6b   : > { %v4124_v14 = vrot.slane %v4108_v57, 9  ;;  %v1696_v16 = vsel %vm4864_vm6, %v1691_v5, %v1695_v50  ;;  %v1705_v17 = vrot.slane %v1704_v6, 4  ;;  %v1728_v19 = vrot.slane %v1726_v8, 4  ;;  %4625 = vmatprep.subr.msk.bf16.mxu1 %vm2095_vm8, %v4690_v10  ;;  %v4113_v20 = vld [vmem:[%s4820_s6 + $0x24] sm:$0x1] }
  0x6c   : > { %v1718_v18 = vor.u32 %v1717_v7, %v1714_v2  ;;  %v4114_v21 = vld [vmem:[%s4820_s6 + $0x28] sm:$0xe]  ;;  %v1731_v22 = vrot.slane %v1729_v12, 5  ;;  %v1737_v23 = vrot.slane %v1735_v13, 5  ;;  %v1891_v24 = vrot.slane %v4109_v62, 5 }
  0x6d   : > { %v4125_v25 = vrot.slane %v4110_v63, 9  ;;  %v4115_v26 = vld [vmem:[%s4820_s6 + $0x2c] sm:$0x1]  ;;  %v1710_v27 = vsel %vm4864_vm6, %v1705_v17, %v1709_v1  ;;  %v1895_v29 = vrot.slane %v4111_v4, 5  ;;  %v4126_v30 = vrot.slane %v4112_v15, 9 }
  0x6e   : > { %v1719_v28 = vrot.slane %v1718_v18, 4  ;;  %v4116_v31 = vld [vmem:[%s4820_s6 + $0x30] sm:$0xe]  ;;  %v4102_v32 = vcombine.low %v1696_v16, %v1710_v27  ;;  %v1732_v33 = vor.u32 %v1731_v22, %v1728_v19  ;;  %v1892_v34 = vsel %vm4886_vm7, %v4124_v14, %v1891_v24  ;;  %v4117_v37 = vld [vmem:[%s4820_s6 + $0x34] sm:$0x1] }
  0x6f   : > { %v1899_v36 = vrot.slane %v4113_v20, 5  ;;  %v4118_v38 = vld [vmem:[%s4820_s6 + $0x38] sm:$0xe]  ;;  %v1896_v40 = vsel %vm4886_vm7, %v4125_v25, %v1895_v29  ;;  %v4127_v41 = vrot.slane %v4114_v21, 9  ;;  %v1903_v42 = vrot.slane %v4115_v26, 5 }
  0x70   : > { %v1724_v39 = vsel %vm4864_vm6, %v1719_v28, %v1723_v11  ;;  %v4119_v43 = vld [vmem:[%s4820_s6 + $0x3c] sm:$0x1]  ;;  %v4120_v44 = vld [vmem:[%s4820_s6 + $0x40] sm:$0xe]  ;;  %4512 = vmatprep.mubr.msk.bf16.mxu1 %vm380_vm2, %v4102_v32  ;;  %v1733_v45 = vrot.slane %v1732_v33, 4  ;;  %v4133_v46 = vcombine.low %v1892_v34, %v1896_v40  ;;  %v2097_v48 = vsel %vm2095_vm8, %v4690_v10, 0 }
  0x71   : > { %v1900_v47 = vsel %vm4886_vm7, %v4126_v30, %v1899_v36  ;;  %v4121_v49 = vld [vmem:[%s4820_s6 + $0x44] sm:$0x1]  ;;  %v4122_v50 = vld [vmem:[%s4820_s6 + $0x48] sm:$0xe]  ;;  %v1904_v51 = vsel %vm4886_vm7, %v4127_v41, %v1903_v42  ;;  %4527 = vmatpush3.bf16.msra.mxu1 %v2097_v48  ;;  %v4128_v52 = vrot.slane %v4116_v31, 9  ;;  %v1907_v53 = vrot.slane %v4117_v37, 5 }
  0x72   : > { %v4129_v54 = vrot.slane %v4118_v38, 9  ;;  %v4123_v55 = vld [vmem:[%s4820_s6 + $0x4c] sm:$0x1]  ;;  %v1738_v56 = vsel %vm4864_vm6, %v1733_v45, %v1737_v23  ;;  %4518 = vmatprep.mubr.msk.bf16.mxu0 %vm380_vm2, %v4133_v46  ;;  %v4134_v57 = vcombine.low %v1900_v47, %v1904_v51  ;;  %v1911_v58 = vrot.slane %v4119_v43, 5  ;;  %v4691_v0 = vld [vmem:[%s4825_s9] ss:$8 sps:$4 sm:$0xff]  }
  0x73   : > { %v4130_v59 = vrot.slane %v4120_v44, 9  ;;  %v4103_v60 = vcombine.low %v1724_v39, %v1738_v56  ;;  %v1908_v61 = vsel %vm4886_vm7, %v4128_v52, %v1907_v53  ;;  %v1915_v62 = vrot.slane %v4121_v49, 5  ;;  %v4692_v3 = vld [vmem:[%s4830_s12 + $0x8] sm:$0x1f]   ;;  %v4693_v8 = vld [vmem:[%s4825_s9 + $0x10] ss:$8 sps:$4 sm:$0xff]  }
  0x74   : > { %v4131_v63 = vrot.slane %v4122_v50, 9  ;;  %4519 = vmatmul.mubr.msk.bf16.vlgmr.msra.gmra.mxu0 %vm380_vm2, %v4134_v57  ;;  %v1912_v1 = vsel %vm4886_vm7, %v4129_v54, %v1911_v58  ;;  %v1919_v2 = vrot.slane %v4123_v55, 5  ;;  %4626 = vmatprep.subr.msk.bf16.mxu0 %vm2095_vm8, %v4692_v3  ;;  %v2349_v7 = vsel %vm2095_vm8, %v4692_v3, 0  ;;  %v4694_v11 = vld [vmem:[%s4825_s9 + $0x20] ss:$8 sps:$4 sm:$0xff]  }
  0x75   : > { %4513 = vmatmul.mubr.msk.bf16.gmra.mxu1 %vm380_vm2, %v4103_v60  ;;  %v4135_v4 = vcombine.low %v1908_v61, %v1912_v1  ;;  %v1916_v5 = vsel %vm4886_vm7, %v4130_v59, %v1915_v62  ;;  %4537 = vmatpush3.bf16.msra.mxu0 %v2349_v7  ;;  %v2180_v12 = vld [vmem:[%s4825_s9] sm:$0xf]  ;;  %v2181_v13 = vld [vmem:[%s4825_s9 + $0x4] sm:$0x1]  ;;  %v2182_v14 = vld [vmem:[%s4825_s9 + $0x8] sm:$0xf] }
  0x76   : > { %v1920_v6 = vsel %vm4886_vm7, %v4131_v63, %v1919_v2  ;;  %4528 = vmatprep.mubr.msk.bf16.mxu1 %vm2082_vm9, %v4691_v0  ;;  %v2183_v15 = vld [vmem:[%s4825_s9 + $0xc] sm:$0x1]  ;;  %v2197_v16 = vshrl.u32 %v2180_v12, 16  ;;  %v2200_v17 = vshll.u32 %v2180_v12, 16  ;;  %v2206_v18 = vshll.u32 %v2181_v13, 16 }
  0x77   : > { %4522 = vmatprep.mubr.msk.bf16.mxu0 %vm380_vm2, %v4135_v4  ;;  %v4136_v10 = vcombine.low %v1916_v5, %v1920_v6  ;;  %v2211_v19 = vshrl.u32 %v2182_v14, 16  ;;  %v2214_v20 = vshll.u32 %v2182_v14, 16  ;;  %v2220_v21 = vshll.u32 %v2183_v15, 16  ;;  %v4696_v24 = vld [vmem:[%s4830_s12 + $0x10] sm:$0x1f]  }
  0x78   : > { %v2199_v22 = vrot.slane %v2197_v16, 4  ;;  %v2202_v23 = vrot.slane %v2200_v17, 5  ;;  %v2208_v25 = vrot.slane %v2206_v18, 5  ;;  %v2184_v29 = vld [vmem:[%s4825_s9 + $0x10] sm:$0xf]  ;;  %4627 = vmatprep.subr.msk.bf16.mxu1 %vm2095_vm8, %v4696_v24  ;;  %v2537_v57 = vsel %vm2095_vm8, %v4696_v24, 0 }
  0x79   : > { %v2213_v26 = vrot.slane %v2211_v19, 4  ;;  %v2216_v27 = vrot.slane %v2214_v20, 5  ;;  %v2222_v28 = vrot.slane %v2220_v21, 5  ;;  %v2185_v31 = vld [vmem:[%s4825_s9 + $0x14] sm:$0x1]  ;;  %v2225_v36 = vshrl.u32 %v2184_v29, 16 }
  0x7a   : > { %v2203_v30 = vor.u32 %v2202_v23, %v2199_v22  ;;  %v2186_v32 = vld [vmem:[%s4825_s9 + $0x18] sm:$0xf]  ;;  %v2187_v33 = vld [vmem:[%s4825_s9 + $0x1c] sm:$0x1]  ;;  %v2228_v37 = vshll.u32 %v2184_v29, 16  ;;  %v2234_v38 = vshll.u32 %v2185_v31, 16 }
  0x7b   : > { %v2217_v34 = vor.u32 %v2216_v27, %v2213_v26  ;;  %v4695_v39 = vld [vmem:[%s4825_s9 + $0x30] ss:$8 sps:$4 sm:$0xff]   ;;  %v2239_v41 = vshrl.u32 %v2186_v32, 16  ;;  %v2242_v42 = vshll.u32 %v2186_v32, 16  ;;  %v2248_v43 = vshll.u32 %v2187_v33, 16 }
  0x7c   : > { %4523 = vmatmul.mubr.msk.bf16.gmra.mxu0 %vm380_vm2, %v4136_v10  ;;  %v2204_v40 = vrot.slane %v2203_v30, 4  ;;  %v2188_v44 = vld [vmem:[%s4825_s9 + $0x20] sm:$0xf]  ;;  %v2227_v46 = vrot.slane %v2225_v36, 4  ;;  %v2230_v47 = vrot.slane %v2228_v37, 5  ;;  %v2236_v48 = vrot.slane %v2234_v38, 5 }
  0x7d   : > { %4529 = vmatmul.mubr.msk.bf16.vlgmr.msra.gmra.mxu1 %vm2082_vm9, %v4693_v8  ;;  %v2218_v45 = vrot.slane %v2217_v34, 4  ;;  %v2189_v49 = vld [vmem:[%s4825_s9 + $0x24] sm:$0x1]  ;;  %v2241_v51 = vrot.slane %v2239_v41, 4  ;;  %v2244_v52 = vrot.slane %v2242_v42, 5  ;;  %v2250_v53 = vrot.slane %v2248_v43, 5 }
  0x7e   : > { %4532 = vmatprep.mubr.msk.bf16.mxu1 %vm2082_vm9, %v4694_v11  ;;  %v2209_v50 = vsel %vm4864_vm6, %v2204_v40, %v2208_v25  ;;  %v2190_v54 = vld [vmem:[%s4825_s9 + $0x28] sm:$0xf]  ;;  %v2231_v56 = vor.u32 %v2230_v47, %v2227_v46  ;;  %v2191_v58 = vld [vmem:[%s4825_s9 + $0x2c] sm:$0x1]  ;;  %v2253_v59 = vshrl.u32 %v2188_v44, 16  ;;  %4547 = vmatpush3.bf16.msra.mxu1 %v2537_v57  ;;  %v2256_v62 = vshll.u32 %v2188_v44, 16 }
  0x7f   : > { %v2223_v55 = vsel %vm4864_vm6, %v2218_v45, %v2222_v28  ;;  %v2245_v61 = vor.u32 %v2244_v52, %v2241_v51  ;;  %v2262_v63 = vshll.u32 %v2189_v49, 16  ;;  %v2192_v0 = vld [vmem:[%s4825_s9 + $0x30] sm:$0xf]  ;;  %v2193_v1 = vld [vmem:[%s4825_s9 + $0x34] sm:$0x1]  ;;  %v2267_v4 = vshrl.u32 %v2190_v54, 16 }
  0x80   : > { %v4152_v60 = vcombine.low %v2209_v50, %v2223_v55  ;;  %v2232_v2 = vrot.slane %v2231_v56, 4  ;;  %v2255_v3 = vrot.slane %v2253_v59, 4  ;;  %v2270_v5 = vshll.u32 %v2190_v54, 16  ;;  %v2194_v6 = vld [vmem:[%s4825_s9 + $0x38] sm:$0xf] }
  0x81   : > { %v2246_v7 = vrot.slane %v2245_v61, 4  ;;  %v2258_v8 = vrot.slane %v2256_v62, 5  ;;  %v2264_v10 = vrot.slane %v2262_v63, 5  ;;  %v2276_v11 = vshll.u32 %v2191_v58, 16  ;;  %v2195_v12 = vld [vmem:[%s4825_s9 + $0x3c] sm:$0x1] }
  0x82   : > { %4538 = vmatprep.mubr.msk.bf16.mxu0 %vm2082_vm9, %v4152_v60  ;;  %v2237_v13 = vsel %vm4864_vm6, %v2232_v2, %v2236_v48  ;;  %v2269_v14 = vrot.slane %v2267_v4, 4  ;;  %v2272_v15 = vrot.slane %v2270_v5, 5  ;;  %v2281_v16 = vshrl.u32 %v2192_v0, 16  ;;  %v2432_v17 = vld [vmem:[%s4825_s9] sm:$0xe] }
  0x83   : > { %v2251_v18 = vsel %vm4864_vm6, %v2246_v7, %v2250_v53  ;;  %v2259_v19 = vor.u32 %v2258_v8, %v2255_v3  ;;  %v2278_v20 = vrot.slane %v2276_v11, 5  ;;  %v2284_v21 = vshll.u32 %v2192_v0, 16  ;;  %v2433_v22 = vld [vmem:[%s4825_s9 + $0x4] sm:$0x1]  ;;  %v2434_v23 = vld [vmem:[%s4825_s9 + $0x8] sm:$0xe] }
  0x84   : > { %v4153_v24 = vcombine.low %v2237_v13, %v2251_v18  ;;  %v2273_v25 = vor.u32 %v2272_v15, %v2269_v14  ;;  %v2283_v26 = vrot.slane %v2281_v16, 4  ;;  %v2290_v27 = vshll.u32 %v2193_v1, 16  ;;  %v2435_v28 = vld [vmem:[%s4825_s9 + $0xc] sm:$0x1]  ;;  %v4697_v29 = vld [vmem:[%s4830_s12 + $0x18] sm:$0x1f]  }
  0x85   : > { %4533 = vmatmul.mubr.msk.bf16.gmra.mxu1 %vm2082_vm9, %v4695_v39  ;;  %v2260_v30 = vrot.slane %v2259_v19, 4  ;;  %v2286_v31 = vrot.slane %v2284_v21, 5  ;;  %v2295_v32 = vshrl.u32 %v2194_v6, 16  ;;  %v2298_v33 = vshll.u32 %v2194_v6, 16  ;;  %v2436_v34 = vld [vmem:[%s4825_s9 + $0x10] sm:$0xe]  ;;  %4628 = vmatprep.subr.msk.bf16.mxu0 %vm2095_vm8, %v4697_v29 }
  0x86   : > { %4539 = vmatmul.mubr.msk.bf16.vlgmr.msra.gmra.mxu0 %vm2082_vm9, %v4153_v24  ;;  %v2274_v36 = vrot.slane %v2273_v25, 4  ;;  %v2292_v37 = vrot.slane %v2290_v27, 5  ;;  %v2304_v38 = vshll.u32 %v2195_v12, 16  ;;  %v4161_v39 = vrot.slane %v2432_v17, 9  ;;  %v2437_v40 = vld [vmem:[%s4825_s9 + $0x14] sm:$0x1] }
  0x87   : > { %v2265_v41 = vsel %vm4864_vm6, %v2260_v30, %v2264_v10  ;;  %v2287_v42 = vor.u32 %v2286_v31, %v2283_v26  ;;  %v2297_v43 = vrot.slane %v2295_v32, 4  ;;  %v2300_v44 = vrot.slane %v2298_v33, 5  ;;  %v2438_v45 = vld [vmem:[%s4825_s9 + $0x18] sm:$0xe]  ;;  %v2439_v46 = vld [vmem:[%s4825_s9 + $0x1c] sm:$0x1] }
  0x88   : > { %v2279_v47 = vsel %vm4864_vm6, %v2274_v36, %v2278_v20  ;;  %v2306_v48 = vrot.slane %v2304_v38, 5  ;;  %v2466_v49 = vrot.slane %v2433_v22, 5  ;;  %v4162_v50 = vrot.slane %v2434_v23, 9  ;;  %v2440_v51 = vld [vmem:[%s4825_s9 + $0x20] sm:$0xe] }
  0x89   : > { %v4154_v52 = vcombine.low %v2265_v41, %v2279_v47  ;;  %v2288_v53 = vrot.slane %v2287_v42, 4  ;;  %v2301_v54 = vor.u32 %v2300_v44, %v2297_v43  ;;  %v2470_v55 = vrot.slane %v2435_v28, 5  ;;  %v2441_v56 = vld [vmem:[%s4825_s9 + $0x24] sm:$0x1]  ;;  %v2442_v57 = vld [vmem:[%s4825_s9 + $0x28] sm:$0xe] }
  0x8a   : > { %v2467_v58 = vsel %vm4886_vm7, %v4161_v39, %v2466_v49  ;;  %v4163_v59 = vrot.slane %v2436_v34, 9  ;;  %v2474_v60 = vrot.slane %v2437_v40, 5  ;;  %v4164_v61 = vrot.slane %v2438_v45, 9  ;;  %v2443_v62 = vld [vmem:[%s4825_s9 + $0x2c] sm:$0x1] }
  0x8b   : > { %4542 = vmatprep.mubr.msk.bf16.mxu0 %vm2082_vm9, %v4154_v52  ;;  %v2293_v63 = vsel %vm4864_vm6, %v2288_v53, %v2292_v37  ;;  %v2302_v0 = vrot.slane %v2301_v54, 4  ;;  %v2471_v1 = vsel %vm4886_vm7, %v4162_v50, %v2470_v55  ;;  %v2478_v2 = vrot.slane %v2439_v46, 5  ;;  %v2444_v3 = vld [vmem:[%s4825_s9 + $0x30] sm:$0xe]  ;;  %v2445_v4 = vld [vmem:[%s4825_s9 + $0x34] sm:$0x1] }
  0x8c   : > { %v4171_v5 = vcombine.low %v2467_v58, %v2471_v1  ;;  %v2475_v6 = vsel %vm4886_vm7, %v4163_v59, %v2474_v60  ;;  %v2678_v7 = vsel %vm2095_vm8, %v4697_v29, 0  ;;  %v4165_v8 = vrot.slane %v2440_v51, 9  ;;  %v2446_v10 = vld [vmem:[%s4825_s9 + $0x38] sm:$0xe]  ;;  %v2447_v11 = vld [vmem:[%s4825_s9 + $0x3c] sm:$0x1] }
  0x8d   : > { %v2307_v12 = vsel %vm4864_vm6, %v2302_v0, %v2306_v48  ;;  %v2479_v13 = vsel %vm4886_vm7, %v4164_v61, %v2478_v2  ;;  %4557 = vmatpush3.bf16.msra.mxu0 %v2678_v7  ;;  %v2482_v14 = vrot.slane %v2441_v56, 5  ;;  %v4166_v15 = vrot.slane %v2442_v57, 9  ;;  %v4698_v20 = vld [vmem:[%s4825_s9 + $0x8] ss:$8 sps:$4 sm:$0xff]   ;;  %v4699_v26 = vld [vmem:[%s4830_s12 + $0x20] sm:$0x1f]  }
  0x8e   : > { %v4155_v16 = vcombine.low %v2293_v63, %v2307_v12  ;;  %4548 = vmatprep.mubr.msk.bf16.mxu1 %vm2082_vm9, %v4171_v5  ;;  %v4172_v17 = vcombine.low %v2475_v6, %v2479_v13  ;;  %v2486_v18 = vrot.slane %v2443_v62, 5  ;;  %v4167_v19 = vrot.slane %v2444_v3, 9  ;;  %4629 = vmatprep.subr.msk.bf16.mxu1 %vm2095_vm8, %v4699_v26  ;;  %v4700_v30 = vld [vmem:[%s4825_s9 + $0x18] ss:$8 sps:$4 sm:$0xff]   ;;  %v4701_v32 = vld [vmem:[%s4825_s9 + $0x28] ss:$8 sps:$4 sm:$0xff]  }
  0x8f   : > { %v2483_v21 = vsel %vm4886_vm7, %v4165_v8, %v2482_v14  ;;  %v2490_v22 = vrot.slane %v2445_v4, 5  ;;  %v4168_v23 = vrot.slane %v2446_v10, 9  ;;  %v2494_v24 = vrot.slane %v2447_v11, 5  ;;  %v4199_v33 = vld [vmem:[%s4825_s9 + $0x8] sm:$0xf] }
  0x90   : > { %4543 = vmatmul.mubr.msk.bf16.gmra.mxu0 %vm2082_vm9, %v4155_v16  ;;  %4549 = vmatmul.mubr.msk.bf16.vlgmr.msra.gmra.mxu1 %vm2082_vm9, %v4172_v17  ;;  %v2487_v25 = vsel %vm4886_vm7, %v4166_v15, %v2486_v18  ;;  %v2930_v31 = vsel %vm2095_vm8, %v4699_v26, 0  ;;  %v4200_v36 = vld [vmem:[%s4825_s9 + $0xc] sm:$0x1]  ;;  %v4201_v37 = vld [vmem:[%s4825_s9 + $0x10] sm:$0xf]  ;;  %v2778_v39 = vshrl.u32 %v4199_v33, 16 }
  0x91   : > { %v4173_v27 = vcombine.low %v2483_v21, %v2487_v25  ;;  %v2491_v28 = vsel %vm4886_vm7, %v4167_v19, %v2490_v22  ;;  %v2495_v29 = vsel %vm4886_vm7, %v4168_v23, %v2494_v24  ;;  %4558 = vmatprep.mubr.msk.bf16.mxu0 %vm2082_vm9, %v4698_v20  ;;  %4567 = vmatpush3.bf16.msra.mxu1 %v2930_v31  ;;  %v4202_v38 = vld [vmem:[%s4825_s9 + $0x14] sm:$0x1]  ;;  %v2781_v40 = vshll.u32 %v4199_v33, 16  ;;  %v4703_v45 = vld [vmem:[%s4830_s12 + $0x28] sm:$0x1f]  }
  0x92   : > { %v4174_v34 = vcombine.low %v2491_v28, %v2495_v29  ;;  %v2787_v41 = vshll.u32 %v4200_v36, 16  ;;  %v2792_v42 = vshrl.u32 %v4201_v37, 16  ;;  %v2795_v43 = vshll.u32 %v4201_v37, 16  ;;  %v4203_v50 = vld [vmem:[%s4825_s9 + $0x18] sm:$0xf]  ;;  %4630 = vmatprep.subr.msk.bf16.mxu0 %vm2095_vm8, %v4703_v45 }
  0x93   : > { %4552 = vmatprep.mubr.msk.bf16.mxu1 %vm2082_vm9, %v4173_v27  ;;  %v2801_v44 = vshll.u32 %v4202_v38, 16  ;;  %v2780_v46 = vrot.slane %v2778_v39, 4  ;;  %v2783_v47 = vrot.slane %v2781_v40, 5  ;;  %v4204_v53 = vld [vmem:[%s4825_s9 + $0x1c] sm:$0x1]  ;;  %v2806_v57 = vshrl.u32 %v4203_v50, 16 }
  0x94   : > { %v2789_v48 = vrot.slane %v2787_v41, 5  ;;  %v2794_v49 = vrot.slane %v2792_v42, 4  ;;  %v2797_v51 = vrot.slane %v2795_v43, 5  ;;  %v4205_v54 = vld [vmem:[%s4825_s9 + $0x20] sm:$0xf]  ;;  %v2809_v58 = vshll.u32 %v4203_v50, 16 }
  0x95   : > { %v2803_v52 = vrot.slane %v2801_v44, 5  ;;  %v2784_v55 = vor.u32 %v2783_v47, %v2780_v46  ;;  %v4206_v56 = vld [vmem:[%s4825_s9 + $0x24] sm:$0x1]  ;;  %v2815_v59 = vshll.u32 %v4204_v53, 16  ;;  %v4702_v60 = vld [vmem:[%s4825_s9 + $0x38] ss:$8 sps:$4 sm:$0xff]  }
  0x96   : > { %v2798_v61 = vor.u32 %v2797_v51, %v2794_v49  ;;  %v2820_v62 = vshrl.u32 %v4205_v54, 16  ;;  %v2823_v63 = vshll.u32 %v4205_v54, 16  ;;  %v2829_v0 = vshll.u32 %v4206_v56, 16  ;;  %v4207_v1 = vld [vmem:[%s4825_s9 + $0x28] sm:$0xf] }
  0x97   : > { %v2785_v2 = vrot.slane %v2784_v55, 4  ;;  %v2808_v3 = vrot.slane %v2806_v57, 4  ;;  %v2811_v4 = vrot.slane %v2809_v58, 5  ;;  %v2817_v5 = vrot.slane %v2815_v59, 5  ;;  %v4208_v6 = vld [vmem:[%s4825_s9 + $0x2c] sm:$0x1] }
  0x98   : > { %4553 = vmatmul.mubr.msk.bf16.gmra.mxu1 %vm2082_vm9, %v4174_v34  ;;  %4559 = vmatmul.mubr.msk.bf16.vlgmr.msra.gmra.mxu0 %vm2082_vm9, %v4700_v30  ;;  %v2799_v7 = vrot.slane %v2798_v61, 4  ;;  %v2822_v8 = vrot.slane %v2820_v62, 4  ;;  %v2825_v10 = vrot.slane %v2823_v63, 5  ;;  %v2831_v11 = vrot.slane %v2829_v0, 5  ;;  %v4209_v12 = vld [vmem:[%s4825_s9 + $0x30] sm:$0xf] }
  0x99   : > { %4562 = vmatprep.mubr.msk.bf16.mxu0 %vm2082_vm9, %v4701_v32  ;;  %v2790_v13 = vsel %vm4864_vm6, %v2785_v2, %v2789_v48  ;;  %v2812_v14 = vor.u32 %v2811_v4, %v2808_v3  ;;  %v3118_v15 = vsel %vm2095_vm8, %v4703_v45, 0  ;;  %v4210_v16 = vld [vmem:[%s4825_s9 + $0x34] sm:$0x1]  ;;  %v2834_v17 = vshrl.u32 %v4207_v1, 16  ;;  %v4211_v22 = vld [vmem:[%s4825_s9 + $0x38] sm:$0xf] }
  0x9a   : > { %v2804_v18 = vsel %vm4864_vm6, %v2799_v7, %v2803_v52  ;;  %v2826_v19 = vor.u32 %v2825_v10, %v2822_v8  ;;  %4577 = vmatpush3.bf16.msra.mxu0 %v3118_v15  ;;  %v2837_v20 = vshll.u32 %v4207_v1, 16  ;;  %v2843_v21 = vshll.u32 %v4208_v6, 16  ;;  %v4212_v23 = vld [vmem:[%s4825_s9 + $0x3c] sm:$0x1]  ;;  %v4213_v28 = vld [vmem:[%s4825_s9 + $0x40] sm:$0xf] }
  0x9b   : > { %v4217_v24 = vcombine.low %v2790_v13, %v2804_v18  ;;  %v2813_v25 = vrot.slane %v2812_v14, 4  ;;  %v2836_v26 = vrot.slane %v2834_v17, 4  ;;  %v2848_v27 = vshrl.u32 %v4209_v12, 16  ;;  %v4214_v33 = vld [vmem:[%s4825_s9 + $0x44] sm:$0x1] }
  0x9c   : > { %v2827_v29 = vrot.slane %v2826_v19, 4  ;;  %v2839_v30 = vrot.slane %v2837_v20, 5  ;;  %v2845_v31 = vrot.slane %v2843_v21, 5  ;;  %v2851_v32 = vshll.u32 %v4209_v12, 16  ;;  %v4226_v39 = vld [vmem:[%s4825_s9 + $0x8] sm:$0xe] }
  0x9d   : > { %4568 = vmatprep.mubr.msk.bf16.mxu1 %vm2082_vm9, %v4217_v24  ;;  %v2818_v34 = vsel %vm4864_vm6, %v2813_v25, %v2817_v5  ;;  %v2850_v36 = vrot.slane %v2848_v27, 4  ;;  %v2857_v37 = vshll.u32 %v4210_v16, 16  ;;  %v2862_v38 = vshrl.u32 %v4211_v22, 16  ;;  %v4227_v44 = vld [vmem:[%s4825_s9 + $0xc] sm:$0x1] }
  0x9e   : > { %v2832_v40 = vsel %vm4864_vm6, %v2827_v29, %v2831_v11  ;;  %v2840_v41 = vor.u32 %v2839_v30, %v2836_v26  ;;  %v2853_v42 = vrot.slane %v2851_v32, 5  ;;  %v2865_v43 = vshll.u32 %v4211_v22, 16  ;;  %v4228_v45 = vld [vmem:[%s4825_s9 + $0x10] sm:$0xe]  ;;  %v4229_v50 = vld [vmem:[%s4825_s9 + $0x14] sm:$0x1] }
  0x9f   : > { %v4218_v46 = vcombine.low %v2818_v34, %v2832_v40  ;;  %v2859_v47 = vrot.slane %v2857_v37, 5  ;;  %v2864_v48 = vrot.slane %v2862_v38, 4  ;;  %v2871_v49 = vshll.u32 %v4212_v23, 16  ;;  %v4704_v59 = vld [vmem:[%s4830_s12 + $0x30] sm:$0x1f]  }
  0xa0   : > { %4563 = vmatmul.mubr.msk.bf16.gmra.mxu0 %vm2082_vm9, %v4702_v60  ;;  %v2841_v51 = vrot.slane %v2840_v41, 4  ;;  %v2854_v52 = vor.u32 %v2853_v42, %v2850_v36  ;;  %v2867_v53 = vrot.slane %v2865_v43, 5  ;;  %v2876_v54 = vshrl.u32 %v4213_v28, 16  ;;  %v4230_v0 = vld [vmem:[%s4825_s9 + $0x18] sm:$0xe]  ;;  %4631 = vmatprep.subr.msk.bf16.mxu1 %vm2095_vm8, %v4704_v59 }
  0xa1   : > { %4569 = vmatmul.mubr.msk.bf16.vlgmr.msra.gmra.mxu1 %vm2082_vm9, %v4218_v46  ;;  %v2873_v55 = vrot.slane %v2871_v49, 5  ;;  %v2879_v56 = vshll.u32 %v4213_v28, 16  ;;  %v2885_v57 = vshll.u32 %v4214_v33, 16  ;;  %v4242_v58 = vrot.slane %v4226_v39, 9  ;;  %v4231_v1 = vld [vmem:[%s4825_s9 + $0x1c] sm:$0x1] }
  0xa2   : > { %v2846_v60 = vsel %vm4864_vm6, %v2841_v51, %v2845_v31  ;;  %v2855_v61 = vrot.slane %v2854_v52, 4  ;;  %v2868_v62 = vor.u32 %v2867_v53, %v2864_v48  ;;  %v2878_v63 = vrot.slane %v2876_v54, 4  ;;  %v4232_v6 = vld [vmem:[%s4825_s9 + $0x20] sm:$0xe]  ;;  %v4233_v11 = vld [vmem:[%s4825_s9 + $0x24] sm:$0x1] }
  0xa3   : > { %v2881_v2 = vrot.slane %v2879_v56, 5  ;;  %v2887_v3 = vrot.slane %v2885_v57, 5  ;;  %v3047_v4 = vrot.slane %v4227_v44, 5  ;;  %v4243_v5 = vrot.slane %v4228_v45, 9  ;;  %v4234_v17 = vld [vmem:[%s4825_s9 + $0x28] sm:$0xe] }
  0xa4   : > { %v2860_v7 = vsel %vm4864_vm6, %v2855_v61, %v2859_v47  ;;  %v2869_v8 = vrot.slane %v2868_v62, 4  ;;  %v3051_v10 = vrot.slane %v4229_v50, 5  ;;  %v4244_v12 = vrot.slane %v4230_v0, 9  ;;  %v4235_v18 = vld [vmem:[%s4825_s9 + $0x2c] sm:$0x1] }
  0xa5   : > { %v4219_v13 = vcombine.low %v2846_v60, %v2860_v7  ;;  %v2882_v14 = vor.u32 %v2881_v2, %v2878_v63  ;;  %v3048_v15 = vsel %vm4886_vm7, %v4242_v58, %v3047_v4  ;;  %v3055_v16 = vrot.slane %v4231_v1, 5  ;;  %v4236_v23 = vld [vmem:[%s4825_s9 + $0x30] sm:$0xe]  ;;  %v4237_v24 = vld [vmem:[%s4825_s9 + $0x34] sm:$0x1] }
  0xa6   : > { %v2874_v19 = vsel %vm4864_vm6, %v2869_v8, %v2873_v55  ;;  %v3052_v20 = vsel %vm4886_vm7, %v4243_v5, %v3051_v10  ;;  %v4245_v21 = vrot.slane %v4232_v6, 9  ;;  %v3059_v22 = vrot.slane %v4233_v11, 5  ;;  %v4238_v29 = vld [vmem:[%s4825_s9 + $0x38] sm:$0xe]  ;;  %v4239_v30 = vld [vmem:[%s4825_s9 + $0x3c] sm:$0x1] }
  0xa7   : > { %4572 = vmatprep.mubr.msk.bf16.mxu1 %vm2082_vm9, %v4219_v13  ;;  %v2883_v25 = vrot.slane %v2882_v14, 4  ;;  %v4252_v26 = vcombine.low %v3048_v15, %v3052_v20  ;;  %v3056_v27 = vsel %vm4886_vm7, %v4244_v12, %v3055_v16  ;;  %v3259_v28 = vsel %vm2095_vm8, %v4704_v59, 0  ;;  %v4240_v36 = vld [vmem:[%s4825_s9 + $0x40] sm:$0xe]  ;;  %v4241_v40 = vld [vmem:[%s4825_s9 + $0x44] sm:$0x1] }
  0xa8   : > { %v3060_v31 = vsel %vm4886_vm7, %v4245_v21, %v3059_v22  ;;  %4587 = vmatpush3.bf16.msra.mxu1 %v3259_v28  ;;  %v4246_v32 = vrot.slane %v4234_v17, 9  ;;  %v3063_v33 = vrot.slane %v4235_v18, 5  ;;  %v4247_v34 = vrot.slane %v4236_v23, 9  ;;  %v4705_v46 = vld [vmem:[%s4825_s9 + $0x10] ss:$8 sps:$4 sm:$0xff]  }
  0xa9   : > { %v2888_v37 = vsel %vm4864_vm6, %v2883_v25, %v2887_v3  ;;  %4578 = vmatprep.mubr.msk.bf16.mxu0 %vm2082_vm9, %v4252_v26  ;;  %v4253_v38 = vcombine.low %v3056_v27, %v3060_v31  ;;  %v3067_v39 = vrot.slane %v4237_v24, 5  ;;  %v4248_v41 = vrot.slane %v4238_v29, 9  ;;  %v4706_v51 = vld [vmem:[%s4830_s12 + $0x38] sm:$0x1f]   ;;  %v4707_v53 = vld [vmem:[%s4825_s9 + $0x20] ss:$8 sps:$4 sm:$0xff]  }
  0xaa   : > { %v4220_v42 = vcombine.low %v2874_v19, %v2888_v37  ;;  %v3064_v43 = vsel %vm4886_vm7, %v4246_v32, %v3063_v33  ;;  %v3071_v44 = vrot.slane %v4239_v30, 5  ;;  %v4249_v45 = vrot.slane %v4240_v36, 9  ;;  %4632 = vmatprep.subr.msk.bf16.mxu0 %vm2095_vm8, %v4706_v51  ;;  %v4708_v56 = vld [vmem:[%s4825_s9 + $0x30] ss:$8 sps:$4 sm:$0xff]   ;;  %v4281_v58 = vld [vmem:[%s4825_s9 + $0x14] sm:$0x1] }
  0xab   : > { %4579 = vmatmul.mubr.msk.bf16.vlgmr.msra.gmra.mxu0 %vm2082_vm9, %v4253_v38  ;;  %v3068_v47 = vsel %vm4886_vm7, %v4247_v34, %v3067_v39  ;;  %v3075_v48 = vrot.slane %v4241_v40, 5  ;;  %v3511_v54 = vsel %vm2095_vm8, %v4706_v51, 0  ;;  %v4280_v57 = vld [vmem:[%s4825_s9 + $0x10] sm:$0xf]  ;;  %v4282_v59 = vld [vmem:[%s4825_s9 + $0x18] sm:$0xf] }
  0xac   : > { %4573 = vmatmul.mubr.msk.bf16.gmra.mxu1 %vm2082_vm9, %v4220_v42  ;;  %v4254_v49 = vcombine.low %v3064_v43, %v3068_v47  ;;  %v3072_v50 = vsel %vm4886_vm7, %v4248_v41, %v3071_v44  ;;  %4597 = vmatpush3.bf16.msra.mxu0 %v3511_v54  ;;  %v4283_v60 = vld [vmem:[%s4825_s9 + $0x1c] sm:$0x1]  ;;  %v3359_v61 = vshrl.u32 %v4280_v57, 16  ;;  %v3362_v62 = vshll.u32 %v4280_v57, 16  ;;  %v4710_v3 = vld [vmem:[%s4830_s12 + $0x40] sm:$0x1f]  }
  0xad   : > { %v3076_v52 = vsel %vm4886_vm7, %v4249_v45, %v3075_v48  ;;  %4588 = vmatprep.mubr.msk.bf16.mxu1 %vm2082_vm9, %v4705_v46  ;;  %v3368_v63 = vshll.u32 %v4281_v58, 16  ;;  %v3373_v0 = vshrl.u32 %v4282_v59, 16  ;;  %v3376_v1 = vshll.u32 %v4282_v59, 16  ;;  %v4284_v8 = vld [vmem:[%s4825_s9 + $0x20] sm:$0xf]  ;;  %4633 = vmatprep.subr.msk.bf16.mxu1 %vm2095_vm8, %v4710_v3 }
  0xae   : > { %4582 = vmatprep.mubr.msk.bf16.mxu0 %vm2082_vm9, %v4254_v49  ;;  %v4255_v55 = vcombine.low %v3072_v50, %v3076_v52  ;;  %v3382_v2 = vshll.u32 %v4283_v60, 16  ;;  %v3361_v4 = vrot.slane %v3359_v61, 4  ;;  %v3364_v5 = vrot.slane %v3362_v62, 5  ;;  %v4285_v12 = vld [vmem:[%s4825_s9 + $0x24] sm:$0x1] }
  0xaf   : > { %v3370_v6 = vrot.slane %v3368_v63, 5  ;;  %v3375_v7 = vrot.slane %v3373_v0, 4  ;;  %v3378_v10 = vrot.slane %v3376_v1, 5  ;;  %v4286_v13 = vld [vmem:[%s4825_s9 + $0x28] sm:$0xf]  ;;  %v3387_v16 = vshrl.u32 %v4284_v8, 16 }
  0xb0   : > { %v3384_v11 = vrot.slane %v3382_v2, 5  ;;  %v3365_v14 = vor.u32 %v3364_v5, %v3361_v4  ;;  %v4287_v15 = vld [vmem:[%s4825_s9 + $0x2c] sm:$0x1]  ;;  %v3390_v17 = vshll.u32 %v4284_v8, 16  ;;  %v3396_v18 = vshll.u32 %v4285_v12, 16 }
  0xb1   : > { %v4709_v19 = vld [vmem:[%s4825_s9 + $0x40] ss:$8 sps:$4 sm:$0xff]   ;;  %v3379_v20 = vor.u32 %v3378_v10, %v3375_v7  ;;  %v3401_v21 = vshrl.u32 %v4286_v13, 16  ;;  %v3404_v22 = vshll.u32 %v4286_v13, 16  ;;  %v3410_v23 = vshll.u32 %v4287_v15, 16 }
  0xb2   : > { %v4288_v24 = vld [vmem:[%s4825_s9 + $0x30] sm:$0xf]  ;;  %v3366_v25 = vrot.slane %v3365_v14, 4  ;;  %v3389_v26 = vrot.slane %v3387_v16, 4  ;;  %v3392_v27 = vrot.slane %v3390_v17, 5  ;;  %v3398_v28 = vrot.slane %v3396_v18, 5 }
  0xb3   : > { %4583 = vmatmul.mubr.msk.bf16.gmra.mxu0 %vm2082_vm9, %v4255_v55  ;;  %v4289_v29 = vld [vmem:[%s4825_s9 + $0x34] sm:$0x1]  ;;  %v3380_v30 = vrot.slane %v3379_v20, 4  ;;  %v3403_v31 = vrot.slane %v3401_v21, 4  ;;  %v3406_v32 = vrot.slane %v3404_v22, 5  ;;  %v3412_v33 = vrot.slane %v3410_v23, 5 }
  0xb4   : > { %4589 = vmatmul.mubr.msk.bf16.vlgmr.msra.gmra.mxu1 %vm2082_vm9, %v4707_v53  ;;  %v4290_v34 = vld [vmem:[%s4825_s9 + $0x38] sm:$0xf]  ;;  %v3371_v36 = vsel %vm4864_vm6, %v3366_v25, %v3370_v6  ;;  %v3393_v37 = vor.u32 %v3392_v27, %v3389_v26  ;;  %v3699_v38 = vsel %vm2095_vm8, %v4710_v3, 0  ;;  %v4291_v39 = vld [vmem:[%s4825_s9 + $0x3c] sm:$0x1]  ;;  %v3415_v40 = vshrl.u32 %v4288_v24, 16 }
  0xb5   : > { %4592 = vmatprep.mubr.msk.bf16.mxu1 %vm2082_vm9, %v4708_v56  ;;  %v3385_v41 = vsel %vm4864_vm6, %v3380_v30, %v3384_v11  ;;  %v3407_v42 = vor.u32 %v3406_v32, %v3403_v31  ;;  %4607 = vmatpush3.bf16.msra.mxu1 %v3699_v38  ;;  %v3418_v43 = vshll.u32 %v4288_v24, 16  ;;  %v3424_v44 = vshll.u32 %v4289_v29, 16  ;;  %v4292_v45 = vld [vmem:[%s4825_s9 + $0x40] sm:$0xf]  ;;  %v4293_v46 = vld [vmem:[%s4825_s9 + $0x44] sm:$0x1] }
  0xb6   : > { %v4298_v47 = vcombine.low %v3371_v36, %v3385_v41  ;;  %v3394_v48 = vrot.slane %v3393_v37, 4  ;;  %v3417_v49 = vrot.slane %v3415_v40, 4  ;;  %v3429_v50 = vshrl.u32 %v4290_v34, 16  ;;  %v4294_v51 = vld [vmem:[%s4825_s9 + $0x48] sm:$0xf] }
  0xb7   : > { %v3408_v52 = vrot.slane %v3407_v42, 4  ;;  %v3420_v53 = vrot.slane %v3418_v43, 5  ;;  %v3426_v54 = vrot.slane %v3424_v44, 5  ;;  %v3432_v55 = vshll.u32 %v4290_v34, 16  ;;  %v4295_v56 = vld [vmem:[%s4825_s9 + $0x4c] sm:$0x1] }
  0xb8   : > { %4598 = vmatprep.mubr.msk.bf16.mxu0 %vm2082_vm9, %v4298_v47  ;;  %v3399_v57 = vsel %vm4864_vm6, %v3394_v48, %v3398_v28  ;;  %v3431_v58 = vrot.slane %v3429_v50, 4  ;;  %v3438_v59 = vshll.u32 %v4291_v39, 16  ;;  %v3443_v60 = vshrl.u32 %v4292_v45, 16  ;;  %v4307_v61 = vld [vmem:[%s4825_s9 + $0x10] sm:$0xe] }
  0xb9   : > { %v3413_v62 = vsel %vm4864_vm6, %v3408_v52, %v3412_v33  ;;  %v3421_v63 = vor.u32 %v3420_v53, %v3417_v49  ;;  %v3434_v0 = vrot.slane %v3432_v55, 5  ;;  %v3446_v1 = vshll.u32 %v4292_v45, 16  ;;  %v4308_v2 = vld [vmem:[%s4825_s9 + $0x14] sm:$0x1]  ;;  %v4309_v3 = vld [vmem:[%s4825_s9 + $0x18] sm:$0xe] }
  0xba   : > { %v4299_v4 = vcombine.low %v3399_v57, %v3413_v62  ;;  %v3440_v5 = vrot.slane %v3438_v59, 5  ;;  %v3445_v6 = vrot.slane %v3443_v60, 4  ;;  %v3452_v7 = vshll.u32 %v4293_v46, 16  ;;  %v4310_v8 = vld [vmem:[%s4825_s9 + $0x1c] sm:$0x1] }
  0xbb   : > { %v3422_v10 = vrot.slane %v3421_v63, 4  ;;  %v3435_v11 = vor.u32 %v3434_v0, %v3431_v58  ;;  %v3448_v12 = vrot.slane %v3446_v1, 5  ;;  %v3457_v13 = vshrl.u32 %v4294_v51, 16  ;;  %v4311_v14 = vld [vmem:[%s4825_s9 + $0x20] sm:$0xe] }
  0xbc   : > { %4593 = vmatmul.mubr.msk.bf16.gmra.mxu1 %vm2082_vm9, %v4709_v19  ;;  %4599 = vmatmul.mubr.msk.bf16.vlgmr.msra.gmra.mxu0 %vm2082_vm9, %v4299_v4  ;;  %v3454_v15 = vrot.slane %v3452_v7, 5  ;;  %v3460_v16 = vshll.u32 %v4294_v51, 16  ;;  %v3466_v17 = vshll.u32 %v4295_v56, 16  ;;  %v4323_v18 = vrot.slane %v4307_v61, 9  ;;  %v4312_v19 = vld [vmem:[%s4825_s9 + $0x24] sm:$0x1] }
  0xbd   : > { %v3427_v20 = vsel %vm4864_vm6, %v3422_v10, %v3426_v54  ;;  %v3436_v21 = vrot.slane %v3435_v11, 4  ;;  %v3449_v22 = vor.u32 %v3448_v12, %v3445_v6  ;;  %v3459_v23 = vrot.slane %v3457_v13, 4  ;;  %v4313_v24 = vld [vmem:[%s4825_s9 + $0x28] sm:$0xe]  ;;  %v4314_v25 = vld [vmem:[%s4825_s9 + $0x2c] sm:$0x1] }
  0xbe   : > { %v3462_v26 = vrot.slane %v3460_v16, 5  ;;  %v3468_v27 = vrot.slane %v3466_v17, 5  ;;  %v3628_v28 = vrot.slane %v4308_v2, 5  ;;  %v4324_v29 = vrot.slane %v4309_v3, 9  ;;  %v4315_v30 = vld [vmem:[%s4825_s9 + $0x30] sm:$0xe] }
  0xbf   : > { %v3441_v31 = vsel %vm4864_vm6, %v3436_v21, %v3440_v5  ;;  %v3450_v32 = vrot.slane %v3449_v22, 4  ;;  %v3632_v33 = vrot.slane %v4310_v8, 5  ;;  %v4325_v34 = vrot.slane %v4311_v14, 9  ;;  %v4316_v36 = vld [vmem:[%s4825_s9 + $0x34] sm:$0x1]  ;;  %v351_v10 = vld [vmem:[#allocation2] sm:$0xff] }
  0xc0   : > { %v4300_v37 = vcombine.low %v3427_v20, %v3441_v31  ;;  %v3463_v38 = vor.u32 %v3462_v26, %v3459_v23  ;;  %v3629_v39 = vsel %vm4886_vm7, %v4323_v18, %v3628_v28  ;;  %v3636_v40 = vrot.slane %v4312_v19, 5  ;;  %v4317_v41 = vld [vmem:[%s4825_s9 + $0x38] sm:$0xe]  ;;  %v4318_v42 = vld [vmem:[%s4825_s9 + $0x3c] sm:$0x1]  ;;  %v353_v7 = vld [vmem:[#allocation2 + $0x10] sm:$0xff] }
  0xc1   : > { %v3455_v43 = vsel %vm4864_vm6, %v3450_v32, %v3454_v15  ;;  %v3633_v44 = vsel %vm4886_vm7, %v4324_v29, %v3632_v33  ;;  %v4326_v45 = vrot.slane %v4313_v24, 9  ;;  %v3640_v46 = vrot.slane %v4314_v25, 5  ;;  %v4319_v47 = vld [vmem:[%s4825_s9 + $0x40] sm:$0xe]  ;;  %v4320_v48 = vld [vmem:[%s4825_s9 + $0x44] sm:$0x1] }
  0xc2   : > { %4602 = vmatprep.mubr.msk.bf16.mxu0 %vm2082_vm9, %v4300_v37  ;;  %v3464_v49 = vrot.slane %v3463_v38, 4  ;;  %v4333_v50 = vcombine.low %v3629_v39, %v3633_v44  ;;  %v3637_v51 = vsel %vm4886_vm7, %v4325_v34, %v3636_v40  ;;  %v4327_v52 = vrot.slane %v4315_v30, 9  ;;  %v4321_v53 = vld [vmem:[%s4825_s9 + $0x48] sm:$0xe]  ;;  %v4322_v58 = vld [vmem:[%s4825_s9 + $0x4c] sm:$0x1] }
  0xc3   : > { %v3641_v54 = vsel %vm4886_vm7, %v4326_v45, %v3640_v46  ;;  %v3644_v55 = vrot.slane %v4316_v36, 5  ;;  %v4328_v56 = vrot.slane %v4317_v41, 9  ;;  %v3648_v57 = vrot.slane %v4318_v42, 5  ;;  %v354_v13 = vld [vmem:[#allocation2 + $0x18] sm:$0xff]  ;;  %v352_v16 = vld [vmem:[#allocation2 + $0x8] sm:$0xff]  ;;  %v357_v18 = vld [vmem:[#allocation2 + $0x30] sm:$0xff] }
  0xc4   : > { %v3469_v59 = vsel %vm4864_vm6, %v3464_v49, %v3468_v27  ;;  %4608 = vmatprep.mubr.msk.bf16.mxu1 %vm2082_vm9, %v4333_v50  ;;  %v4334_v60 = vcombine.low %v3637_v51, %v3641_v54  ;;  %v4329_v61 = vrot.slane %v4319_v47, 9  ;;  %v3652_v62 = vrot.slane %v4320_v48, 5  ;;  %v355_v21 = vld [vmem:[#allocation2 + $0x20] sm:$0xff]  ;;  %v358_v24 = vld [vmem:[#allocation2 + $0x38] sm:$0xff]  ;;  %v356_v27 = vld [vmem:[#allocation2 + $0x28] sm:$0xff] }
  0xc5   : > { %v4301_v63 = vcombine.low %v3455_v43, %v3469_v59  ;;  %v3645_v0 = vsel %vm4886_vm7, %v4327_v52, %v3644_v55  ;;  %v3649_v1 = vsel %vm4886_vm7, %v4328_v56, %v3648_v57  ;;  %v4330_v2 = vrot.slane %v4321_v53, 9 }
  0xc6   : > { %4609 = vmatmul.mubr.msk.bf16.vlgmr.msra.gmra.mxu1 %vm2082_vm9, %v4334_v60  ;;  %v4335_v3 = vcombine.low %v3645_v0, %v3649_v1  ;;  %v3656_v4 = vrot.slane %v4322_v58, 5  ;;  %v3653_v35 = vsel %vm4886_vm7, %v4329_v61, %v3652_v62 }
  0xc7   : > { %4603 = vmatmul.mubr.msk.bf16.gmra.mxu0 %vm2082_vm9, %v4301_v63 }
  0xc8   : > { %4612 = vmatprep.mubr.msk.bf16.mxu1 %vm2082_vm9, %v4335_v3  ;;  %v3657_v5 = vsel %vm4886_vm7, %v4330_v2, %v3656_v4 }
  0xc9   : > { %v4336_v6 = vcombine.low %v3653_v35, %v3657_v5 }
  0xce   : > { %4613 = vmatmul.mubr.msk.bf16.gmra.mxu1 %vm2082_vm9, %v4336_v6 }
  0xe4   : > { %v4440_v8 = vpop.f32.mrf.mxu0 }
  0xe5   : > { %v464_v11 = vadd.f32 %v4440_v8, %v353_v7 }
  0xe6   : > { %v431_v12 = vpop.f32.mrf.mxu0 }
  0xe7   : > { %473 = vst.msk [vmem:[#allocation2 + $0x10] sm:$0xff] %vm470_vm10, %v464_v11  ;;  %v462_v14 = vadd.f32 %v431_v12, %v351_v10 }
  0xe8   : > { %v4441_v15 = vpop.f32.mrf.mxu0 }
  0xe9   : > { %471 = vst.msk [vmem:[#allocation2] sm:$0xff] %vm470_vm10, %v462_v14  ;;  %v465_v17 = vadd.f32 %v4441_v15, %v354_v13 }
  0xea   : > { %v434_v9 = vpop.f32.mrf.mxu0 }
  0xeb   : > { %474 = vst.msk [vmem:[#allocation2 + $0x18] sm:$0xff] %vm470_vm10, %v465_v17  ;;  %v463_v19 = vadd.f32 %v434_v9, %v352_v16 }
  0xec   : > { %v4444_v20 = vpop.f32.mrf.mxu0 }
  0xed   : > { %472 = vst.msk [vmem:[#allocation2 + $0x8] sm:$0xff] %vm470_vm10, %v463_v19  ;;  %v468_v22 = vadd.f32 %v4444_v20, %v357_v18 }
  0xee   : > { %v447_v23 = vpop.f32.mrf.mxu0  ;;  %v612_v31 = vld [vmem:[#allocation2 + $0x10] sm:$0xff] }
  0xef   : > { %477 = vst.msk [vmem:[#allocation2 + $0x30] sm:$0xff] %vm470_vm10, %v468_v22  ;;  %v466_v25 = vadd.f32 %v447_v23, %v355_v21 }
  0xf0   : > { %v4445_v26 = vpop.f32.mrf.mxu0  ;;  %v610_v33 = vld [vmem:[#allocation2] sm:$0xff] }
  0xf1   : > { %475 = vst.msk [vmem:[#allocation2 + $0x20] sm:$0xff] %vm470_vm10, %v466_v25  ;;  %v469_v28 = vadd.f32 %v4445_v26, %v358_v24 }
  0xf2   : > { %v450_v29 = vpop.f32.mrf.mxu0  ;;  %v613_v37 = vld [vmem:[#allocation2 + $0x18] sm:$0xff] }
  0xf3   : > { %478 = vst.msk [vmem:[#allocation2 + $0x38] sm:$0xff] %vm470_vm10, %v469_v28  ;;  %v467_v30 = vadd.f32 %v450_v29, %v356_v27 }
  0xf4   : > { %v4450_v32 = vpop.f32.mrf.mxu1  ;;  %v611_v40 = vld [vmem:[#allocation2 + $0x8] sm:$0xff] }
  0xf5   : > { %476 = vst.msk [vmem:[#allocation2 + $0x28] sm:$0xff] %vm470_vm10, %v467_v30  ;;  %v714_v34 = vadd.f32 %v4450_v32, %v612_v31 }
  0xf6   : > { %v681_v36 = vpop.f32.mrf.mxu1  ;;  %v616_v46 = vld [vmem:[#allocation2 + $0x30] sm:$0xff] }
  0xf7   : > { %722 = vst.msk [vmem:[#allocation2 + $0x10] sm:$0xff] %vm470_vm10, %v714_v34  ;;  %v712_v38 = vadd.f32 %v681_v36, %v610_v33 }
  0xf8   : > { %v4451_v39 = vpop.f32.mrf.mxu1  ;;  %v614_v51 = vld [vmem:[#allocation2 + $0x20] sm:$0xff] }
  0xf9   : > { %720 = vst.msk [vmem:[#allocation2] sm:$0xff] %vm470_vm10, %v712_v38  ;;  %v715_v41 = vadd.f32 %v4451_v39, %v613_v37 }
  0xfa   : > { %v684_v42 = vpop.f32.mrf.mxu1  ;;  %v617_v57 = vld [vmem:[#allocation2 + $0x38] sm:$0xff] }
  0xfb   : > { %723 = vst.msk [vmem:[#allocation2 + $0x18] sm:$0xff] %vm470_vm10, %v715_v41  ;;  %v713_v43 = vadd.f32 %v684_v42, %v611_v40 }
  0xfc   : > { %v615_v63 = vld [vmem:[#allocation2 + $0x28] sm:$0xff] }
  0xfd   : > { %721 = vst.msk [vmem:[#allocation2 + $0x8] sm:$0xff] %vm470_vm10, %v713_v43 }
  0xfe   : > { %v797_v44 = vld [vmem:[#allocation2 + $0x10] sm:$0xff]  ;;  %v4460_v45 = vpop.f32.mrf.mxu0 }
  0xff   : > { %v899_v47 = vadd.f32 %v4460_v45, %v797_v44 }
 0x100   : > { %v795_v48 = vld [vmem:[#allocation2] sm:$0xff]  ;;  %v866_v49 = vpop.f32.mrf.mxu0 }
 0x101   : > { %v4454_v50 = vpop.f32.mrf.mxu1  ;;  %907 = vst.msk [vmem:[#allocation2 + $0x10] sm:$0xff] %vm470_vm10, %v899_v47  ;;  %v897_v52 = vadd.f32 %v866_v49, %v795_v48 }
 0x102   : > { %v718_v53 = vadd.f32 %v4454_v50, %v616_v46  ;;  %v798_v54 = vld [vmem:[#allocation2 + $0x18] sm:$0xff]  ;;  %v4461_v55 = vpop.f32.mrf.mxu0 }
 0x103   : > { %v697_v56 = vpop.f32.mrf.mxu1  ;;  %905 = vst.msk [vmem:[#allocation2] sm:$0xff] %vm470_vm10, %v897_v52  ;;  %v900_v58 = vadd.f32 %v4461_v55, %v798_v54 }
 0x104   : > { %726 = vst.msk [vmem:[#allocation2 + $0x30] sm:$0xff] %vm470_vm10, %v718_v53  ;;  %v716_v59 = vadd.f32 %v697_v56, %v614_v51  ;;  %v796_v60 = vld [vmem:[#allocation2 + $0x8] sm:$0xff]  ;;  %v869_v61 = vpop.f32.mrf.mxu0 }
 0x105   : > { %v4455_v62 = vpop.f32.mrf.mxu1  ;;  %908 = vst.msk [vmem:[#allocation2 + $0x18] sm:$0xff] %vm470_vm10, %v900_v58  ;;  %v898_v0 = vadd.f32 %v869_v61, %v796_v60 }
 0x106   : > { %724 = vst.msk [vmem:[#allocation2 + $0x20] sm:$0xff] %vm470_vm10, %v716_v59  ;;  %v719_v1 = vadd.f32 %v4455_v62, %v617_v57  ;;  %v4464_v2 = vpop.f32.mrf.mxu0 }
 0x107   : > { %v700_v3 = vpop.f32.mrf.mxu1  ;;  %906 = vst.msk [vmem:[#allocation2 + $0x8] sm:$0xff] %vm470_vm10, %v898_v0 }
 0x108   : > { %727 = vst.msk [vmem:[#allocation2 + $0x38] sm:$0xff] %vm470_vm10, %v719_v1  ;;  %v717_v4 = vadd.f32 %v700_v3, %v615_v63  ;;  %v924_v35 = vld [vmem:[#allocation2 + $0x10] sm:$0xff]  ;;  %v882_v5 = vpop.f32.mrf.mxu0 }
 0x109   : > { %v4470_v6 = vpop.f32.mrf.mxu1 }
 0x10a   : > { %725 = vst.msk [vmem:[#allocation2 + $0x28] sm:$0xff] %vm470_vm10, %v717_v4  ;;  %v1034_v7 = vadd.f32 %v4470_v6, %v924_v35  ;;  %v922_v8 = vld [vmem:[#allocation2] sm:$0xff]  ;;  %v4465_v14 = vpop.f32.mrf.mxu0 }
 0x10b   : > { %v801_v10 = vld [vmem:[#allocation2 + $0x30] sm:$0xff]  ;;  %v1001_v11 = vpop.f32.mrf.mxu1 }
 0x10c   : > { %v903_v12 = vadd.f32 %v4464_v2, %v801_v10  ;;  %1042 = vst.msk [vmem:[#allocation2 + $0x10] sm:$0xff] %vm470_vm10, %v1034_v7  ;;  %v1032_v13 = vadd.f32 %v1001_v11, %v922_v8  ;;  %v925_v15 = vld [vmem:[#allocation2 + $0x18] sm:$0xff]  ;;  %v885_v23 = vpop.f32.mrf.mxu0 }
 0x10d   : > { %v799_v16 = vld [vmem:[#allocation2 + $0x20] sm:$0xff]  ;;  %v4471_v17 = vpop.f32.mrf.mxu1 }
 0x10e   : > { %911 = vst.msk [vmem:[#allocation2 + $0x30] sm:$0xff] %vm470_vm10, %v903_v12  ;;  %v901_v9 = vadd.f32 %v882_v5, %v799_v16  ;;  %1040 = vst.msk [vmem:[#allocation2] sm:$0xff] %vm470_vm10, %v1032_v13  ;;  %v1035_v18 = vadd.f32 %v4471_v17, %v925_v15  ;;  %v923_v19 = vld [vmem:[#allocation2 + $0x8] sm:$0xff] }
 0x10f   : > { %v802_v20 = vld [vmem:[#allocation2 + $0x38] sm:$0xff]  ;;  %v1004_v21 = vpop.f32.mrf.mxu1  ;;  %v4480_v28 = vpop.f32.mrf.mxu0 }
 0x110   : > { %909 = vst.msk [vmem:[#allocation2 + $0x20] sm:$0xff] %vm470_vm10, %v901_v9  ;;  %v904_v22 = vadd.f32 %v4465_v14, %v802_v20  ;;  %1043 = vst.msk [vmem:[#allocation2 + $0x18] sm:$0xff] %vm470_vm10, %v1035_v18  ;;  %v1033_v24 = vadd.f32 %v1004_v21, %v923_v19 }
 0x111   : > { %v800_v25 = vld [vmem:[#allocation2 + $0x28] sm:$0xff]  ;;  %v4474_v26 = vpop.f32.mrf.mxu1  ;;  %v1247_v32 = vpop.f32.mrf.mxu0 }
 0x112   : > { %912 = vst.msk [vmem:[#allocation2 + $0x38] sm:$0xff] %vm470_vm10, %v904_v22  ;;  %v902_v27 = vadd.f32 %v885_v23, %v800_v25  ;;  %1041 = vst.msk [vmem:[#allocation2 + $0x8] sm:$0xff] %vm470_vm10, %v1033_v24 }
 0x113   : > { %v1017_v29 = vpop.f32.mrf.mxu1  ;;  %v1178_v30 = vld [vmem:[#allocation2 + $0x10] sm:$0xff]  ;;  %v4481_v39 = vpop.f32.mrf.mxu0 }
 0x114   : > { %910 = vst.msk [vmem:[#allocation2 + $0x28] sm:$0xff] %vm470_vm10, %v902_v27  ;;  %v1280_v31 = vadd.f32 %v4480_v28, %v1178_v30 }
 0x115   : > { %v928_v33 = vld [vmem:[#allocation2 + $0x30] sm:$0xff]  ;;  %v1176_v34 = vld [vmem:[#allocation2] sm:$0xff]  ;;  %v4475_v37 = vpop.f32.mrf.mxu1  ;;  %v1250_v46 = vpop.f32.mrf.mxu0 }
 0x116   : > { %v1038_v36 = vadd.f32 %v4474_v26, %v928_v33  ;;  %1288 = vst.msk [vmem:[#allocation2 + $0x10] sm:$0xff] %vm470_vm10, %v1280_v31  ;;  %v1278_v38 = vadd.f32 %v1247_v32, %v1176_v34 }
 0x117   : > { %v926_v40 = vld [vmem:[#allocation2 + $0x20] sm:$0xff]  ;;  %v1179_v41 = vld [vmem:[#allocation2 + $0x18] sm:$0xff]  ;;  %v1020_v48 = vpop.f32.mrf.mxu1 }
 0x118   : > { %1046 = vst.msk [vmem:[#allocation2 + $0x30] sm:$0xff] %vm470_vm10, %v1038_v36  ;;  %v1036_v42 = vadd.f32 %v1017_v29, %v926_v40  ;;  %1286 = vst.msk [vmem:[#allocation2] sm:$0xff] %vm470_vm10, %v1278_v38  ;;  %v1281_v43 = vadd.f32 %v4481_v39, %v1179_v41 }
 0x119   : > { %v929_v44 = vld [vmem:[#allocation2 + $0x38] sm:$0xff]  ;;  %v1177_v45 = vld [vmem:[#allocation2 + $0x8] sm:$0xff]  ;;  %v4490_v52 = vpop.f32.mrf.mxu1 }
 0x11a   : > { %1044 = vst.msk [vmem:[#allocation2 + $0x20] sm:$0xff] %vm470_vm10, %v1036_v42  ;;  %v1039_v47 = vadd.f32 %v4475_v37, %v929_v44  ;;  %1289 = vst.msk [vmem:[#allocation2 + $0x18] sm:$0xff] %vm470_vm10, %v1281_v43  ;;  %v1279_v49 = vadd.f32 %v1250_v46, %v1177_v45  ;;  %v4484_v53 = vpop.f32.mrf.mxu0 }
 0x11b   : > { %v927_v50 = vld [vmem:[#allocation2 + $0x28] sm:$0xff]  ;;  %v1429_v56 = vpop.f32.mrf.mxu1 }
 0x11c   : > { %1047 = vst.msk [vmem:[#allocation2 + $0x38] sm:$0xff] %vm470_vm10, %v1039_v47  ;;  %v1037_v51 = vadd.f32 %v1020_v48, %v927_v50  ;;  %1287 = vst.msk [vmem:[#allocation2 + $0x8] sm:$0xff] %vm470_vm10, %v1279_v49  ;;  %v1263_v58 = vpop.f32.mrf.mxu0 }
 0x11d   : > { %v1360_v54 = vld [vmem:[#allocation2 + $0x10] sm:$0xff]  ;;  %v4491_v62 = vpop.f32.mrf.mxu1 }
 0x11e   : > { %1045 = vst.msk [vmem:[#allocation2 + $0x28] sm:$0xff] %vm470_vm10, %v1037_v51  ;;  %v1462_v55 = vadd.f32 %v4490_v52, %v1360_v54  ;;  %v4485_v0 = vpop.f32.mrf.mxu0 }
 0x11f   : > { %v1182_v57 = vld [vmem:[#allocation2 + $0x30] sm:$0xff]  ;;  %v1358_v59 = vld [vmem:[#allocation2] sm:$0xff]  ;;  %v1432_v4 = vpop.f32.mrf.mxu1 }
 0x120   : > { %v1284_v60 = vadd.f32 %v4484_v53, %v1182_v57  ;;  %1470 = vst.msk [vmem:[#allocation2 + $0x10] sm:$0xff] %vm470_vm10, %v1462_v55  ;;  %v1460_v61 = vadd.f32 %v1429_v56, %v1358_v59  ;;  %v1266_v5 = vpop.f32.mrf.mxu0 }
 0x121   : > { %v1180_v63 = vld [vmem:[#allocation2 + $0x20] sm:$0xff]  ;;  %v1361_v1 = vld [vmem:[#allocation2 + $0x18] sm:$0xff]  ;;  %v4494_v10 = vpop.f32.mrf.mxu1 }
 0x122   : > { %1292 = vst.msk [vmem:[#allocation2 + $0x30] sm:$0xff] %vm470_vm10, %v1284_v60  ;;  %v1282_v2 = vadd.f32 %v1263_v58, %v1180_v63  ;;  %1468 = vst.msk [vmem:[#allocation2] sm:$0xff] %vm470_vm10, %v1460_v61  ;;  %v1463_v3 = vadd.f32 %v4491_v62, %v1361_v1  ;;  %v4500_v12 = vpop.f32.mrf.mxu0 }
 0x123   : > { %v1183_v35 = vld [vmem:[#allocation2 + $0x38] sm:$0xff]  ;;  %v1359_v6 = vld [vmem:[#allocation2 + $0x8] sm:$0xff]  ;;  %v1445_v14 = vpop.f32.mrf.mxu1 }
 0x124   : > { %1290 = vst.msk [vmem:[#allocation2 + $0x20] sm:$0xff] %vm470_vm10, %v1282_v2  ;;  %v1285_v7 = vadd.f32 %v4485_v0, %v1183_v35  ;;  %1471 = vst.msk [vmem:[#allocation2 + $0x18] sm:$0xff] %vm470_vm10, %v1463_v3  ;;  %v1461_v8 = vadd.f32 %v1432_v4, %v1359_v6  ;;  %v1564_v16 = vpop.f32.mrf.mxu0 }
 0x125   : > { %v1181_v11 = vld [vmem:[#allocation2 + $0x28] sm:$0xff]  ;;  %v4495_v21 = vpop.f32.mrf.mxu1 }
 0x126   : > { %1293 = vst.msk [vmem:[#allocation2 + $0x38] sm:$0xff] %vm470_vm10, %v1285_v7  ;;  %v1283_v13 = vadd.f32 %v1266_v5, %v1181_v11  ;;  %1469 = vst.msk [vmem:[#allocation2 + $0x8] sm:$0xff] %vm470_vm10, %v1461_v8  ;;  %v4501_v19 = vpop.f32.mrf.mxu0 }
 0x127   : > { %v1487_v15 = vld [vmem:[#allocation2 + $0x10] sm:$0xff]  ;;  %v1448_v32 = vpop.f32.mrf.mxu1 }
 0x128   : > { %1291 = vst.msk [vmem:[#allocation2 + $0x28] sm:$0xff] %vm470_vm10, %v1283_v13  ;;  %v1597_v17 = vadd.f32 %v4500_v12, %v1487_v15  ;;  %v1567_v25 = vpop.f32.mrf.mxu0 }
 0x129   : > { %v1364_v9 = vld [vmem:[#allocation2 + $0x30] sm:$0xff]  ;;  %v1485_v18 = vld [vmem:[#allocation2] sm:$0xff] }
 0x12a   : > { %v1466_v20 = vadd.f32 %v4494_v10, %v1364_v9  ;;  %1605 = vst.msk [vmem:[#allocation2 + $0x10] sm:$0xff] %vm470_vm10, %v1597_v17  ;;  %v1595_v22 = vadd.f32 %v1564_v16, %v1485_v18  ;;  %v4504_v30 = vpop.f32.mrf.mxu0  ;;  %v4510_v38 = vpop.f32.mrf.mxu1 }
 0x12b   : > { %v1362_v23 = vld [vmem:[#allocation2 + $0x20] sm:$0xff]  ;;  %v1488_v24 = vld [vmem:[#allocation2 + $0x18] sm:$0xff] }
 0x12c   : > { %1474 = vst.msk [vmem:[#allocation2 + $0x30] sm:$0xff] %vm470_vm10, %v1466_v20  ;;  %v1464_v26 = vadd.f32 %v1445_v14, %v1362_v23  ;;  %1603 = vst.msk [vmem:[#allocation2] sm:$0xff] %vm470_vm10, %v1595_v22  ;;  %v1598_v27 = vadd.f32 %v4501_v19, %v1488_v24  ;;  %v1580_v37 = vpop.f32.mrf.mxu0  ;;  %v1810_v41 = vpop.f32.mrf.mxu1 }
 0x12d   : > { %v1365_v28 = vld [vmem:[#allocation2 + $0x38] sm:$0xff]  ;;  %v1486_v29 = vld [vmem:[#allocation2 + $0x8] sm:$0xff] }
 0x12e   : > { %1472 = vst.msk [vmem:[#allocation2 + $0x20] sm:$0xff] %vm470_vm10, %v1464_v26  ;;  %v1467_v31 = vadd.f32 %v4495_v21, %v1365_v28  ;;  %1606 = vst.msk [vmem:[#allocation2 + $0x18] sm:$0xff] %vm470_vm10, %v1598_v27  ;;  %v1596_v33 = vadd.f32 %v1567_v25, %v1486_v29  ;;  %v4505_v45 = vpop.f32.mrf.mxu0  ;;  %v4511_v47 = vpop.f32.mrf.mxu1 }
 0x12f   : > { %v1363_v34 = vld [vmem:[#allocation2 + $0x28] sm:$0xff] }
 0x130   : > { %1475 = vst.msk [vmem:[#allocation2 + $0x38] sm:$0xff] %vm470_vm10, %v1467_v31  ;;  %v1465_v36 = vadd.f32 %v1448_v32, %v1363_v34  ;;  %1604 = vst.msk [vmem:[#allocation2 + $0x8] sm:$0xff] %vm470_vm10, %v1596_v33  ;;  %v1813_v54 = vpop.f32.mrf.mxu1  ;;  %v1583_v56 = vpop.f32.mrf.mxu0 }
 0x131   : > { %v1741_v39 = vld [vmem:[#allocation2 + $0x10] sm:$0xff] }
 0x132   : > { %1473 = vst.msk [vmem:[#allocation2 + $0x28] sm:$0xff] %vm470_vm10, %v1465_v36  ;;  %v1843_v40 = vadd.f32 %v4510_v38, %v1741_v39 }
 0x133   : > { %v1491_v42 = vld [vmem:[#allocation2 + $0x30] sm:$0xff]  ;;  %v1739_v43 = vld [vmem:[#allocation2] sm:$0xff] }
 0x134   : > { %v1601_v44 = vadd.f32 %v4504_v30, %v1491_v42  ;;  %1851 = vst.msk [vmem:[#allocation2 + $0x10] sm:$0xff] %vm470_vm10, %v1843_v40  ;;  %v1841_v46 = vadd.f32 %v1810_v41, %v1739_v43  ;;  %v4520_v60 = vpop.f32.mrf.mxu0 }
 0x135   : > { %v1489_v48 = vld [vmem:[#allocation2 + $0x20] sm:$0xff]  ;;  %v1742_v49 = vld [vmem:[#allocation2 + $0x18] sm:$0xff]  ;;  %v4514_v61 = vpop.f32.mrf.mxu1 }
 0x136   : > { %1609 = vst.msk [vmem:[#allocation2 + $0x30] sm:$0xff] %vm470_vm10, %v1601_v44  ;;  %v1599_v50 = vadd.f32 %v1580_v37, %v1489_v48  ;;  %1849 = vst.msk [vmem:[#allocation2] sm:$0xff] %vm470_vm10, %v1841_v46  ;;  %v1844_v51 = vadd.f32 %v4511_v47, %v1742_v49  ;;  %v1992_v0 = vpop.f32.mrf.mxu0 }
 0x137   : > { %v1492_v52 = vld [vmem:[#allocation2 + $0x38] sm:$0xff]  ;;  %v1740_v53 = vld [vmem:[#allocation2 + $0x8] sm:$0xff]  ;;  %v1826_v2 = vpop.f32.mrf.mxu1 }
 0x138   : > { %1607 = vst.msk [vmem:[#allocation2 + $0x20] sm:$0xff] %vm470_vm10, %v1599_v50  ;;  %v1602_v55 = vadd.f32 %v4505_v45, %v1492_v52  ;;  %1852 = vst.msk [vmem:[#allocation2 + $0x18] sm:$0xff] %vm470_vm10, %v1844_v51  ;;  %v1842_v57 = vadd.f32 %v1813_v54, %v1740_v53  ;;  %v4521_v5 = vpop.f32.mrf.mxu0 }
 0x139   : > { %v1490_v58 = vld [vmem:[#allocation2 + $0x28] sm:$0xff]  ;;  %v4515_v7 = vpop.f32.mrf.mxu1 }
 0x13a   : > { %1610 = vst.msk [vmem:[#allocation2 + $0x38] sm:$0xff] %vm470_vm10, %v1602_v55  ;;  %v1600_v59 = vadd.f32 %v1583_v56, %v1490_v58  ;;  %1850 = vst.msk [vmem:[#allocation2 + $0x8] sm:$0xff] %vm470_vm10, %v1842_v57  ;;  %v1995_v12 = vpop.f32.mrf.mxu0 }
 0x13b   : > { %v1923_v62 = vld [vmem:[#allocation2 + $0x10] sm:$0xff]  ;;  %v1829_v14 = vpop.f32.mrf.mxu1 }
 0x13c   : > { %1608 = vst.msk [vmem:[#allocation2 + $0x28] sm:$0xff] %vm470_vm10, %v1600_v59  ;;  %v2025_v63 = vadd.f32 %v4520_v60, %v1923_v62  ;;  %v4524_v9 = vpop.f32.mrf.mxu0 }
 0x13d   : > { %v1745_v1 = vld [vmem:[#allocation2 + $0x30] sm:$0xff]  ;;  %v1921_v3 = vld [vmem:[#allocation2] sm:$0xff]  ;;  %v4530_v19 = vpop.f32.mrf.mxu1 }
 0x13e   : > { %v1847_v4 = vadd.f32 %v4514_v61, %v1745_v1  ;;  %2033 = vst.msk [vmem:[#allocation2 + $0x10] sm:$0xff] %vm470_vm10, %v2025_v63  ;;  %v2023_v35 = vadd.f32 %v1992_v0, %v1921_v3  ;;  %v2008_v21 = vpop.f32.mrf.mxu0 }
 0x13f   : > { %v1743_v6 = vld [vmem:[#allocation2 + $0x20] sm:$0xff]  ;;  %v1924_v8 = vld [vmem:[#allocation2 + $0x18] sm:$0xff]  ;;  %v2133_v23 = vpop.f32.mrf.mxu1 }
 0x140   : > { %1855 = vst.msk [vmem:[#allocation2 + $0x30] sm:$0xff] %vm470_vm10, %v1847_v4  ;;  %v1845_v10 = vadd.f32 %v1826_v2, %v1743_v6  ;;  %2031 = vst.msk [vmem:[#allocation2] sm:$0xff] %vm470_vm10, %v2023_v35  ;;  %v2026_v11 = vadd.f32 %v4521_v5, %v1924_v8  ;;  %v4525_v31 = vpop.f32.mrf.mxu0 }
 0x141   : > { %v1746_v13 = vld [vmem:[#allocation2 + $0x38] sm:$0xff]  ;;  %v1922_v15 = vld [vmem:[#allocation2 + $0x8] sm:$0xff]  ;;  %v4531_v27 = vpop.f32.mrf.mxu1 }
 0x142   : > { %1853 = vst.msk [vmem:[#allocation2 + $0x20] sm:$0xff] %vm470_vm10, %v1845_v10  ;;  %v1848_v16 = vadd.f32 %v4515_v7, %v1746_v13  ;;  %2034 = vst.msk [vmem:[#allocation2 + $0x18] sm:$0xff] %vm470_vm10, %v2026_v11  ;;  %v2024_v17 = vadd.f32 %v1995_v12, %v1922_v15  ;;  %v2011_v43 = vpop.f32.mrf.mxu0 }
 0x143   : > { %v1744_v18 = vld [vmem:[#allocation2 + $0x28] sm:$0xff]  ;;  %v2136_v33 = vpop.f32.mrf.mxu1 }
 0x144   : > { %1856 = vst.msk [vmem:[#allocation2 + $0x38] sm:$0xff] %vm470_vm10, %v1848_v16  ;;  %v1846_v20 = vadd.f32 %v1829_v14, %v1744_v18  ;;  %2032 = vst.msk [vmem:[#allocation2 + $0x8] sm:$0xff] %vm470_vm10, %v2024_v17 }
 0x145   : > { %v2049_v22 = vld [vmem:[#allocation2 + $0x10] sm:$0xff]  ;;  %v4534_v39 = vpop.f32.mrf.mxu1 }
 0x146   : > { %1854 = vst.msk [vmem:[#allocation2 + $0x28] sm:$0xff] %vm470_vm10, %v1846_v20  ;;  %v2166_v24 = vadd.f32 %v4530_v19, %v2049_v22  ;;  %v4540_v47 = vpop.f32.mrf.mxu0 }
 0x147   : > { %v1927_v25 = vld [vmem:[#allocation2 + $0x30] sm:$0xff]  ;;  %v2047_v26 = vld [vmem:[#allocation2] sm:$0xff]  ;;  %v2149_v45 = vpop.f32.mrf.mxu1 }
 0x148   : > { %v2029_v28 = vadd.f32 %v4524_v9, %v1927_v25  ;;  %2174 = vst.msk [vmem:[#allocation2 + $0x10] sm:$0xff] %vm470_vm10, %v2166_v24  ;;  %v2164_v29 = vadd.f32 %v2133_v23, %v2047_v26  ;;  %v2385_v52 = vpop.f32.mrf.mxu0 }
 0x149   : > { %v1925_v30 = vld [vmem:[#allocation2 + $0x20] sm:$0xff]  ;;  %v2050_v32 = vld [vmem:[#allocation2 + $0x18] sm:$0xff]  ;;  %v4535_v54 = vpop.f32.mrf.mxu1 }
 0x14a   : > { %2037 = vst.msk [vmem:[#allocation2 + $0x30] sm:$0xff] %vm470_vm10, %v2029_v28  ;;  %v2027_v34 = vadd.f32 %v2008_v21, %v1925_v30  ;;  %2172 = vst.msk [vmem:[#allocation2] sm:$0xff] %vm470_vm10, %v2164_v29  ;;  %v2167_v36 = vadd.f32 %v4531_v27, %v2050_v32  ;;  %v4541_v58 = vpop.f32.mrf.mxu0 }
 0x14b   : > { %v1928_v37 = vld [vmem:[#allocation2 + $0x38] sm:$0xff]  ;;  %v2048_v38 = vld [vmem:[#allocation2 + $0x8] sm:$0xff]  ;;  %v2152_v1 = vpop.f32.mrf.mxu1 }
 0x14c   : > { %2035 = vst.msk [vmem:[#allocation2 + $0x20] sm:$0xff] %vm470_vm10, %v2027_v34  ;;  %v2030_v40 = vadd.f32 %v4525_v31, %v1928_v37  ;;  %2175 = vst.msk [vmem:[#allocation2 + $0x18] sm:$0xff] %vm470_vm10, %v2167_v36  ;;  %v2165_v41 = vadd.f32 %v2136_v33, %v2048_v38  ;;  %v2388_v63 = vpop.f32.mrf.mxu0 }
 0x14d   : > { %v1926_v42 = vld [vmem:[#allocation2 + $0x28] sm:$0xff] }
 0x14e   : > { %2038 = vst.msk [vmem:[#allocation2 + $0x38] sm:$0xff] %vm470_vm10, %v2030_v40  ;;  %v2028_v44 = vadd.f32 %v2011_v43, %v1926_v42  ;;  %2173 = vst.msk [vmem:[#allocation2 + $0x8] sm:$0xff] %vm470_vm10, %v2165_v41 }
 0x14f   : > { %v2310_v46 = vld [vmem:[#allocation2 + $0x10] sm:$0xff] }
 0x150   : > { %2036 = vst.msk [vmem:[#allocation2 + $0x28] sm:$0xff] %vm470_vm10, %v2028_v44  ;;  %v2418_v49 = vadd.f32 %v4540_v47, %v2310_v46  ;;  %v4544_v4 = vpop.f32.mrf.mxu0  ;;  %v4550_v5 = vpop.f32.mrf.mxu1 }
 0x151   : > { %v2053_v48 = vld [vmem:[#allocation2 + $0x30] sm:$0xff]  ;;  %v2308_v50 = vld [vmem:[#allocation2] sm:$0xff] }
 0x152   : > { %v2170_v51 = vadd.f32 %v4534_v39, %v2053_v48  ;;  %2426 = vst.msk [vmem:[#allocation2 + $0x10] sm:$0xff] %vm470_vm10, %v2418_v49  ;;  %v2416_v55 = vadd.f32 %v2385_v52, %v2308_v50  ;;  %v2401_v10 = vpop.f32.mrf.mxu0  ;;  %v2573_v12 = vpop.f32.mrf.mxu1 }
 0x153   : > { %v2051_v53 = vld [vmem:[#allocation2 + $0x20] sm:$0xff]  ;;  %v2311_v56 = vld [vmem:[#allocation2 + $0x18] sm:$0xff] }
 0x154   : > { %2178 = vst.msk [vmem:[#allocation2 + $0x30] sm:$0xff] %vm470_vm10, %v2170_v51  ;;  %v2168_v57 = vadd.f32 %v2149_v45, %v2051_v53  ;;  %2424 = vst.msk [vmem:[#allocation2] sm:$0xff] %vm470_vm10, %v2416_v55  ;;  %v2419_v60 = vadd.f32 %v4541_v58, %v2311_v56  ;;  %v4545_v16 = vpop.f32.mrf.mxu0  ;;  %v4551_v9 = vpop.f32.mrf.mxu1 }
 0x155   : > { %v2054_v59 = vld [vmem:[#allocation2 + $0x38] sm:$0xff]  ;;  %v2309_v61 = vld [vmem:[#allocation2 + $0x8] sm:$0xff] }
 0x156   : > { %2176 = vst.msk [vmem:[#allocation2 + $0x20] sm:$0xff] %vm470_vm10, %v2168_v57  ;;  %v2171_v62 = vadd.f32 %v4535_v54, %v2054_v59  ;;  %2427 = vst.msk [vmem:[#allocation2 + $0x18] sm:$0xff] %vm470_vm10, %v2419_v60  ;;  %v2417_v2 = vadd.f32 %v2388_v63, %v2309_v61  ;;  %v2404_v21 = vpop.f32.mrf.mxu0  ;;  %v2576_v23 = vpop.f32.mrf.mxu1 }
 0x157   : > { %v2052_v0 = vld [vmem:[#allocation2 + $0x28] sm:$0xff] }
 0x158   : > { %2179 = vst.msk [vmem:[#allocation2 + $0x38] sm:$0xff] %vm470_vm10, %v2171_v62  ;;  %v2169_v3 = vadd.f32 %v2152_v1, %v2052_v0  ;;  %2425 = vst.msk [vmem:[#allocation2 + $0x8] sm:$0xff] %vm470_vm10, %v2417_v2  ;;  %v4554_v27 = vpop.f32.mrf.mxu1  ;;  %v4560_v28 = vpop.f32.mrf.mxu0 }
 0x159   : > { %v2498_v35 = vld [vmem:[#allocation2 + $0x10] sm:$0xff] }
 0x15a   : > { %2177 = vst.msk [vmem:[#allocation2 + $0x28] sm:$0xff] %vm470_vm10, %v2169_v3  ;;  %v2606_v7 = vadd.f32 %v4550_v5, %v2498_v35  ;;  %v2589_v29 = vpop.f32.mrf.mxu1  ;;  %v2714_v31 = vpop.f32.mrf.mxu0 }
 0x15b   : > { %v2314_v6 = vld [vmem:[#allocation2 + $0x30] sm:$0xff]  ;;  %v2496_v11 = vld [vmem:[#allocation2] sm:$0xff] }
 0x15c   : > { %v2422_v8 = vadd.f32 %v4544_v4, %v2314_v6  ;;  %2614 = vst.msk [vmem:[#allocation2 + $0x10] sm:$0xff] %vm470_vm10, %v2606_v7  ;;  %v2604_v14 = vadd.f32 %v2573_v12, %v2496_v11  ;;  %v4561_v37 = vpop.f32.mrf.mxu0  ;;  %v4555_v39 = vpop.f32.mrf.mxu1 }
 0x15d   : > { %v2312_v13 = vld [vmem:[#allocation2 + $0x20] sm:$0xff]  ;;  %v2499_v17 = vld [vmem:[#allocation2 + $0x18] sm:$0xff] }
 0x15e   : > { %2430 = vst.msk [vmem:[#allocation2 + $0x30] sm:$0xff] %vm470_vm10, %v2422_v8  ;;  %v2420_v15 = vadd.f32 %v2401_v10, %v2312_v13  ;;  %2612 = vst.msk [vmem:[#allocation2] sm:$0xff] %vm470_vm10, %v2604_v14  ;;  %v2607_v19 = vadd.f32 %v4551_v9, %v2499_v17  ;;  %v2717_v43 = vpop.f32.mrf.mxu0  ;;  %v2592_v50 = vpop.f32.mrf.mxu1 }
 0x15f   : > { %v2315_v18 = vld [vmem:[#allocation2 + $0x38] sm:$0xff]  ;;  %v2497_v22 = vld [vmem:[#allocation2 + $0x8] sm:$0xff] }
 0x160   : > { %2428 = vst.msk [vmem:[#allocation2 + $0x20] sm:$0xff] %vm470_vm10, %v2420_v15  ;;  %v2423_v20 = vadd.f32 %v4545_v16, %v2315_v18  ;;  %2615 = vst.msk [vmem:[#allocation2 + $0x18] sm:$0xff] %vm470_vm10, %v2607_v19  ;;  %v2605_v25 = vadd.f32 %v2576_v23, %v2497_v22  ;;  %v4564_v48 = vpop.f32.mrf.mxu0 }
 0x161   : > { %v2313_v24 = vld [vmem:[#allocation2 + $0x28] sm:$0xff]  ;;  %v4570_v56 = vpop.f32.mrf.mxu1 }
 0x162   : > { %2431 = vst.msk [vmem:[#allocation2 + $0x38] sm:$0xff] %vm470_vm10, %v2423_v20  ;;  %v2421_v26 = vadd.f32 %v2404_v21, %v2313_v24  ;;  %2613 = vst.msk [vmem:[#allocation2 + $0x8] sm:$0xff] %vm470_vm10, %v2605_v25  ;;  %v2730_v53 = vpop.f32.mrf.mxu0 }
 0x163   : > { %v2631_v30 = vld [vmem:[#allocation2 + $0x10] sm:$0xff]  ;;  %v2966_v62 = vpop.f32.mrf.mxu1 }
 0x164   : > { %2429 = vst.msk [vmem:[#allocation2 + $0x28] sm:$0xff] %vm470_vm10, %v2421_v26  ;;  %v2747_v33 = vadd.f32 %v4560_v28, %v2631_v30  ;;  %v4565_v61 = vpop.f32.mrf.mxu0 }
 0x165   : > { %v2502_v32 = vld [vmem:[#allocation2 + $0x30] sm:$0xff]  ;;  %v2629_v36 = vld [vmem:[#allocation2] sm:$0xff]  ;;  %v4571_v3 = vpop.f32.mrf.mxu1 }
 0x166   : > { %v2610_v34 = vadd.f32 %v4554_v27, %v2502_v32  ;;  %2755 = vst.msk [vmem:[#allocation2 + $0x10] sm:$0xff] %vm470_vm10, %v2747_v33  ;;  %v2745_v40 = vadd.f32 %v2714_v31, %v2629_v36  ;;  %v2733_v7 = vpop.f32.mrf.mxu0 }
 0x167   : > { %v2500_v38 = vld [vmem:[#allocation2 + $0x20] sm:$0xff]  ;;  %v2632_v42 = vld [vmem:[#allocation2 + $0x18] sm:$0xff]  ;;  %v2969_v8 = vpop.f32.mrf.mxu1 }
 0x168   : > { %2618 = vst.msk [vmem:[#allocation2 + $0x30] sm:$0xff] %vm470_vm10, %v2610_v34  ;;  %v2608_v41 = vadd.f32 %v2589_v29, %v2500_v38  ;;  %2753 = vst.msk [vmem:[#allocation2] sm:$0xff] %vm470_vm10, %v2745_v40  ;;  %v2748_v45 = vadd.f32 %v4561_v37, %v2632_v42 }
 0x169   : > { %v2503_v44 = vld [vmem:[#allocation2 + $0x38] sm:$0xff]  ;;  %v2630_v47 = vld [vmem:[#allocation2 + $0x8] sm:$0xff] }
 0x16a   : > { %2616 = vst.msk [vmem:[#allocation2 + $0x20] sm:$0xff] %vm470_vm10, %v2608_v41  ;;  %v2611_v46 = vadd.f32 %v4555_v39, %v2503_v44  ;;  %2756 = vst.msk [vmem:[#allocation2 + $0x18] sm:$0xff] %vm470_vm10, %v2748_v45  ;;  %v2746_v51 = vadd.f32 %v2717_v43, %v2630_v47 }
 0x16b   : > { %v2501_v49 = vld [vmem:[#allocation2 + $0x28] sm:$0xff]  ;;  %v4580_v14 = vpop.f32.mrf.mxu0 }
 0x16c   : > { %2619 = vst.msk [vmem:[#allocation2 + $0x38] sm:$0xff] %vm470_vm10, %v2611_v46  ;;  %v2609_v52 = vadd.f32 %v2592_v50, %v2501_v49  ;;  %2754 = vst.msk [vmem:[#allocation2 + $0x8] sm:$0xff] %vm470_vm10, %v2746_v51  ;;  %v4574_v15 = vpop.f32.mrf.mxu1 }
 0x16d   : > { %v2891_v54 = vld [vmem:[#allocation2 + $0x10] sm:$0xff]  ;;  %v3154_v19 = vpop.f32.mrf.mxu0 }
 0x16e   : > { %2617 = vst.msk [vmem:[#allocation2 + $0x28] sm:$0xff] %vm470_vm10, %v2609_v52  ;;  %v2999_v58 = vadd.f32 %v4570_v56, %v2891_v54  ;;  %v2982_v20 = vpop.f32.mrf.mxu1 }
 0x16f   : > { %v2635_v55 = vld [vmem:[#allocation2 + $0x30] sm:$0xff]  ;;  %v2889_v59 = vld [vmem:[#allocation2] sm:$0xff]  ;;  %v4581_v25 = vpop.f32.mrf.mxu0 }
 0x170   : > { %v2751_v57 = vadd.f32 %v4564_v48, %v2635_v55  ;;  %3007 = vst.msk [vmem:[#allocation2 + $0x10] sm:$0xff] %vm470_vm10, %v2999_v58  ;;  %v2997_v0 = vadd.f32 %v2966_v62, %v2889_v59  ;;  %v4575_v26 = vpop.f32.mrf.mxu1 }
 0x171   : > { %v2633_v60 = vld [vmem:[#allocation2 + $0x20] sm:$0xff]  ;;  %v2892_v1 = vld [vmem:[#allocation2 + $0x18] sm:$0xff]  ;;  %v3157_v31 = vpop.f32.mrf.mxu0 }
 0x172   : > { %2759 = vst.msk [vmem:[#allocation2 + $0x30] sm:$0xff] %vm470_vm10, %v2751_v57  ;;  %v2749_v63 = vadd.f32 %v2730_v53, %v2633_v60  ;;  %3005 = vst.msk [vmem:[#allocation2] sm:$0xff] %vm470_vm10, %v2997_v0  ;;  %v3000_v35 = vadd.f32 %v4571_v3, %v2892_v1  ;;  %v2985_v32 = vpop.f32.mrf.mxu1 }
 0x173   : > { %v2636_v2 = vld [vmem:[#allocation2 + $0x38] sm:$0xff]  ;;  %v2890_v5 = vld [vmem:[#allocation2 + $0x8] sm:$0xff]  ;;  %v4584_v36 = vpop.f32.mrf.mxu0 }
 0x174   : > { %2757 = vst.msk [vmem:[#allocation2 + $0x20] sm:$0xff] %vm470_vm10, %v2749_v63  ;;  %v2752_v4 = vadd.f32 %v4565_v61, %v2636_v2  ;;  %3008 = vst.msk [vmem:[#allocation2 + $0x18] sm:$0xff] %vm470_vm10, %v3000_v35  ;;  %v2998_v11 = vadd.f32 %v2969_v8, %v2890_v5  ;;  %v4590_v37 = vpop.f32.mrf.mxu1 }
 0x175   : > { %v2634_v6 = vld [vmem:[#allocation2 + $0x28] sm:$0xff]  ;;  %v3170_v38 = vpop.f32.mrf.mxu0 }
 0x176   : > { %2760 = vst.msk [vmem:[#allocation2 + $0x38] sm:$0xff] %vm470_vm10, %v2752_v4  ;;  %v2750_v10 = vadd.f32 %v2733_v7, %v2634_v6  ;;  %3006 = vst.msk [vmem:[#allocation2 + $0x8] sm:$0xff] %vm470_vm10, %v2998_v11  ;;  %v3295_v42 = vpop.f32.mrf.mxu1 }
 0x177   : > { %v3079_v13 = vld [vmem:[#allocation2 + $0x10] sm:$0xff]  ;;  %v4585_v46 = vpop.f32.mrf.mxu0 }
 0x178   : > { %2758 = vst.msk [vmem:[#allocation2 + $0x28] sm:$0xff] %vm470_vm10, %v2750_v10  ;;  %v3187_v16 = vadd.f32 %v4580_v14, %v3079_v13  ;;  %v4591_v48 = vpop.f32.mrf.mxu1 }
 0x179   : > { %v2895_v12 = vld [vmem:[#allocation2 + $0x30] sm:$0xff]  ;;  %v3077_v18 = vld [vmem:[#allocation2] sm:$0xff]  ;;  %v3173_v57 = vpop.f32.mrf.mxu0 }
 0x17a   : > { %v3003_v17 = vadd.f32 %v4574_v15, %v2895_v12  ;;  %3195 = vst.msk [vmem:[#allocation2 + $0x10] sm:$0xff] %vm470_vm10, %v3187_v16  ;;  %v3185_v21 = vadd.f32 %v3154_v19, %v3077_v18  ;;  %v3298_v53 = vpop.f32.mrf.mxu1 }
 0x17b   : > { %v2893_v9 = vld [vmem:[#allocation2 + $0x20] sm:$0xff]  ;;  %v3080_v24 = vld [vmem:[#allocation2 + $0x18] sm:$0xff] }
 0x17c   : > { %3011 = vst.msk [vmem:[#allocation2 + $0x30] sm:$0xff] %vm470_vm10, %v3003_v17  ;;  %v3001_v22 = vadd.f32 %v2982_v20, %v2893_v9  ;;  %3193 = vst.msk [vmem:[#allocation2] sm:$0xff] %vm470_vm10, %v3185_v21  ;;  %v3188_v27 = vadd.f32 %v4581_v25, %v3080_v24  ;;  %v4594_v59 = vpop.f32.mrf.mxu1  ;;  %v4600_v1 = vpop.f32.mrf.mxu0 }
 0x17d   : > { %v2896_v23 = vld [vmem:[#allocation2 + $0x38] sm:$0xff]  ;;  %v3078_v30 = vld [vmem:[#allocation2 + $0x8] sm:$0xff] }
 0x17e   : > { %3009 = vst.msk [vmem:[#allocation2 + $0x20] sm:$0xff] %vm470_vm10, %v3001_v22  ;;  %v3004_v28 = vadd.f32 %v4575_v26, %v2896_v23  ;;  %3196 = vst.msk [vmem:[#allocation2 + $0x18] sm:$0xff] %vm470_vm10, %v3188_v27  ;;  %v3186_v33 = vadd.f32 %v3157_v31, %v3078_v30  ;;  %v3311_v61 = vpop.f32.mrf.mxu1  ;;  %v3547_v6 = vpop.f32.mrf.mxu0 }
 0x17f   : > { %v2894_v29 = vld [vmem:[#allocation2 + $0x28] sm:$0xff] }
 0x180   : > { %3012 = vst.msk [vmem:[#allocation2 + $0x38] sm:$0xff] %vm470_vm10, %v3004_v28  ;;  %v3002_v34 = vadd.f32 %v2985_v32, %v2894_v29  ;;  %3194 = vst.msk [vmem:[#allocation2 + $0x8] sm:$0xff] %vm470_vm10, %v3186_v33  ;;  %v4595_v35 = vpop.f32.mrf.mxu1  ;;  %v4601_v12 = vpop.f32.mrf.mxu0 }
 0x181   : > { %v3212_v39 = vld [vmem:[#allocation2 + $0x10] sm:$0xff] }
 0x182   : > { %3010 = vst.msk [vmem:[#allocation2 + $0x28] sm:$0xff] %vm470_vm10, %v3002_v34  ;;  %v3328_v41 = vadd.f32 %v4590_v37, %v3212_v39  ;;  %v3314_v15 = vpop.f32.mrf.mxu1  ;;  %v3550_v9 = vpop.f32.mrf.mxu0 }
 0x183   : > { %v3083_v40 = vld [vmem:[#allocation2 + $0x30] sm:$0xff]  ;;  %v3210_v44 = vld [vmem:[#allocation2] sm:$0xff] }
 0x184   : > { %v3191_v43 = vadd.f32 %v4584_v36, %v3083_v40  ;;  %3336 = vst.msk [vmem:[#allocation2 + $0x10] sm:$0xff] %vm470_vm10, %v3328_v41  ;;  %v3326_v47 = vadd.f32 %v3295_v42, %v3210_v44 }
 0x185   : > { %v3081_v45 = vld [vmem:[#allocation2 + $0x20] sm:$0xff]  ;;  %v3213_v50 = vld [vmem:[#allocation2 + $0x18] sm:$0xff] }
 0x186   : > { %3199 = vst.msk [vmem:[#allocation2 + $0x30] sm:$0xff] %vm470_vm10, %v3191_v43  ;;  %v3189_v49 = vadd.f32 %v3170_v38, %v3081_v45  ;;  %3334 = vst.msk [vmem:[#allocation2] sm:$0xff] %vm470_vm10, %v3326_v47  ;;  %v3329_v52 = vadd.f32 %v4591_v48, %v3213_v50  ;;  %v4610_v21 = vpop.f32.mrf.mxu1 }
 0x187   : > { %v3084_v51 = vld [vmem:[#allocation2 + $0x38] sm:$0xff]  ;;  %v3211_v55 = vld [vmem:[#allocation2 + $0x8] sm:$0xff]  ;;  %v4604_v22 = vpop.f32.mrf.mxu0 }
 0x188   : > { %3197 = vst.msk [vmem:[#allocation2 + $0x20] sm:$0xff] %vm470_vm10, %v3189_v49  ;;  %v3192_v54 = vadd.f32 %v4585_v46, %v3084_v51  ;;  %3337 = vst.msk [vmem:[#allocation2 + $0x18] sm:$0xff] %vm470_vm10, %v3329_v52  ;;  %v3327_v58 = vadd.f32 %v3298_v53, %v3211_v55  ;;  %v3735_v27 = vpop.f32.mrf.mxu1 }
 0x189   : > { %v3082_v56 = vld [vmem:[#allocation2 + $0x28] sm:$0xff]  ;;  %v3563_v28 = vpop.f32.mrf.mxu0 }
 0x18a   : > { %3200 = vst.msk [vmem:[#allocation2 + $0x38] sm:$0xff] %vm470_vm10, %v3192_v54  ;;  %v3190_v60 = vadd.f32 %v3173_v57, %v3082_v56  ;;  %3335 = vst.msk [vmem:[#allocation2 + $0x8] sm:$0xff] %vm470_vm10, %v3327_v58  ;;  %v4611_v33 = vpop.f32.mrf.mxu1 }
 0x18b   : > { %v3472_v62 = vld [vmem:[#allocation2 + $0x10] sm:$0xff]  ;;  %v4605_v34 = vpop.f32.mrf.mxu0 }
 0x18c   : > { %3198 = vst.msk [vmem:[#allocation2 + $0x28] sm:$0xff] %vm470_vm10, %v3190_v60  ;;  %v3580_v4 = vadd.f32 %v4600_v1, %v3472_v62  ;;  %v3738_v40 = vpop.f32.mrf.mxu1 }
 0x18d   : > { %v3216_v63 = vld [vmem:[#allocation2 + $0x30] sm:$0xff]  ;;  %v3470_v2 = vld [vmem:[#allocation2] sm:$0xff]  ;;  %v3566_v41 = vpop.f32.mrf.mxu0 }
 0x18e   : > { %v3332_v0 = vadd.f32 %v4594_v59, %v3216_v63  ;;  %3588 = vst.msk [vmem:[#allocation2 + $0x10] sm:$0xff] %vm470_vm10, %v3580_v4  ;;  %v3578_v10 = vadd.f32 %v3547_v6, %v3470_v2  ;;  %v4614_v44 = vpop.f32.mrf.mxu1 }
 0x18f   : > { %v3214_v3 = vld [vmem:[#allocation2 + $0x20] sm:$0xff]  ;;  %v3473_v7 = vld [vmem:[#allocation2 + $0x18] sm:$0xff] }
 0x190   : > { %3340 = vst.msk [vmem:[#allocation2 + $0x30] sm:$0xff] %vm470_vm10, %v3332_v0  ;;  %v3330_v5 = vadd.f32 %v3311_v61, %v3214_v3  ;;  %3586 = vst.msk [vmem:[#allocation2] sm:$0xff] %vm470_vm10, %v3578_v10  ;;  %v3581_v16 = vadd.f32 %v4601_v12, %v3473_v7  ;;  %v3751_v45 = vpop.f32.mrf.mxu1 }
 0x191   : > { %v3217_v8 = vld [vmem:[#allocation2 + $0x38] sm:$0xff]  ;;  %v3471_v13 = vld [vmem:[#allocation2 + $0x8] sm:$0xff] }
 0x192   : > { %3338 = vst.msk [vmem:[#allocation2 + $0x20] sm:$0xff] %vm470_vm10, %v3330_v5  ;;  %v3333_v11 = vadd.f32 %v4595_v35, %v3217_v8  ;;  %3589 = vst.msk [vmem:[#allocation2 + $0x18] sm:$0xff] %vm470_vm10, %v3581_v16  ;;  %v3579_v18 = vadd.f32 %v3550_v9, %v3471_v13  ;;  %v4615_v49 = vpop.f32.mrf.mxu1 }
 0x193   : > { %v3215_v14 = vld [vmem:[#allocation2 + $0x28] sm:$0xff] }
 0x194   : > { %3341 = vst.msk [vmem:[#allocation2 + $0x38] sm:$0xff] %vm470_vm10, %v3333_v11  ;;  %v3331_v17 = vadd.f32 %v3314_v15, %v3215_v14  ;;  %3587 = vst.msk [vmem:[#allocation2 + $0x8] sm:$0xff] %vm470_vm10, %v3579_v18  ;;  %v3754_v54 = vpop.f32.mrf.mxu1 }
 0x195   : > { %v3660_v20 = vld [vmem:[#allocation2 + $0x10] sm:$0xff] }
 0x196   : > { %3339 = vst.msk [vmem:[#allocation2 + $0x28] sm:$0xff] %vm470_vm10, %v3331_v17  ;;  %v3768_v24 = vadd.f32 %v4610_v21, %v3660_v20 }
 0x197   : > { %v3476_v19 = vld [vmem:[#allocation2 + $0x30] sm:$0xff]  ;;  %v3658_v26 = vld [vmem:[#allocation2] sm:$0xff] }
 0x198   : > { %v3584_v25 = vadd.f32 %v4604_v22, %v3476_v19  ;;  %3776 = vst.msk [vmem:[#allocation2 + $0x10] sm:$0xff] %vm470_vm10, %v3768_v24  ;;  %v3766_v30 = vadd.f32 %v3735_v27, %v3658_v26 }
 0x199   : > { %v3474_v23 = vld [vmem:[#allocation2 + $0x20] sm:$0xff]  ;;  %v3661_v32 = vld [vmem:[#allocation2 + $0x18] sm:$0xff] }
 0x19a   : > { %3592 = vst.msk [vmem:[#allocation2 + $0x30] sm:$0xff] %vm470_vm10, %v3584_v25  ;;  %v3582_v31 = vadd.f32 %v3563_v28, %v3474_v23  ;;  %3774 = vst.msk [vmem:[#allocation2] sm:$0xff] %vm470_vm10, %v3766_v30  ;;  %v3769_v37 = vadd.f32 %v4611_v33, %v3661_v32 }
 0x19b   : > { %v3477_v29 = vld [vmem:[#allocation2 + $0x38] sm:$0xff]  ;;  %v3659_v39 = vld [vmem:[#allocation2 + $0x8] sm:$0xff] }
 0x19c   : > { %3590 = vst.msk [vmem:[#allocation2 + $0x20] sm:$0xff] %vm470_vm10, %v3582_v31  ;;  %v3585_v38 = vadd.f32 %v4605_v34, %v3477_v29  ;;  %3777 = vst.msk [vmem:[#allocation2 + $0x18] sm:$0xff] %vm470_vm10, %v3769_v37  ;;  %v3767_v42 = vadd.f32 %v3738_v40, %v3659_v39 }
 0x19d   : > { %v3475_v36 = vld [vmem:[#allocation2 + $0x28] sm:$0xff] }
 0x19e   : > { %3593 = vst.msk [vmem:[#allocation2 + $0x38] sm:$0xff] %vm470_vm10, %v3585_v38  ;;  %v3583_v43 = vadd.f32 %v3566_v41, %v3475_v36  ;;  %3775 = vst.msk [vmem:[#allocation2 + $0x8] sm:$0xff] %vm470_vm10, %v3767_v42 }
 0x1a0   : > { %3591 = vst.msk [vmem:[#allocation2 + $0x28] sm:$0xff] %vm470_vm10, %v3583_v43 }
 0x1a1   : > { %v3664_v46 = vld [vmem:[#allocation2 + $0x30] sm:$0xff] }
 0x1a2   : > { %v3772_v47 = vadd.f32 %v4614_v44, %v3664_v46 }
 0x1a3   : > { %v3662_v48 = vld [vmem:[#allocation2 + $0x20] sm:$0xff] }
 0x1a4   : > { %3780 = vst.msk [vmem:[#allocation2 + $0x30] sm:$0xff] %vm470_vm10, %v3772_v47  ;;  %v3770_v50 = vadd.f32 %v3751_v45, %v3662_v48 }
 0x1a5   : > { %v3665_v51 = vld [vmem:[#allocation2 + $0x38] sm:$0xff] }
 0x1a6   : > { %3778 = vst.msk [vmem:[#allocation2 + $0x20] sm:$0xff] %vm470_vm10, %v3770_v50  ;;  %v3773_v52 = vadd.f32 %v4615_v49, %v3665_v51  ;;  %3785 = sbr.rel (%p4342_p9) target bundleno = 435 (0x1b3), region = 44 }
 0x1a7   : > { %v3663_v53 = vld [vmem:[#allocation2 + $0x28] sm:$0xff] }
 0x1a8   : > { %3781 = vst.msk [vmem:[#allocation2 + $0x38] sm:$0xff] %vm470_vm10, %v3773_v52  ;;  %v3771_v55 = vadd.f32 %v3754_v54, %v3663_v53 }
 0x1aa   : > { %3779 = vst.msk [vmem:[#allocation2 + $0x28] sm:$0xff] %vm470_vm10, %v3771_v55 }
 0x1ab   : > { %v3786_v56 = vld [vmem:[#allocation2] sm:$0xff]  ;;  %v3787_v57 = vld [vmem:[#allocation2 + $0x8] sm:$0xff]  ;;  %v3788_v58 = vld [vmem:[#allocation2 + $0x10] sm:$0xff] }
 0x1ac   : > { %3794 = vst.msk [vmem:[%s4835_s23] sm:$0xff] %vm470_vm10, %v3786_v56  ;;  %3795 = vst.msk [vmem:[%s4835_s23 + $0x8] sm:$0xff] %vm470_vm10, %v3787_v57  ;;  %v3789_v59 = vld [vmem:[#allocation2 + $0x18] sm:$0xff]  ;;  %v3792_v62 = vld [vmem:[#allocation2 + $0x30] sm:$0xff] }
 0x1ad   : > { %3796 = vst.msk [vmem:[%s4835_s23 + $0x10] sm:$0xff] %vm470_vm10, %v3788_v58  ;;  %v3790_v60 = vld [vmem:[#allocation2 + $0x20] sm:$0xff]  ;;  %3797 = vst.msk [vmem:[%s4835_s23 + $0x18] sm:$0xff] %vm470_vm10, %v3789_v59 }
 0x1ae   : > { %3798 = vst.msk [vmem:[%s4835_s23 + $0x20] sm:$0xff] %vm470_vm10, %v3790_v60  ;;  %3800 = vst.msk [vmem:[%s4835_s23 + $0x30] sm:$0xff] %vm470_vm10, %v3792_v62 }
 0x1af   : > { %v3793_v63 = vld [vmem:[#allocation2 + $0x38] sm:$0xff] }
 0x1b0   : > { %3801 = vst.msk [vmem:[%s4835_s23 + $0x38] sm:$0xff] %vm470_vm10, %v3793_v63 }
 0x1b1   : > { %v3791_v61 = vld [vmem:[#allocation2 + $0x28] sm:$0xff] }
 0x1b2   : > { %3799 = vst.msk [vmem:[%s4835_s23 + $0x28] sm:$0xff] %vm470_vm10, %v3791_v61 }
 0x1b3 PF: > { %s14_s19 = sadd.s32 1, %s4749_s19   ;;  %s5569_s15 = smov %s4741_s17 }
 0x1b4   : > { %p11_p10 = scmp.ge.s32.totalorder %s14_s19, 8   ;;  %s5570_s16 = smov %s4745_s18 }
 0x1b5   : > { %s5571_s17 = smov %s5574_s20  ;;  %s5572_s18 = smov %s5578_s21 }
 0x1b6   :  { %13 = sbr.rel (!%p11_p10) target bundleno = 3 (0x3), region = 103 }

</bundles_post_ra>
